<compile_context>
chip_gen: v6e
topology: v6e:2x2x1
jax: 0.10.0
libtpu: 0.0.40
codegen_flags: <defaults>
</compile_context>

<pallas_src>
import math

import jax
import jax.numpy as jnp
from jax.experimental import pallas as pl
from jax.experimental.pallas import tpu as pltpu

# ----------------------- small config (consistent with the module) -----------------------
IMG = 16            # img_size
PATCH = 4           # patch_size
NPR = IMG // PATCH  # patches per row = 4
N = NPR * NPR       # n_patches = 16 (sequence length)
P2 = PATCH * PATCH  # 16 (patch pixels / decoder output dim)
D = 128             # emb_dim
H = 4               # n_heads
HD = D // H         # head dim = 32
FF = 256            # dim_feedforward (scaled down from the torch default 2048)
DEPTH = 2           # number of encoder layers
EPS = 1e-5          # LayerNorm eps (torch default)
B = 2               # batch

# Batch folding: each grid step processes TILE_B batch elements, i.e.
# M = TILE_B * N matmul rows (~128 rows per step).  For B=2 this collapses to
# a single grid step with M=32; for larger B the "parallel" grid axis shards
# across TensorCores (v7x megacore).
TILE_B = max(1, min(B, 128 // N))
assert B % TILE_B == 0
GRID_B = B // TILE_B
M = TILE_B * N


def _layernorm(x, g, b):
    # f32 statistics (keep out of bf16 for accuracy)
    mu = jnp.mean(x, axis=-1, keepdims=True)
    xc = x - mu
    var = jnp.mean(xc * xc, axis=-1, keepdims=True)
    return xc * jax.lax.rsqrt(var + EPS) * g + b


def transformer_kernel(patches_ref, wpe_ref, posb_ref,
                       wqkv_ref, bqkv_ref, wo_ref, bo_ref,
                       ln1g_ref, ln1b_ref,
                       w1_ref, b1_ref, w2_ref, b2_ref,
                       ln2g_ref, ln2b_ref,
                       wd_ref, bd_ref,
                       out_ref):
    # patches_ref: (M, P2) bf16 -- TILE_B batch elements folded into M rows.
    p = patches_ref[...]

    # PatchEmbed: Conv2d(1, D, PATCH, PATCH) == per-patch linear projection.
    # posb = conv bias + positional embedding, pre-fused/tiled in the wrapper.
    x = jnp.dot(p, wpe_ref[...], preferred_element_type=jnp.float32)
    x = x + posb_ref[...]                                                 # (M, D) f32

    scale = 1.0 / math.sqrt(HD)
    for l in range(DEPTH):
        # ---- multi-head self attention (post-norm, eval-mode / no dropout) ----
        qkv = jnp.dot(x.astype(jnp.bfloat16), wqkv_ref[l],
                      preferred_element_type=jnp.float32) + bqkv_ref[l]   # (M, 3D) f32
        heads = []
        for h in range(H):  # static unroll; slices are lane-aligned (32-wide)
            qh = qkv[:, h * HD:(h + 1) * HD]
            kh = qkv[:, D + h * HD:D + (h + 1) * HD]
            vh = qkv[:, 2 * D + h * HD:2 * D + (h + 1) * HD]
            # split the folded batch back out along sublanes (cheap reshape)
            qh = qh.reshape(TILE_B, N, HD).astype(jnp.bfloat16)
            kh = kh.reshape(TILE_B, N, HD).astype(jnp.bfloat16)
            vh = vh.reshape(TILE_B, N, HD).astype(jnp.bfloat16)
            # contraction on the LAST axis of both operands -> no XLU transpose
            s = jnp.einsum('bqd,bkd->bqk', qh, kh,
                           preferred_element_type=jnp.float32) * scale    # (TILE_B, N, N)
            s = s - jnp.max(s, axis=-1, keepdims=True)
            e = jnp.exp(s)
            inv = pl.reciprocal(jnp.sum(e, axis=-1, keepdims=True), approx=True)
            prob = e * inv
            ctx = jnp.einsum('bqk,bkd->bqd', prob.astype(jnp.bfloat16), vh,
                             preferred_element_type=jnp.float32)          # (TILE_B, N, HD)
            heads.append(ctx.reshape(M, HD))
        attn = jnp.concatenate(heads, axis=-1)                            # (M, D) f32
        attn = jnp.dot(attn.astype(jnp.bfloat16), wo_ref[l],
                       preferred_element_type=jnp.float32) + bo_ref[l]
        x = _layernorm(x + attn, ln1g_ref[l], ln1b_ref[l])

        # ---- feed forward: Linear -> ReLU -> Linear ----
        ff = jnp.dot(x.astype(jnp.bfloat16), w1_ref[l],
                     preferred_element_type=jnp.float32) + b1_ref[l]
        ff = jnp.maximum(ff, 0.0)
        ff = jnp.dot(ff.astype(jnp.bfloat16), w2_ref[l],
                     preferred_element_type=jnp.float32) + b2_ref[l]
        x = _layernorm(x + ff, ln2g_ref[l], ln2b_ref[l])

    # ---- decoder: Linear(D, P2) + ReLU ----
    dec = jnp.dot(x.astype(jnp.bfloat16), wd_ref[...],
                  preferred_element_type=jnp.float32) + bd_ref[...]
    # TODO(synk): a lane-dense (TILE_B, N*P2) store would avoid masked vst on
    # the 16-wide last dim, but needs a sublane->lane merging relayout; skipped
    # (output is only ~2 KiB here, lowering risk outweighs the gain).
    out_ref[...] = jnp.maximum(dec, 0.0)                                  # (M, P2) f32


# ----------------------- parameters (deterministic synthetic init) -----------------------
def init_params(key):
    ks = jax.random.split(key, 20)
    s = 0.02
    params = dict(
        wpe=s * jax.random.normal(ks[0], (P2, D), jnp.float32),
        bpe=jnp.zeros((1, D), jnp.float32),
        pos=jax.random.normal(ks[1], (N, D), jnp.float32),        # torch.randn
        wqkv=s * jax.random.normal(ks[2], (DEPTH, D, 3 * D), jnp.float32),
        bqkv=jnp.zeros((DEPTH, 1, 3 * D), jnp.float32),
        wo=s * jax.random.normal(ks[3], (DEPTH, D, D), jnp.float32),
        bo=jnp.zeros((DEPTH, 1, D), jnp.float32),
        ln1g=jnp.ones((DEPTH, 1, D), jnp.float32),
        ln1b=jnp.zeros((DEPTH, 1, D), jnp.float32),
        w1=s * jax.random.normal(ks[4], (DEPTH, D, FF), jnp.float32),
        b1=jnp.zeros((DEPTH, 1, FF), jnp.float32),
        w2=s * jax.random.normal(ks[5], (DEPTH, FF, D), jnp.float32),
        b2=jnp.zeros((DEPTH, 1, D), jnp.float32),
        ln2g=jnp.ones((DEPTH, 1, D), jnp.float32),
        ln2b=jnp.zeros((DEPTH, 1, D), jnp.float32),
        wd=s * jax.random.normal(ks[6], (D, P2), jnp.float32),
        bd=jnp.zeros((1, P2), jnp.float32),
    )
    return params


# kernel argument order (posb = pre-fused conv bias + positional embedding)
PARAM_ORDER = ("wpe", "posb", "wqkv", "bqkv", "wo", "bo",
               "ln1g", "ln1b", "w1", "b1", "w2", "b2", "ln2g", "ln2b", "wd", "bd")

# weights that feed the MXU -> cast to bf16 in the wrapper (halves weight DMA)
BF16_WEIGHTS = ("wpe", "wqkv", "wo", "w1", "w2", "wd")


def _full_spec(shape):
    nd = len(shape)
    return pl.BlockSpec(shape, lambda b, _nd=nd: (0,) * _nd)


# ----------------------- glue: patchify / unpatchify -----------------------
def extract_patches(x):
    # x: (B, 1, IMG, IMG) NCHW -> (B, N, P2), matching Conv2d(k=stride=PATCH) flatten order
    b = x.shape[0]
    xb = x[:, 0]                                          # (B, IMG, IMG)
    xb = xb.reshape(b, NPR, PATCH, NPR, PATCH)
    xb = xb.transpose(0, 1, 3, 2, 4)                      # (B, NPR, NPR, PATCH, PATCH)
    return xb.reshape(b, N, P2)


def assemble_image(recon):
    # recon: (B, N, P2) -> (B, 1, IMG, IMG), matching torch view/permute/view
    b = recon.shape[0]
    r = recon.reshape(b, NPR, NPR, PATCH, PATCH)
    r = r.transpose(0, 1, 3, 2, 4)                        # (B, NPR, PATCH, NPR, PATCH)
    return r.reshape(b, 1, IMG, IMG)


@jax.jit
def forward(x, params):
    nb = x.shape[0]
    assert nb == B, (nb, B)

    # (B, 1, IMG, IMG) -> (B*N, P2): batch folded into sublanes, bf16 for the MXU
    patches = extract_patches(x).reshape(nb * N, P2).astype(jnp.bfloat16)

    w = dict(params)
    # fuse conv bias + positional embedding, pre-tiled over the folded batch
    w["posb"] = jnp.tile(params["pos"], (TILE_B, 1)) + params["bpe"]   # (M, D) f32
    del w["pos"], w["bpe"]
    for name in BF16_WEIGHTS:
        w[name] = w[name].astype(jnp.bfloat16)

    weights = [w[name] for name in PARAM_ORDER]

    in_specs = [pl.BlockSpec((M, P2), lambda b: (b, 0))] + \
               [_full_spec(wt.shape) for wt in weights]
    out_spec = pl.BlockSpec((M, P2), lambda b: (b, 0))

    recon = pl.pallas_call(
        transformer_kernel,
        out_shape=jax.ShapeDtypeStruct((nb * N, P2), jnp.float32),
        grid=(GRID_B,),
        in_specs=in_specs,
        out_specs=out_spec,
        compiler_params=pltpu.CompilerParams(
            dimension_semantics=("parallel",)),           # megacore sharding when GRID_B > 1
    )(patches, *weights)

    return assemble_image(recon.reshape(nb, N, P2))


if __name__ == "__main__":
    key = jax.random.PRNGKey(0)
    kx, kp = jax.random.split(key)
    x = jax.random.normal(kx, (B, 1, IMG, IMG), jnp.float32)   # NCHW, like PyTorch
    params = init_params(kp)

    out = forward(x, params)
    jax.block_until_ready(out)
    assert out.shape == (B, 1, IMG, IMG), out.shape
    assert bool(jnp.all(jnp.isfinite(out)))
    print("KERNEL_OK")
</pallas_src>

<mosaic_0001>
module attributes {stable_mosaic.version = 11 : i64} {
  func.func @transformer_kernel(%arg0: i32, %arg1: memref<32x16xbf16, #tpu.memory_space<vmem>>, %arg2: memref<16x128xbf16, #tpu.memory_space<vmem>>, %arg3: memref<32x128xf32, #tpu.memory_space<vmem>>, %arg4: memref<2x128x384xbf16, #tpu.memory_space<vmem>>, %arg5: memref<2x1x384xf32, #tpu.memory_space<vmem>>, %arg6: memref<2x128x128xbf16, #tpu.memory_space<vmem>>, %arg7: memref<2x1x128xf32, #tpu.memory_space<vmem>>, %arg8: memref<2x1x128xf32, #tpu.memory_space<vmem>>, %arg9: memref<2x1x128xf32, #tpu.memory_space<vmem>>, %arg10: memref<2x128x256xbf16, #tpu.memory_space<vmem>>, %arg11: memref<2x1x256xf32, #tpu.memory_space<vmem>>, %arg12: memref<2x256x128xbf16, #tpu.memory_space<vmem>>, %arg13: memref<2x1x128xf32, #tpu.memory_space<vmem>>, %arg14: memref<2x1x128xf32, #tpu.memory_space<vmem>>, %arg15: memref<2x1x128xf32, #tpu.memory_space<vmem>>, %arg16: memref<128x16xbf16, #tpu.memory_space<vmem>>, %arg17: memref<1x16xf32, #tpu.memory_space<vmem>>, %arg18: memref<32x16xf32, #tpu.memory_space<vmem>>) attributes {dimension_semantics = [#tpu.dimension_semantics<parallel>], iteration_bounds = array<i64: 1>, scalar_prefetch = 0 : i64, scratch_operands = 0 : i64, tpu.core_type = #tpu.core_type<tc>, window_params = [{transform_indices = @transform_0, window_bounds = array<i64: 32, 16>}, {pipeline_mode = #tpu.pipeline_mode<synchronous>, transform_indices = @transform_1, window_bounds = array<i64: 16, 128>}, {pipeline_mode = #tpu.pipeline_mode<synchronous>, transform_indices = @transform_2, window_bounds = array<i64: 32, 128>}, {pipeline_mode = #tpu.pipeline_mode<synchronous>, transform_indices = @transform_3, window_bounds = array<i64: 2, 128, 384>}, {pipeline_mode = #tpu.pipeline_mode<synchronous>, transform_indices = @transform_4, window_bounds = array<i64: 2, 1, 384>}, {pipeline_mode = #tpu.pipeline_mode<synchronous>, transform_indices = @transform_5, window_bounds = array<i64: 2, 128, 128>}, {pipeline_mode = #tpu.pipeline_mode<synchronous>, transform_indices = @transform_6, window_bounds = array<i64: 2, 1, 128>}, {pipeline_mode = #tpu.pipeline_mode<synchronous>, transform_indices = @transform_7, window_bounds = array<i64: 2, 1, 128>}, {pipeline_mode = #tpu.pipeline_mode<synchronous>, transform_indices = @transform_8, window_bounds = array<i64: 2, 1, 128>}, {pipeline_mode = #tpu.pipeline_mode<synchronous>, transform_indices = @transform_9, window_bounds = array<i64: 2, 128, 256>}, {pipeline_mode = #tpu.pipeline_mode<synchronous>, transform_indices = @transform_10, window_bounds = array<i64: 2, 1, 256>}, {pipeline_mode = #tpu.pipeline_mode<synchronous>, transform_indices = @transform_11, window_bounds = array<i64: 2, 256, 128>}, {pipeline_mode = #tpu.pipeline_mode<synchronous>, transform_indices = @transform_12, window_bounds = array<i64: 2, 1, 128>}, {pipeline_mode = #tpu.pipeline_mode<synchronous>, transform_indices = @transform_13, window_bounds = array<i64: 2, 1, 128>}, {pipeline_mode = #tpu.pipeline_mode<synchronous>, transform_indices = @transform_14, window_bounds = array<i64: 2, 1, 128>}, {pipeline_mode = #tpu.pipeline_mode<synchronous>, transform_indices = @transform_15, window_bounds = array<i64: 128, 16>}, {pipeline_mode = #tpu.pipeline_mode<synchronous>, transform_indices = @transform_16, window_bounds = array<i64: 1, 16>}, {transform_indices = @transform_17, window_bounds = array<i64: 32, 16>}]} {
    %c0 = arith.constant 0 : index
    %c0_0 = arith.constant 0 : index
    %0 = vector.load %arg1[%c0, %c0_0] : memref<32x16xbf16, #tpu.memory_space<vmem>>, vector<32x16xbf16>
    %c0_1 = arith.constant 0 : index
    %c0_2 = arith.constant 0 : index
    %1 = vector.load %arg2[%c0_1, %c0_2] : memref<16x128xbf16, #tpu.memory_space<vmem>>, vector<16x128xbf16>
    %cst = arith.constant dense<0.000000e+00> : vector<32x128xf32>
    %2 = tpu.matmul %0, %1, %cst {dimension_numbers = #tpu.dot_dimension_numbers<[1], [0], [0], [1], [0, 0, 1, 1], [], []>} : vector<32x16xbf16>, vector<16x128xbf16>, vector<32x128xf32> -> vector<32x128xf32>
    %c0_3 = arith.constant 0 : index
    %c0_4 = arith.constant 0 : index
    %3 = vector.load %arg3[%c0_3, %c0_4] : memref<32x128xf32, #tpu.memory_space<vmem>>, vector<32x128xf32>
    %4 = arith.addf %2, %3 : vector<32x128xf32>
    %5 = arith.truncf %4 : vector<32x128xf32> to vector<32x128xbf16>
    %c0_5 = arith.constant 0 : index
    %c0_6 = arith.constant 0 : index
    %c0_7 = arith.constant 0 : index
    %6 = vector.load %arg4[%c0_5, %c0_6, %c0_7] : memref<2x128x384xbf16, #tpu.memory_space<vmem>>, vector<1x128x384xbf16>
    %7 = vector.shape_cast %6 : vector<1x128x384xbf16> to vector<128x384xbf16>
    %cst_8 = arith.constant dense<0.000000e+00> : vector<32x384xf32>
    %8 = tpu.matmul %5, %7, %cst_8 {dimension_numbers = #tpu.dot_dimension_numbers<[1], [0], [0], [1], [0, 0, 1, 1], [], []>} : vector<32x128xbf16>, vector<128x384xbf16>, vector<32x384xf32> -> vector<32x384xf32>
    %c0_9 = arith.constant 0 : index
    %c0_10 = arith.constant 0 : index
    %c0_11 = arith.constant 0 : index
    %9 = vector.load %arg5[%c0_9, %c0_10, %c0_11] : memref<2x1x384xf32, #tpu.memory_space<vmem>>, vector<1x1x384xf32>
    %10 = vector.shape_cast %9 : vector<1x1x384xf32> to vector<1x384xf32>
    %11 = vector.broadcast %10 : vector<1x384xf32> to vector<32x384xf32>
    %12 = arith.addf %8, %11 : vector<32x384xf32>
    %13 = vector.extract_strided_slice %12 {offsets = [0, 0], sizes = [32, 32], strides = [1, 1]} : vector<32x384xf32> to vector<32x32xf32>
    %14 = vector.extract_strided_slice %12 {offsets = [0, 128], sizes = [32, 32], strides = [1, 1]} : vector<32x384xf32> to vector<32x32xf32>
    %15 = vector.extract_strided_slice %12 {offsets = [0, 256], sizes = [32, 32], strides = [1, 1]} : vector<32x384xf32> to vector<32x32xf32>
    %16 = vector.shape_cast %13 : vector<32x32xf32> to vector<2x16x32xf32>
    %17 = arith.truncf %16 : vector<2x16x32xf32> to vector<2x16x32xbf16>
    %18 = vector.shape_cast %14 : vector<32x32xf32> to vector<2x16x32xf32>
    %19 = arith.truncf %18 : vector<2x16x32xf32> to vector<2x16x32xbf16>
    %20 = vector.shape_cast %15 : vector<32x32xf32> to vector<2x16x32xf32>
    %21 = arith.truncf %20 : vector<2x16x32xf32> to vector<2x16x32xbf16>
    "tpu.trace_start"() <{level = 10 : i32, message = "bqd,bkd->bqk"}> : () -> ()
    %cst_12 = arith.constant dense<0.000000e+00> : vector<2x16x16xf32>
    %22 = tpu.matmul %17, %19, %cst_12 {dimension_numbers = #tpu.dot_dimension_numbers<[2], [2], [1], [1], [0, 0, 0, 1, 1, 1], [0], [0]>} : vector<2x16x32xbf16>, vector<2x16x32xbf16>, vector<2x16x16xf32> -> vector<2x16x16xf32>
    "tpu.trace_stop"() : () -> ()
    %cst_13 = arith.constant 0.176776692 : f32
    %23 = vector.broadcast %cst_13 : f32 to vector<2x16x16xf32>
    %24 = arith.mulf %22, %23 : vector<2x16x16xf32>
    %cst_14 = arith.constant dense<0xFF800000> : vector<2x16xf32>
    %25 = vector.multi_reduction <maximumf>, %24, %cst_14 [2] : vector<2x16x16xf32> to vector<2x16xf32>
    %26 = vector.shape_cast %25 : vector<2x16xf32> to vector<2x16x1xf32>
    %27 = vector.broadcast %26 : vector<2x16x1xf32> to vector<2x16x16xf32>
    %28 = arith.subf %24, %27 : vector<2x16x16xf32>
    %29 = math.exp %28 : vector<2x16x16xf32>
    %cst_15 = arith.constant dense<0.000000e+00> : vector<2x16xf32>
    %30 = vector.multi_reduction <add>, %29, %cst_15 [2] : vector<2x16x16xf32> to vector<2x16xf32>
    %31 = vector.shape_cast %30 : vector<2x16xf32> to vector<2x16x1xf32>
    %32 = tpu.reciprocal %31 {approx = true} : vector<2x16x1xf32> -> vector<2x16x1xf32>
    %33 = vector.broadcast %32 : vector<2x16x1xf32> to vector<2x16x16xf32>
    %34 = arith.mulf %29, %33 : vector<2x16x16xf32>
    %35 = arith.truncf %34 : vector<2x16x16xf32> to vector<2x16x16xbf16>
    "tpu.trace_start"() <{level = 10 : i32, message = "bqk,bkd->bqd"}> : () -> ()
    %cst_16 = arith.constant dense<0.000000e+00> : vector<2x16x32xf32>
    %36 = tpu.matmul %35, %21, %cst_16 {dimension_numbers = #tpu.dot_dimension_numbers<[2], [1], [1], [2], [0, 0, 0, 1, 1, 2], [0], [0]>} : vector<2x16x16xbf16>, vector<2x16x32xbf16>, vector<2x16x32xf32> -> vector<2x16x32xf32>
    "tpu.trace_stop"() : () -> ()
    %37 = vector.shape_cast %36 : vector<2x16x32xf32> to vector<32x32xf32>
    %38 = vector.extract_strided_slice %12 {offsets = [0, 32], sizes = [32, 32], strides = [1, 1]} : vector<32x384xf32> to vector<32x32xf32>
    %39 = vector.extract_strided_slice %12 {offsets = [0, 160], sizes = [32, 32], strides = [1, 1]} : vector<32x384xf32> to vector<32x32xf32>
    %40 = vector.extract_strided_slice %12 {offsets = [0, 288], sizes = [32, 32], strides = [1, 1]} : vector<32x384xf32> to vector<32x32xf32>
    %41 = vector.shape_cast %38 : vector<32x32xf32> to vector<2x16x32xf32>
    %42 = arith.truncf %41 : vector<2x16x32xf32> to vector<2x16x32xbf16>
    %43 = vector.shape_cast %39 : vector<32x32xf32> to vector<2x16x32xf32>
    %44 = arith.truncf %43 : vector<2x16x32xf32> to vector<2x16x32xbf16>
    %45 = vector.shape_cast %40 : vector<32x32xf32> to vector<2x16x32xf32>
    %46 = arith.truncf %45 : vector<2x16x32xf32> to vector<2x16x32xbf16>
    "tpu.trace_start"() <{level = 10 : i32, message = "bqd,bkd->bqk"}> : () -> ()
    %cst_17 = arith.constant dense<0.000000e+00> : vector<2x16x16xf32>
    %47 = tpu.matmul %42, %44, %cst_17 {dimension_numbers = #tpu.dot_dimension_numbers<[2], [2], [1], [1], [0, 0, 0, 1, 1, 1], [0], [0]>} : vector<2x16x32xbf16>, vector<2x16x32xbf16>, vector<2x16x16xf32> -> vector<2x16x16xf32>
    "tpu.trace_stop"() : () -> ()
    %cst_18 = arith.constant 0.176776692 : f32
    %48 = vector.broadcast %cst_18 : f32 to vector<2x16x16xf32>
    %49 = arith.mulf %47, %48 : vector<2x16x16xf32>
    %cst_19 = arith.constant dense<0xFF800000> : vector<2x16xf32>
    %50 = vector.multi_reduction <maximumf>, %49, %cst_19 [2] : vector<2x16x16xf32> to vector<2x16xf32>
    %51 = vector.shape_cast %50 : vector<2x16xf32> to vector<2x16x1xf32>
    %52 = vector.broadcast %51 : vector<2x16x1xf32> to vector<2x16x16xf32>
    %53 = arith.subf %49, %52 : vector<2x16x16xf32>
    %54 = math.exp %53 : vector<2x16x16xf32>
    %cst_20 = arith.constant dense<0.000000e+00> : vector<2x16xf32>
    %55 = vector.multi_reduction <add>, %54, %cst_20 [2] : vector<2x16x16xf32> to vector<2x16xf32>
    %56 = vector.shape_cast %55 : vector<2x16xf32> to vector<2x16x1xf32>
    %57 = tpu.reciprocal %56 {approx = true} : vector<2x16x1xf32> -> vector<2x16x1xf32>
    %58 = vector.broadcast %57 : vector<2x16x1xf32> to vector<2x16x16xf32>
    %59 = arith.mulf %54, %58 : vector<2x16x16xf32>
    %60 = arith.truncf %59 : vector<2x16x16xf32> to vector<2x16x16xbf16>
    "tpu.trace_start"() <{level = 10 : i32, message = "bqk,bkd->bqd"}> : () -> ()
    %cst_21 = arith.constant dense<0.000000e+00> : vector<2x16x32xf32>
    %61 = tpu.matmul %60, %46, %cst_21 {dimension_numbers = #tpu.dot_dimension_numbers<[2], [1], [1], [2], [0, 0, 0, 1, 1, 2], [0], [0]>} : vector<2x16x16xbf16>, vector<2x16x32xbf16>, vector<2x16x32xf32> -> vector<2x16x32xf32>
    "tpu.trace_stop"() : () -> ()
    %62 = vector.shape_cast %61 : vector<2x16x32xf32> to vector<32x32xf32>
    %63 = vector.extract_strided_slice %12 {offsets = [0, 64], sizes = [32, 32], strides = [1, 1]} : vector<32x384xf32> to vector<32x32xf32>
    %64 = vector.extract_strided_slice %12 {offsets = [0, 192], sizes = [32, 32], strides = [1, 1]} : vector<32x384xf32> to vector<32x32xf32>
    %65 = vector.extract_strided_slice %12 {offsets = [0, 320], sizes = [32, 32], strides = [1, 1]} : vector<32x384xf32> to vector<32x32xf32>
    %66 = vector.shape_cast %63 : vector<32x32xf32> to vector<2x16x32xf32>
    %67 = arith.truncf %66 : vector<2x16x32xf32> to vector<2x16x32xbf16>
    %68 = vector.shape_cast %64 : vector<32x32xf32> to vector<2x16x32xf32>
    %69 = arith.truncf %68 : vector<2x16x32xf32> to vector<2x16x32xbf16>
    %70 = vector.shape_cast %65 : vector<32x32xf32> to vector<2x16x32xf32>
    %71 = arith.truncf %70 : vector<2x16x32xf32> to vector<2x16x32xbf16>
    "tpu.trace_start"() <{level = 10 : i32, message = "bqd,bkd->bqk"}> : () -> ()
    %cst_22 = arith.constant dense<0.000000e+00> : vector<2x16x16xf32>
    %72 = tpu.matmul %67, %69, %cst_22 {dimension_numbers = #tpu.dot_dimension_numbers<[2], [2], [1], [1], [0, 0, 0, 1, 1, 1], [0], [0]>} : vector<2x16x32xbf16>, vector<2x16x32xbf16>, vector<2x16x16xf32> -> vector<2x16x16xf32>
    "tpu.trace_stop"() : () -> ()
    %cst_23 = arith.constant 0.176776692 : f32
    %73 = vector.broadcast %cst_23 : f32 to vector<2x16x16xf32>
    %74 = arith.mulf %72, %73 : vector<2x16x16xf32>
    %cst_24 = arith.constant dense<0xFF800000> : vector<2x16xf32>
    %75 = vector.multi_reduction <maximumf>, %74, %cst_24 [2] : vector<2x16x16xf32> to vector<2x16xf32>
    %76 = vector.shape_cast %75 : vector<2x16xf32> to vector<2x16x1xf32>
    %77 = vector.broadcast %76 : vector<2x16x1xf32> to vector<2x16x16xf32>
    %78 = arith.subf %74, %77 : vector<2x16x16xf32>
    %79 = math.exp %78 : vector<2x16x16xf32>
    %cst_25 = arith.constant dense<0.000000e+00> : vector<2x16xf32>
    %80 = vector.multi_reduction <add>, %79, %cst_25 [2] : vector<2x16x16xf32> to vector<2x16xf32>
    %81 = vector.shape_cast %80 : vector<2x16xf32> to vector<2x16x1xf32>
    %82 = tpu.reciprocal %81 {approx = true} : vector<2x16x1xf32> -> vector<2x16x1xf32>
    %83 = vector.broadcast %82 : vector<2x16x1xf32> to vector<2x16x16xf32>
    %84 = arith.mulf %79, %83 : vector<2x16x16xf32>
    %85 = arith.truncf %84 : vector<2x16x16xf32> to vector<2x16x16xbf16>
    "tpu.trace_start"() <{level = 10 : i32, message = "bqk,bkd->bqd"}> : () -> ()
    %cst_26 = arith.constant dense<0.000000e+00> : vector<2x16x32xf32>
    %86 = tpu.matmul %85, %71, %cst_26 {dimension_numbers = #tpu.dot_dimension_numbers<[2], [1], [1], [2], [0, 0, 0, 1, 1, 2], [0], [0]>} : vector<2x16x16xbf16>, vector<2x16x32xbf16>, vector<2x16x32xf32> -> vector<2x16x32xf32>
    "tpu.trace_stop"() : () -> ()
    %87 = vector.shape_cast %86 : vector<2x16x32xf32> to vector<32x32xf32>
    %88 = vector.extract_strided_slice %12 {offsets = [0, 96], sizes = [32, 32], strides = [1, 1]} : vector<32x384xf32> to vector<32x32xf32>
    %89 = vector.extract_strided_slice %12 {offsets = [0, 224], sizes = [32, 32], strides = [1, 1]} : vector<32x384xf32> to vector<32x32xf32>
    %90 = vector.extract_strided_slice %12 {offsets = [0, 352], sizes = [32, 32], strides = [1, 1]} : vector<32x384xf32> to vector<32x32xf32>
    %91 = vector.shape_cast %88 : vector<32x32xf32> to vector<2x16x32xf32>
    %92 = arith.truncf %91 : vector<2x16x32xf32> to vector<2x16x32xbf16>
    %93 = vector.shape_cast %89 : vector<32x32xf32> to vector<2x16x32xf32>
    %94 = arith.truncf %93 : vector<2x16x32xf32> to vector<2x16x32xbf16>
    %95 = vector.shape_cast %90 : vector<32x32xf32> to vector<2x16x32xf32>
    %96 = arith.truncf %95 : vector<2x16x32xf32> to vector<2x16x32xbf16>
    "tpu.trace_start"() <{level = 10 : i32, message = "bqd,bkd->bqk"}> : () -> ()
    %cst_27 = arith.constant dense<0.000000e+00> : vector<2x16x16xf32>
    %97 = tpu.matmul %92, %94, %cst_27 {dimension_numbers = #tpu.dot_dimension_numbers<[2], [2], [1], [1], [0, 0, 0, 1, 1, 1], [0], [0]>} : vector<2x16x32xbf16>, vector<2x16x32xbf16>, vector<2x16x16xf32> -> vector<2x16x16xf32>
    "tpu.trace_stop"() : () -> ()
    %cst_28 = arith.constant 0.176776692 : f32
    %98 = vector.broadcast %cst_28 : f32 to vector<2x16x16xf32>
    %99 = arith.mulf %97, %98 : vector<2x16x16xf32>
    %cst_29 = arith.constant dense<0xFF800000> : vector<2x16xf32>
    %100 = vector.multi_reduction <maximumf>, %99, %cst_29 [2] : vector<2x16x16xf32> to vector<2x16xf32>
    %101 = vector.shape_cast %100 : vector<2x16xf32> to vector<2x16x1xf32>
    %102 = vector.broadcast %101 : vector<2x16x1xf32> to vector<2x16x16xf32>
    %103 = arith.subf %99, %102 : vector<2x16x16xf32>
    %104 = math.exp %103 : vector<2x16x16xf32>
    %cst_30 = arith.constant dense<0.000000e+00> : vector<2x16xf32>
    %105 = vector.multi_reduction <add>, %104, %cst_30 [2] : vector<2x16x16xf32> to vector<2x16xf32>
    %106 = vector.shape_cast %105 : vector<2x16xf32> to vector<2x16x1xf32>
    %107 = tpu.reciprocal %106 {approx = true} : vector<2x16x1xf32> -> vector<2x16x1xf32>
    %108 = vector.broadcast %107 : vector<2x16x1xf32> to vector<2x16x16xf32>
    %109 = arith.mulf %104, %108 : vector<2x16x16xf32>
    %110 = arith.truncf %109 : vector<2x16x16xf32> to vector<2x16x16xbf16>
    "tpu.trace_start"() <{level = 10 : i32, message = "bqk,bkd->bqd"}> : () -> ()
    %cst_31 = arith.constant dense<0.000000e+00> : vector<2x16x32xf32>
    %111 = tpu.matmul %110, %96, %cst_31 {dimension_numbers = #tpu.dot_dimension_numbers<[2], [1], [1], [2], [0, 0, 0, 1, 1, 2], [0], [0]>} : vector<2x16x16xbf16>, vector<2x16x32xbf16>, vector<2x16x32xf32> -> vector<2x16x32xf32>
    "tpu.trace_stop"() : () -> ()
    %112 = vector.shape_cast %111 : vector<2x16x32xf32> to vector<32x32xf32>
    %113 = tpu.concatenate %37, %62, %87, %112 in 1 : vector<32x32xf32>, vector<32x32xf32>, vector<32x32xf32>, vector<32x32xf32> -> vector<32x128xf32>
    %114 = arith.truncf %113 : vector<32x128xf32> to vector<32x128xbf16>
    %c0_32 = arith.constant 0 : index
    %c0_33 = arith.constant 0 : index
    %c0_34 = arith.constant 0 : index
    %115 = vector.load %arg6[%c0_32, %c0_33, %c0_34] : memref<2x128x128xbf16, #tpu.memory_space<vmem>>, vector<1x128x128xbf16>
    %116 = vector.shape_cast %115 : vector<1x128x128xbf16> to vector<128x128xbf16>
    %cst_35 = arith.constant dense<0.000000e+00> : vector<32x128xf32>
    %117 = tpu.matmul %114, %116, %cst_35 {dimension_numbers = #tpu.dot_dimension_numbers<[1], [0], [0], [1], [0, 0, 1, 1], [], []>} : vector<32x128xbf16>, vector<128x128xbf16>, vector<32x128xf32> -> vector<32x128xf32>
    %c0_36 = arith.constant 0 : index
    %c0_37 = arith.constant 0 : index
    %c0_38 = arith.constant 0 : index
    %118 = vector.load %arg7[%c0_36, %c0_37, %c0_38] : memref<2x1x128xf32, #tpu.memory_space<vmem>>, vector<1x1x128xf32>
    %119 = vector.shape_cast %118 : vector<1x1x128xf32> to vector<1x128xf32>
    %120 = vector.broadcast %119 : vector<1x128xf32> to vector<32x128xf32>
    %121 = arith.addf %117, %120 : vector<32x128xf32>
    %122 = arith.addf %4, %121 : vector<32x128xf32>
    %c0_39 = arith.constant 0 : index
    %c0_40 = arith.constant 0 : index
    %c0_41 = arith.constant 0 : index
    %123 = vector.load %arg8[%c0_39, %c0_40, %c0_41] : memref<2x1x128xf32, #tpu.memory_space<vmem>>, vector<1x1x128xf32>
    %124 = vector.shape_cast %123 : vector<1x1x128xf32> to vector<1x128xf32>
    %c0_42 = arith.constant 0 : index
    %c0_43 = arith.constant 0 : index
    %c0_44 = arith.constant 0 : index
    %125 = vector.load %arg9[%c0_42, %c0_43, %c0_44] : memref<2x1x128xf32, #tpu.memory_space<vmem>>, vector<1x1x128xf32>
    %126 = vector.shape_cast %125 : vector<1x1x128xf32> to vector<1x128xf32>
    %cst_45 = arith.constant dense<0.000000e+00> : vector<32xf32>
    %127 = vector.multi_reduction <add>, %122, %cst_45 [1] : vector<32x128xf32> to vector<32xf32>
    %128 = vector.shape_cast %127 : vector<32xf32> to vector<32x1xf32>
    %cst_46 = arith.constant 1.280000e+02 : f32
    %129 = vector.broadcast %cst_46 : f32 to vector<32x1xf32>
    %130 = arith.divf %128, %129 : vector<32x1xf32>
    %131 = vector.broadcast %130 : vector<32x1xf32> to vector<32x128xf32>
    %132 = arith.subf %122, %131 : vector<32x128xf32>
    %133 = arith.mulf %132, %132 : vector<32x128xf32>
    %cst_47 = arith.constant dense<0.000000e+00> : vector<32xf32>
    %134 = vector.multi_reduction <add>, %133, %cst_47 [1] : vector<32x128xf32> to vector<32xf32>
    %135 = vector.shape_cast %134 : vector<32xf32> to vector<32x1xf32>
    %cst_48 = arith.constant 1.280000e+02 : f32
    %136 = vector.broadcast %cst_48 : f32 to vector<32x1xf32>
    %137 = arith.divf %135, %136 : vector<32x1xf32>
    %cst_49 = arith.constant 9.99999974E-6 : f32
    %138 = vector.broadcast %cst_49 : f32 to vector<32x1xf32>
    %139 = arith.addf %137, %138 : vector<32x1xf32>
    %140 = math.rsqrt %139 : vector<32x1xf32>
    %141 = vector.broadcast %140 : vector<32x1xf32> to vector<32x128xf32>
    %142 = arith.mulf %132, %141 : vector<32x128xf32>
    %143 = vector.broadcast %124 : vector<1x128xf32> to vector<32x128xf32>
    %144 = arith.mulf %142, %143 : vector<32x128xf32>
    %145 = vector.broadcast %126 : vector<1x128xf32> to vector<32x128xf32>
    %146 = arith.addf %144, %145 : vector<32x128xf32>
    %147 = arith.truncf %146 : vector<32x128xf32> to vector<32x128xbf16>
    %c0_50 = arith.constant 0 : index
    %c0_51 = arith.constant 0 : index
    %c0_52 = arith.constant 0 : index
    %148 = vector.load %arg10[%c0_50, %c0_51, %c0_52] : memref<2x128x256xbf16, #tpu.memory_space<vmem>>, vector<1x128x256xbf16>
    %149 = vector.shape_cast %148 : vector<1x128x256xbf16> to vector<128x256xbf16>
    %cst_53 = arith.constant dense<0.000000e+00> : vector<32x256xf32>
    %150 = tpu.matmul %147, %149, %cst_53 {dimension_numbers = #tpu.dot_dimension_numbers<[1], [0], [0], [1], [0, 0, 1, 1], [], []>} : vector<32x128xbf16>, vector<128x256xbf16>, vector<32x256xf32> -> vector<32x256xf32>
    %c0_54 = arith.constant 0 : index
    %c0_55 = arith.constant 0 : index
    %c0_56 = arith.constant 0 : index
    %151 = vector.load %arg11[%c0_54, %c0_55, %c0_56] : memref<2x1x256xf32, #tpu.memory_space<vmem>>, vector<1x1x256xf32>
    %152 = vector.shape_cast %151 : vector<1x1x256xf32> to vector<1x256xf32>
    %153 = vector.broadcast %152 : vector<1x256xf32> to vector<32x256xf32>
    %154 = arith.addf %150, %153 : vector<32x256xf32>
    %cst_57 = arith.constant 0.000000e+00 : f32
    %155 = vector.broadcast %cst_57 : f32 to vector<32x256xf32>
    %156 = arith.maximumf %154, %155 : vector<32x256xf32>
    %157 = arith.truncf %156 : vector<32x256xf32> to vector<32x256xbf16>
    %c0_58 = arith.constant 0 : index
    %c0_59 = arith.constant 0 : index
    %c0_60 = arith.constant 0 : index
    %158 = vector.load %arg12[%c0_58, %c0_59, %c0_60] : memref<2x256x128xbf16, #tpu.memory_space<vmem>>, vector<1x256x128xbf16>
    %159 = vector.shape_cast %158 : vector<1x256x128xbf16> to vector<256x128xbf16>
    %cst_61 = arith.constant dense<0.000000e+00> : vector<32x128xf32>
    %160 = tpu.matmul %157, %159, %cst_61 {dimension_numbers = #tpu.dot_dimension_numbers<[1], [0], [0], [1], [0, 0, 1, 1], [], []>} : vector<32x256xbf16>, vector<256x128xbf16>, vector<32x128xf32> -> vector<32x128xf32>
    %c0_62 = arith.constant 0 : index
    %c0_63 = arith.constant 0 : index
    %c0_64 = arith.constant 0 : index
    %161 = vector.load %arg13[%c0_62, %c0_63, %c0_64] : memref<2x1x128xf32, #tpu.memory_space<vmem>>, vector<1x1x128xf32>
    %162 = vector.shape_cast %161 : vector<1x1x128xf32> to vector<1x128xf32>
    %163 = vector.broadcast %162 : vector<1x128xf32> to vector<32x128xf32>
    %164 = arith.addf %160, %163 : vector<32x128xf32>
    %165 = arith.addf %146, %164 : vector<32x128xf32>
    %c0_65 = arith.constant 0 : index
    %c0_66 = arith.constant 0 : index
    %c0_67 = arith.constant 0 : index
    %166 = vector.load %arg14[%c0_65, %c0_66, %c0_67] : memref<2x1x128xf32, #tpu.memory_space<vmem>>, vector<1x1x128xf32>
    %167 = vector.shape_cast %166 : vector<1x1x128xf32> to vector<1x128xf32>
    %c0_68 = arith.constant 0 : index
    %c0_69 = arith.constant 0 : index
    %c0_70 = arith.constant 0 : index
    %168 = vector.load %arg15[%c0_68, %c0_69, %c0_70] : memref<2x1x128xf32, #tpu.memory_space<vmem>>, vector<1x1x128xf32>
    %169 = vector.shape_cast %168 : vector<1x1x128xf32> to vector<1x128xf32>
    %cst_71 = arith.constant dense<0.000000e+00> : vector<32xf32>
    %170 = vector.multi_reduction <add>, %165, %cst_71 [1] : vector<32x128xf32> to vector<32xf32>
    %171 = vector.shape_cast %170 : vector<32xf32> to vector<32x1xf32>
    %cst_72 = arith.constant 1.280000e+02 : f32
    %172 = vector.broadcast %cst_72 : f32 to vector<32x1xf32>
    %173 = arith.divf %171, %172 : vector<32x1xf32>
    %174 = vector.broadcast %173 : vector<32x1xf32> to vector<32x128xf32>
    %175 = arith.subf %165, %174 : vector<32x128xf32>
    %176 = arith.mulf %175, %175 : vector<32x128xf32>
    %cst_73 = arith.constant dense<0.000000e+00> : vector<32xf32>
    %177 = vector.multi_reduction <add>, %176, %cst_73 [1] : vector<32x128xf32> to vector<32xf32>
    %178 = vector.shape_cast %177 : vector<32xf32> to vector<32x1xf32>
    %cst_74 = arith.constant 1.280000e+02 : f32
    %179 = vector.broadcast %cst_74 : f32 to vector<32x1xf32>
    %180 = arith.divf %178, %179 : vector<32x1xf32>
    %cst_75 = arith.constant 9.99999974E-6 : f32
    %181 = vector.broadcast %cst_75 : f32 to vector<32x1xf32>
    %182 = arith.addf %180, %181 : vector<32x1xf32>
    %183 = math.rsqrt %182 : vector<32x1xf32>
    %184 = vector.broadcast %183 : vector<32x1xf32> to vector<32x128xf32>
    %185 = arith.mulf %175, %184 : vector<32x128xf32>
    %186 = vector.broadcast %167 : vector<1x128xf32> to vector<32x128xf32>
    %187 = arith.mulf %185, %186 : vector<32x128xf32>
    %188 = vector.broadcast %169 : vector<1x128xf32> to vector<32x128xf32>
    %189 = arith.addf %187, %188 : vector<32x128xf32>
    %190 = arith.truncf %189 : vector<32x128xf32> to vector<32x128xbf16>
    %c1 = arith.constant 1 : index
    %c0_76 = arith.constant 0 : index
    %c0_77 = arith.constant 0 : index
    %191 = vector.load %arg4[%c1, %c0_76, %c0_77] : memref<2x128x384xbf16, #tpu.memory_space<vmem>>, vector<1x128x384xbf16>
    %192 = vector.shape_cast %191 : vector<1x128x384xbf16> to vector<128x384xbf16>
    %cst_78 = arith.constant dense<0.000000e+00> : vector<32x384xf32>
    %193 = tpu.matmul %190, %192, %cst_78 {dimension_numbers = #tpu.dot_dimension_numbers<[1], [0], [0], [1], [0, 0, 1, 1], [], []>} : vector<32x128xbf16>, vector<128x384xbf16>, vector<32x384xf32> -> vector<32x384xf32>
    %c1_79 = arith.constant 1 : index
    %c0_80 = arith.constant 0 : index
    %c0_81 = arith.constant 0 : index
    %194 = vector.load %arg5[%c1_79, %c0_80, %c0_81] : memref<2x1x384xf32, #tpu.memory_space<vmem>>, vector<1x1x384xf32>
    %195 = vector.shape_cast %194 : vector<1x1x384xf32> to vector<1x384xf32>
    %196 = vector.broadcast %195 : vector<1x384xf32> to vector<32x384xf32>
    %197 = arith.addf %193, %196 : vector<32x384xf32>
    %198 = vector.extract_strided_slice %197 {offsets = [0, 0], sizes = [32, 32], strides = [1, 1]} : vector<32x384xf32> to vector<32x32xf32>
    %199 = vector.extract_strided_slice %197 {offsets = [0, 128], sizes = [32, 32], strides = [1, 1]} : vector<32x384xf32> to vector<32x32xf32>
    %200 = vector.extract_strided_slice %197 {offsets = [0, 256], sizes = [32, 32], strides = [1, 1]} : vector<32x384xf32> to vector<32x32xf32>
    %201 = vector.shape_cast %198 : vector<32x32xf32> to vector<2x16x32xf32>
    %202 = arith.truncf %201 : vector<2x16x32xf32> to vector<2x16x32xbf16>
    %203 = vector.shape_cast %199 : vector<32x32xf32> to vector<2x16x32xf32>
    %204 = arith.truncf %203 : vector<2x16x32xf32> to vector<2x16x32xbf16>
    %205 = vector.shape_cast %200 : vector<32x32xf32> to vector<2x16x32xf32>
    %206 = arith.truncf %205 : vector<2x16x32xf32> to vector<2x16x32xbf16>
    "tpu.trace_start"() <{level = 10 : i32, message = "bqd,bkd->bqk"}> : () -> ()
    %cst_82 = arith.constant dense<0.000000e+00> : vector<2x16x16xf32>
    %207 = tpu.matmul %202, %204, %cst_82 {dimension_numbers = #tpu.dot_dimension_numbers<[2], [2], [1], [1], [0, 0, 0, 1, 1, 1], [0], [0]>} : vector<2x16x32xbf16>, vector<2x16x32xbf16>, vector<2x16x16xf32> -> vector<2x16x16xf32>
    "tpu.trace_stop"() : () -> ()
    %cst_83 = arith.constant 0.176776692 : f32
    %208 = vector.broadcast %cst_83 : f32 to vector<2x16x16xf32>
    %209 = arith.mulf %207, %208 : vector<2x16x16xf32>
    %cst_84 = arith.constant dense<0xFF800000> : vector<2x16xf32>
    %210 = vector.multi_reduction <maximumf>, %209, %cst_84 [2] : vector<2x16x16xf32> to vector<2x16xf32>
    %211 = vector.shape_cast %210 : vector<2x16xf32> to vector<2x16x1xf32>
    %212 = vector.broadcast %211 : vector<2x16x1xf32> to vector<2x16x16xf32>
    %213 = arith.subf %209, %212 : vector<2x16x16xf32>
    %214 = math.exp %213 : vector<2x16x16xf32>
    %cst_85 = arith.constant dense<0.000000e+00> : vector<2x16xf32>
    %215 = vector.multi_reduction <add>, %214, %cst_85 [2] : vector<2x16x16xf32> to vector<2x16xf32>
    %216 = vector.shape_cast %215 : vector<2x16xf32> to vector<2x16x1xf32>
    %217 = tpu.reciprocal %216 {approx = true} : vector<2x16x1xf32> -> vector<2x16x1xf32>
    %218 = vector.broadcast %217 : vector<2x16x1xf32> to vector<2x16x16xf32>
    %219 = arith.mulf %214, %218 : vector<2x16x16xf32>
    %220 = arith.truncf %219 : vector<2x16x16xf32> to vector<2x16x16xbf16>
    "tpu.trace_start"() <{level = 10 : i32, message = "bqk,bkd->bqd"}> : () -> ()
    %cst_86 = arith.constant dense<0.000000e+00> : vector<2x16x32xf32>
    %221 = tpu.matmul %220, %206, %cst_86 {dimension_numbers = #tpu.dot_dimension_numbers<[2], [1], [1], [2], [0, 0, 0, 1, 1, 2], [0], [0]>} : vector<2x16x16xbf16>, vector<2x16x32xbf16>, vector<2x16x32xf32> -> vector<2x16x32xf32>
    "tpu.trace_stop"() : () -> ()
    %222 = vector.shape_cast %221 : vector<2x16x32xf32> to vector<32x32xf32>
    %223 = vector.extract_strided_slice %197 {offsets = [0, 32], sizes = [32, 32], strides = [1, 1]} : vector<32x384xf32> to vector<32x32xf32>
    %224 = vector.extract_strided_slice %197 {offsets = [0, 160], sizes = [32, 32], strides = [1, 1]} : vector<32x384xf32> to vector<32x32xf32>
    %225 = vector.extract_strided_slice %197 {offsets = [0, 288], sizes = [32, 32], strides = [1, 1]} : vector<32x384xf32> to vector<32x32xf32>
    %226 = vector.shape_cast %223 : vector<32x32xf32> to vector<2x16x32xf32>
    %227 = arith.truncf %226 : vector<2x16x32xf32> to vector<2x16x32xbf16>
    %228 = vector.shape_cast %224 : vector<32x32xf32> to vector<2x16x32xf32>
    %229 = arith.truncf %228 : vector<2x16x32xf32> to vector<2x16x32xbf16>
    %230 = vector.shape_cast %225 : vector<32x32xf32> to vector<2x16x32xf32>
    %231 = arith.truncf %230 : vector<2x16x32xf32> to vector<2x16x32xbf16>
    "tpu.trace_start"() <{level = 10 : i32, message = "bqd,bkd->bqk"}> : () -> ()
    %cst_87 = arith.constant dense<0.000000e+00> : vector<2x16x16xf32>
    %232 = tpu.matmul %227, %229, %cst_87 {dimension_numbers = #tpu.dot_dimension_numbers<[2], [2], [1], [1], [0, 0, 0, 1, 1, 1], [0], [0]>} : vector<2x16x32xbf16>, vector<2x16x32xbf16>, vector<2x16x16xf32> -> vector<2x16x16xf32>
    "tpu.trace_stop"() : () -> ()
    %cst_88 = arith.constant 0.176776692 : f32
    %233 = vector.broadcast %cst_88 : f32 to vector<2x16x16xf32>
    %234 = arith.mulf %232, %233 : vector<2x16x16xf32>
    %cst_89 = arith.constant dense<0xFF800000> : vector<2x16xf32>
    %235 = vector.multi_reduction <maximumf>, %234, %cst_89 [2] : vector<2x16x16xf32> to vector<2x16xf32>
    %236 = vector.shape_cast %235 : vector<2x16xf32> to vector<2x16x1xf32>
    %237 = vector.broadcast %236 : vector<2x16x1xf32> to vector<2x16x16xf32>
    %238 = arith.subf %234, %237 : vector<2x16x16xf32>
    %239 = math.exp %238 : vector<2x16x16xf32>
    %cst_90 = arith.constant dense<0.000000e+00> : vector<2x16xf32>
    %240 = vector.multi_reduction <add>, %239, %cst_90 [2] : vector<2x16x16xf32> to vector<2x16xf32>
    %241 = vector.shape_cast %240 : vector<2x16xf32> to vector<2x16x1xf32>
    %242 = tpu.reciprocal %241 {approx = true} : vector<2x16x1xf32> -> vector<2x16x1xf32>
    %243 = vector.broadcast %242 : vector<2x16x1xf32> to vector<2x16x16xf32>
    %244 = arith.mulf %239, %243 : vector<2x16x16xf32>
    %245 = arith.truncf %244 : vector<2x16x16xf32> to vector<2x16x16xbf16>
    "tpu.trace_start"() <{level = 10 : i32, message = "bqk,bkd->bqd"}> : () -> ()
    %cst_91 = arith.constant dense<0.000000e+00> : vector<2x16x32xf32>
    %246 = tpu.matmul %245, %231, %cst_91 {dimension_numbers = #tpu.dot_dimension_numbers<[2], [1], [1], [2], [0, 0, 0, 1, 1, 2], [0], [0]>} : vector<2x16x16xbf16>, vector<2x16x32xbf16>, vector<2x16x32xf32> -> vector<2x16x32xf32>
    "tpu.trace_stop"() : () -> ()
    %247 = vector.shape_cast %246 : vector<2x16x32xf32> to vector<32x32xf32>
    %248 = vector.extract_strided_slice %197 {offsets = [0, 64], sizes = [32, 32], strides = [1, 1]} : vector<32x384xf32> to vector<32x32xf32>
    %249 = vector.extract_strided_slice %197 {offsets = [0, 192], sizes = [32, 32], strides = [1, 1]} : vector<32x384xf32> to vector<32x32xf32>
    %250 = vector.extract_strided_slice %197 {offsets = [0, 320], sizes = [32, 32], strides = [1, 1]} : vector<32x384xf32> to vector<32x32xf32>
    %251 = vector.shape_cast %248 : vector<32x32xf32> to vector<2x16x32xf32>
    %252 = arith.truncf %251 : vector<2x16x32xf32> to vector<2x16x32xbf16>
    %253 = vector.shape_cast %249 : vector<32x32xf32> to vector<2x16x32xf32>
    %254 = arith.truncf %253 : vector<2x16x32xf32> to vector<2x16x32xbf16>
    %255 = vector.shape_cast %250 : vector<32x32xf32> to vector<2x16x32xf32>
    %256 = arith.truncf %255 : vector<2x16x32xf32> to vector<2x16x32xbf16>
    "tpu.trace_start"() <{level = 10 : i32, message = "bqd,bkd->bqk"}> : () -> ()
    %cst_92 = arith.constant dense<0.000000e+00> : vector<2x16x16xf32>
    %257 = tpu.matmul %252, %254, %cst_92 {dimension_numbers = #tpu.dot_dimension_numbers<[2], [2], [1], [1], [0, 0, 0, 1, 1, 1], [0], [0]>} : vector<2x16x32xbf16>, vector<2x16x32xbf16>, vector<2x16x16xf32> -> vector<2x16x16xf32>
    "tpu.trace_stop"() : () -> ()
    %cst_93 = arith.constant 0.176776692 : f32
    %258 = vector.broadcast %cst_93 : f32 to vector<2x16x16xf32>
    %259 = arith.mulf %257, %258 : vector<2x16x16xf32>
    %cst_94 = arith.constant dense<0xFF800000> : vector<2x16xf32>
    %260 = vector.multi_reduction <maximumf>, %259, %cst_94 [2] : vector<2x16x16xf32> to vector<2x16xf32>
    %261 = vector.shape_cast %260 : vector<2x16xf32> to vector<2x16x1xf32>
    %262 = vector.broadcast %261 : vector<2x16x1xf32> to vector<2x16x16xf32>
    %263 = arith.subf %259, %262 : vector<2x16x16xf32>
    %264 = math.exp %263 : vector<2x16x16xf32>
    %cst_95 = arith.constant dense<0.000000e+00> : vector<2x16xf32>
    %265 = vector.multi_reduction <add>, %264, %cst_95 [2] : vector<2x16x16xf32> to vector<2x16xf32>
    %266 = vector.shape_cast %265 : vector<2x16xf32> to vector<2x16x1xf32>
    %267 = tpu.reciprocal %266 {approx = true} : vector<2x16x1xf32> -> vector<2x16x1xf32>
    %268 = vector.broadcast %267 : vector<2x16x1xf32> to vector<2x16x16xf32>
    %269 = arith.mulf %264, %268 : vector<2x16x16xf32>
    %270 = arith.truncf %269 : vector<2x16x16xf32> to vector<2x16x16xbf16>
    "tpu.trace_start"() <{level = 10 : i32, message = "bqk,bkd->bqd"}> : () -> ()
    %cst_96 = arith.constant dense<0.000000e+00> : vector<2x16x32xf32>
    %271 = tpu.matmul %270, %256, %cst_96 {dimension_numbers = #tpu.dot_dimension_numbers<[2], [1], [1], [2], [0, 0, 0, 1, 1, 2], [0], [0]>} : vector<2x16x16xbf16>, vector<2x16x32xbf16>, vector<2x16x32xf32> -> vector<2x16x32xf32>
    "tpu.trace_stop"() : () -> ()
    %272 = vector.shape_cast %271 : vector<2x16x32xf32> to vector<32x32xf32>
    %273 = vector.extract_strided_slice %197 {offsets = [0, 96], sizes = [32, 32], strides = [1, 1]} : vector<32x384xf32> to vector<32x32xf32>
    %274 = vector.extract_strided_slice %197 {offsets = [0, 224], sizes = [32, 32], strides = [1, 1]} : vector<32x384xf32> to vector<32x32xf32>
    %275 = vector.extract_strided_slice %197 {offsets = [0, 352], sizes = [32, 32], strides = [1, 1]} : vector<32x384xf32> to vector<32x32xf32>
    %276 = vector.shape_cast %273 : vector<32x32xf32> to vector<2x16x32xf32>
    %277 = arith.truncf %276 : vector<2x16x32xf32> to vector<2x16x32xbf16>
    %278 = vector.shape_cast %274 : vector<32x32xf32> to vector<2x16x32xf32>
    %279 = arith.truncf %278 : vector<2x16x32xf32> to vector<2x16x32xbf16>
    %280 = vector.shape_cast %275 : vector<32x32xf32> to vector<2x16x32xf32>
    %281 = arith.truncf %280 : vector<2x16x32xf32> to vector<2x16x32xbf16>
    "tpu.trace_start"() <{level = 10 : i32, message = "bqd,bkd->bqk"}> : () -> ()
    %cst_97 = arith.constant dense<0.000000e+00> : vector<2x16x16xf32>
    %282 = tpu.matmul %277, %279, %cst_97 {dimension_numbers = #tpu.dot_dimension_numbers<[2], [2], [1], [1], [0, 0, 0, 1, 1, 1], [0], [0]>} : vector<2x16x32xbf16>, vector<2x16x32xbf16>, vector<2x16x16xf32> -> vector<2x16x16xf32>
    "tpu.trace_stop"() : () -> ()
    %cst_98 = arith.constant 0.176776692 : f32
    %283 = vector.broadcast %cst_98 : f32 to vector<2x16x16xf32>
    %284 = arith.mulf %282, %283 : vector<2x16x16xf32>
    %cst_99 = arith.constant dense<0xFF800000> : vector<2x16xf32>
    %285 = vector.multi_reduction <maximumf>, %284, %cst_99 [2] : vector<2x16x16xf32> to vector<2x16xf32>
    %286 = vector.shape_cast %285 : vector<2x16xf32> to vector<2x16x1xf32>
    %287 = vector.broadcast %286 : vector<2x16x1xf32> to vector<2x16x16xf32>
    %288 = arith.subf %284, %287 : vector<2x16x16xf32>
    %289 = math.exp %288 : vector<2x16x16xf32>
    %cst_100 = arith.constant dense<0.000000e+00> : vector<2x16xf32>
    %290 = vector.multi_reduction <add>, %289, %cst_100 [2] : vector<2x16x16xf32> to vector<2x16xf32>
    %291 = vector.shape_cast %290 : vector<2x16xf32> to vector<2x16x1xf32>
    %292 = tpu.reciprocal %291 {approx = true} : vector<2x16x1xf32> -> vector<2x16x1xf32>
    %293 = vector.broadcast %292 : vector<2x16x1xf32> to vector<2x16x16xf32>
    %294 = arith.mulf %289, %293 : vector<2x16x16xf32>
    %295 = arith.truncf %294 : vector<2x16x16xf32> to vector<2x16x16xbf16>
    "tpu.trace_start"() <{level = 10 : i32, message = "bqk,bkd->bqd"}> : () -> ()
    %cst_101 = arith.constant dense<0.000000e+00> : vector<2x16x32xf32>
    %296 = tpu.matmul %295, %281, %cst_101 {dimension_numbers = #tpu.dot_dimension_numbers<[2], [1], [1], [2], [0, 0, 0, 1, 1, 2], [0], [0]>} : vector<2x16x16xbf16>, vector<2x16x32xbf16>, vector<2x16x32xf32> -> vector<2x16x32xf32>
    "tpu.trace_stop"() : () -> ()
    %297 = vector.shape_cast %296 : vector<2x16x32xf32> to vector<32x32xf32>
    %298 = tpu.concatenate %222, %247, %272, %297 in 1 : vector<32x32xf32>, vector<32x32xf32>, vector<32x32xf32>, vector<32x32xf32> -> vector<32x128xf32>
    %299 = arith.truncf %298 : vector<32x128xf32> to vector<32x128xbf16>
    %c1_102 = arith.constant 1 : index
    %c0_103 = arith.constant 0 : index
    %c0_104 = arith.constant 0 : index
    %300 = vector.load %arg6[%c1_102, %c0_103, %c0_104] : memref<2x128x128xbf16, #tpu.memory_space<vmem>>, vector<1x128x128xbf16>
    %301 = vector.shape_cast %300 : vector<1x128x128xbf16> to vector<128x128xbf16>
    %cst_105 = arith.constant dense<0.000000e+00> : vector<32x128xf32>
    %302 = tpu.matmul %299, %301, %cst_105 {dimension_numbers = #tpu.dot_dimension_numbers<[1], [0], [0], [1], [0, 0, 1, 1], [], []>} : vector<32x128xbf16>, vector<128x128xbf16>, vector<32x128xf32> -> vector<32x128xf32>
    %c1_106 = arith.constant 1 : index
    %c0_107 = arith.constant 0 : index
    %c0_108 = arith.constant 0 : index
    %303 = vector.load %arg7[%c1_106, %c0_107, %c0_108] : memref<2x1x128xf32, #tpu.memory_space<vmem>>, vector<1x1x128xf32>
    %304 = vector.shape_cast %303 : vector<1x1x128xf32> to vector<1x128xf32>
    %305 = vector.broadcast %304 : vector<1x128xf32> to vector<32x128xf32>
    %306 = arith.addf %302, %305 : vector<32x128xf32>
    %307 = arith.addf %189, %306 : vector<32x128xf32>
    %c1_109 = arith.constant 1 : index
    %c0_110 = arith.constant 0 : index
    %c0_111 = arith.constant 0 : index
    %308 = vector.load %arg8[%c1_109, %c0_110, %c0_111] : memref<2x1x128xf32, #tpu.memory_space<vmem>>, vector<1x1x128xf32>
    %309 = vector.shape_cast %308 : vector<1x1x128xf32> to vector<1x128xf32>
    %c1_112 = arith.constant 1 : index
    %c0_113 = arith.constant 0 : index
    %c0_114 = arith.constant 0 : index
    %310 = vector.load %arg9[%c1_112, %c0_113, %c0_114] : memref<2x1x128xf32, #tpu.memory_space<vmem>>, vector<1x1x128xf32>
    %311 = vector.shape_cast %310 : vector<1x1x128xf32> to vector<1x128xf32>
    %cst_115 = arith.constant dense<0.000000e+00> : vector<32xf32>
    %312 = vector.multi_reduction <add>, %307, %cst_115 [1] : vector<32x128xf32> to vector<32xf32>
    %313 = vector.shape_cast %312 : vector<32xf32> to vector<32x1xf32>
    %cst_116 = arith.constant 1.280000e+02 : f32
    %314 = vector.broadcast %cst_116 : f32 to vector<32x1xf32>
    %315 = arith.divf %313, %314 : vector<32x1xf32>
    %316 = vector.broadcast %315 : vector<32x1xf32> to vector<32x128xf32>
    %317 = arith.subf %307, %316 : vector<32x128xf32>
    %318 = arith.mulf %317, %317 : vector<32x128xf32>
    %cst_117 = arith.constant dense<0.000000e+00> : vector<32xf32>
    %319 = vector.multi_reduction <add>, %318, %cst_117 [1] : vector<32x128xf32> to vector<32xf32>
    %320 = vector.shape_cast %319 : vector<32xf32> to vector<32x1xf32>
    %cst_118 = arith.constant 1.280000e+02 : f32
    %321 = vector.broadcast %cst_118 : f32 to vector<32x1xf32>
    %322 = arith.divf %320, %321 : vector<32x1xf32>
    %cst_119 = arith.constant 9.99999974E-6 : f32
    %323 = vector.broadcast %cst_119 : f32 to vector<32x1xf32>
    %324 = arith.addf %322, %323 : vector<32x1xf32>
    %325 = math.rsqrt %324 : vector<32x1xf32>
    %326 = vector.broadcast %325 : vector<32x1xf32> to vector<32x128xf32>
    %327 = arith.mulf %317, %326 : vector<32x128xf32>
    %328 = vector.broadcast %309 : vector<1x128xf32> to vector<32x128xf32>
    %329 = arith.mulf %327, %328 : vector<32x128xf32>
    %330 = vector.broadcast %311 : vector<1x128xf32> to vector<32x128xf32>
    %331 = arith.addf %329, %330 : vector<32x128xf32>
    %332 = arith.truncf %331 : vector<32x128xf32> to vector<32x128xbf16>
    %c1_120 = arith.constant 1 : index
    %c0_121 = arith.constant 0 : index
    %c0_122 = arith.constant 0 : index
    %333 = vector.load %arg10[%c1_120, %c0_121, %c0_122] : memref<2x128x256xbf16, #tpu.memory_space<vmem>>, vector<1x128x256xbf16>
    %334 = vector.shape_cast %333 : vector<1x128x256xbf16> to vector<128x256xbf16>
    %cst_123 = arith.constant dense<0.000000e+00> : vector<32x256xf32>
    %335 = tpu.matmul %332, %334, %cst_123 {dimension_numbers = #tpu.dot_dimension_numbers<[1], [0], [0], [1], [0, 0, 1, 1], [], []>} : vector<32x128xbf16>, vector<128x256xbf16>, vector<32x256xf32> -> vector<32x256xf32>
    %c1_124 = arith.constant 1 : index
    %c0_125 = arith.constant 0 : index
    %c0_126 = arith.constant 0 : index
    %336 = vector.load %arg11[%c1_124, %c0_125, %c0_126] : memref<2x1x256xf32, #tpu.memory_space<vmem>>, vector<1x1x256xf32>
    %337 = vector.shape_cast %336 : vector<1x1x256xf32> to vector<1x256xf32>
    %338 = vector.broadcast %337 : vector<1x256xf32> to vector<32x256xf32>
    %339 = arith.addf %335, %338 : vector<32x256xf32>
    %cst_127 = arith.constant 0.000000e+00 : f32
    %340 = vector.broadcast %cst_127 : f32 to vector<32x256xf32>
    %341 = arith.maximumf %339, %340 : vector<32x256xf32>
    %342 = arith.truncf %341 : vector<32x256xf32> to vector<32x256xbf16>
    %c1_128 = arith.constant 1 : index
    %c0_129 = arith.constant 0 : index
    %c0_130 = arith.constant 0 : index
    %343 = vector.load %arg12[%c1_128, %c0_129, %c0_130] : memref<2x256x128xbf16, #tpu.memory_space<vmem>>, vector<1x256x128xbf16>
    %344 = vector.shape_cast %343 : vector<1x256x128xbf16> to vector<256x128xbf16>
    %cst_131 = arith.constant dense<0.000000e+00> : vector<32x128xf32>
    %345 = tpu.matmul %342, %344, %cst_131 {dimension_numbers = #tpu.dot_dimension_numbers<[1], [0], [0], [1], [0, 0, 1, 1], [], []>} : vector<32x256xbf16>, vector<256x128xbf16>, vector<32x128xf32> -> vector<32x128xf32>
    %c1_132 = arith.constant 1 : index
    %c0_133 = arith.constant 0 : index
    %c0_134 = arith.constant 0 : index
    %346 = vector.load %arg13[%c1_132, %c0_133, %c0_134] : memref<2x1x128xf32, #tpu.memory_space<vmem>>, vector<1x1x128xf32>
    %347 = vector.shape_cast %346 : vector<1x1x128xf32> to vector<1x128xf32>
    %348 = vector.broadcast %347 : vector<1x128xf32> to vector<32x128xf32>
    %349 = arith.addf %345, %348 : vector<32x128xf32>
    %350 = arith.addf %331, %349 : vector<32x128xf32>
    %c1_135 = arith.constant 1 : index
    %c0_136 = arith.constant 0 : index
    %c0_137 = arith.constant 0 : index
    %351 = vector.load %arg14[%c1_135, %c0_136, %c0_137] : memref<2x1x128xf32, #tpu.memory_space<vmem>>, vector<1x1x128xf32>
    %352 = vector.shape_cast %351 : vector<1x1x128xf32> to vector<1x128xf32>
    %c1_138 = arith.constant 1 : index
    %c0_139 = arith.constant 0 : index
    %c0_140 = arith.constant 0 : index
    %353 = vector.load %arg15[%c1_138, %c0_139, %c0_140] : memref<2x1x128xf32, #tpu.memory_space<vmem>>, vector<1x1x128xf32>
    %354 = vector.shape_cast %353 : vector<1x1x128xf32> to vector<1x128xf32>
    %cst_141 = arith.constant dense<0.000000e+00> : vector<32xf32>
    %355 = vector.multi_reduction <add>, %350, %cst_141 [1] : vector<32x128xf32> to vector<32xf32>
    %356 = vector.shape_cast %355 : vector<32xf32> to vector<32x1xf32>
    %cst_142 = arith.constant 1.280000e+02 : f32
    %357 = vector.broadcast %cst_142 : f32 to vector<32x1xf32>
    %358 = arith.divf %356, %357 : vector<32x1xf32>
    %359 = vector.broadcast %358 : vector<32x1xf32> to vector<32x128xf32>
    %360 = arith.subf %350, %359 : vector<32x128xf32>
    %361 = arith.mulf %360, %360 : vector<32x128xf32>
    %cst_143 = arith.constant dense<0.000000e+00> : vector<32xf32>
    %362 = vector.multi_reduction <add>, %361, %cst_143 [1] : vector<32x128xf32> to vector<32xf32>
    %363 = vector.shape_cast %362 : vector<32xf32> to vector<32x1xf32>
    %cst_144 = arith.constant 1.280000e+02 : f32
    %364 = vector.broadcast %cst_144 : f32 to vector<32x1xf32>
    %365 = arith.divf %363, %364 : vector<32x1xf32>
    %cst_145 = arith.constant 9.99999974E-6 : f32
    %366 = vector.broadcast %cst_145 : f32 to vector<32x1xf32>
    %367 = arith.addf %365, %366 : vector<32x1xf32>
    %368 = math.rsqrt %367 : vector<32x1xf32>
    %369 = vector.broadcast %368 : vector<32x1xf32> to vector<32x128xf32>
    %370 = arith.mulf %360, %369 : vector<32x128xf32>
    %371 = vector.broadcast %352 : vector<1x128xf32> to vector<32x128xf32>
    %372 = arith.mulf %370, %371 : vector<32x128xf32>
    %373 = vector.broadcast %354 : vector<1x128xf32> to vector<32x128xf32>
    %374 = arith.addf %372, %373 : vector<32x128xf32>
    %375 = arith.truncf %374 : vector<32x128xf32> to vector<32x128xbf16>
    %c0_146 = arith.constant 0 : index
    %c0_147 = arith.constant 0 : index
    %376 = vector.load %arg16[%c0_146, %c0_147] : memref<128x16xbf16, #tpu.memory_space<vmem>>, vector<128x16xbf16>
    %cst_148 = arith.constant dense<0.000000e+00> : vector<32x16xf32>
    %377 = tpu.matmul %375, %376, %cst_148 {dimension_numbers = #tpu.dot_dimension_numbers<[1], [0], [0], [1], [0, 0, 1, 1], [], []>} : vector<32x128xbf16>, vector<128x16xbf16>, vector<32x16xf32> -> vector<32x16xf32>
    %c0_149 = arith.constant 0 : index
    %c0_150 = arith.constant 0 : index
    %378 = vector.load %arg17[%c0_149, %c0_150] : memref<1x16xf32, #tpu.memory_space<vmem>>, vector<1x16xf32>
    %379 = vector.broadcast %378 : vector<1x16xf32> to vector<32x16xf32>
    %380 = arith.addf %377, %379 : vector<32x16xf32>
    %cst_151 = arith.constant 0.000000e+00 : f32
    %381 = vector.broadcast %cst_151 : f32 to vector<32x16xf32>
    %382 = arith.maximumf %380, %381 : vector<32x16xf32>
    %c0_152 = arith.constant 0 : index
    %c0_153 = arith.constant 0 : index
    %383 = vector.load %arg18[%c0_152, %c0_153] : memref<32x16xf32, #tpu.memory_space<vmem>>, vector<32x16xf32>
    tpu.vector_store %arg18[%c0_152, %c0_153], %382 {strides = array<i32>} : memref<32x16xf32, #tpu.memory_space<vmem>>, vector<32x16xf32>,
    return
  }
  func.func @transform_0(%arg0: i32) -> (i32, i32) {
    %c0_i32 = arith.constant 0 : i32
    %c0_i32_0 = arith.constant 0 : i32
    return %arg0, %c0_i32 : i32, i32
  }
  func.func @transform_1(%arg0: i32) -> (i32, i32) {
    %c0_i32 = arith.constant 0 : i32
    %c0_i32_0 = arith.constant 0 : i32
    %c0_i32_1 = arith.constant 0 : i32
    return %c0_i32, %c0_i32_0 : i32, i32
  }
  func.func @transform_2(%arg0: i32) -> (i32, i32) {
    %c0_i32 = arith.constant 0 : i32
    %c0_i32_0 = arith.constant 0 : i32
    %c0_i32_1 = arith.constant 0 : i32
    return %c0_i32, %c0_i32_0 : i32, i32
  }
  func.func @transform_3(%arg0: i32) -> (i32, i32, i32) {
    %c0_i32 = arith.constant 0 : i32
    %c0_i32_0 = arith.constant 0 : i32
    %c0_i32_1 = arith.constant 0 : i32
    %c0_i32_2 = arith.constant 0 : i32
    return %c0_i32, %c0_i32_0, %c0_i32_1 : i32, i32, i32
  }
  func.func @transform_4(%arg0: i32) -> (i32, i32, i32) {
    %c0_i32 = arith.constant 0 : i32
    %c0_i32_0 = arith.constant 0 : i32
    %c0_i32_1 = arith.constant 0 : i32
    %c0_i32_2 = arith.constant 0 : i32
    return %c0_i32, %c0_i32_0, %c0_i32_1 : i32, i32, i32
  }
  func.func @transform_5(%arg0: i32) -> (i32, i32, i32) {
    %c0_i32 = arith.constant 0 : i32
    %c0_i32_0 = arith.constant 0 : i32
    %c0_i32_1 = arith.constant 0 : i32
    %c0_i32_2 = arith.constant 0 : i32
    return %c0_i32, %c0_i32_0, %c0_i32_1 : i32, i32, i32
  }
  func.func @transform_6(%arg0: i32) -> (i32, i32, i32) {
    %c0_i32 = arith.constant 0 : i32
    %c0_i32_0 = arith.constant 0 : i32
    %c0_i32_1 = arith.constant 0 : i32
    %c0_i32_2 = arith.constant 0 : i32
    return %c0_i32, %c0_i32_0, %c0_i32_1 : i32, i32, i32
  }
  func.func @transform_7(%arg0: i32) -> (i32, i32, i32) {
    %c0_i32 = arith.constant 0 : i32
    %c0_i32_0 = arith.constant 0 : i32
    %c0_i32_1 = arith.constant 0 : i32
    %c0_i32_2 = arith.constant 0 : i32
    return %c0_i32, %c0_i32_0, %c0_i32_1 : i32, i32, i32
  }
  func.func @transform_8(%arg0: i32) -> (i32, i32, i32) {
    %c0_i32 = arith.constant 0 : i32
    %c0_i32_0 = arith.constant 0 : i32
    %c0_i32_1 = arith.constant 0 : i32
    %c0_i32_2 = arith.constant 0 : i32
    return %c0_i32, %c0_i32_0, %c0_i32_1 : i32, i32, i32
  }
  func.func @transform_9(%arg0: i32) -> (i32, i32, i32) {
    %c0_i32 = arith.constant 0 : i32
    %c0_i32_0 = arith.constant 0 : i32
    %c0_i32_1 = arith.constant 0 : i32
    %c0_i32_2 = arith.constant 0 : i32
    return %c0_i32, %c0_i32_0, %c0_i32_1 : i32, i32, i32
  }
  func.func @transform_10(%arg0: i32) -> (i32, i32, i32) {
    %c0_i32 = arith.constant 0 : i32
    %c0_i32_0 = arith.constant 0 : i32
    %c0_i32_1 = arith.constant 0 : i32
    %c0_i32_2 = arith.constant 0 : i32
    return %c0_i32, %c0_i32_0, %c0_i32_1 : i32, i32, i32
  }
  func.func @transform_11(%arg0: i32) -> (i32, i32, i32) {
    %c0_i32 = arith.constant 0 : i32
    %c0_i32_0 = arith.constant 0 : i32
    %c0_i32_1 = arith.constant 0 : i32
    %c0_i32_2 = arith.constant 0 : i32
    return %c0_i32, %c0_i32_0, %c0_i32_1 : i32, i32, i32
  }
  func.func @transform_12(%arg0: i32) -> (i32, i32, i32) {
    %c0_i32 = arith.constant 0 : i32
    %c0_i32_0 = arith.constant 0 : i32
    %c0_i32_1 = arith.constant 0 : i32
    %c0_i32_2 = arith.constant 0 : i32
    return %c0_i32, %c0_i32_0, %c0_i32_1 : i32, i32, i32
  }
  func.func @transform_13(%arg0: i32) -> (i32, i32, i32) {
    %c0_i32 = arith.constant 0 : i32
    %c0_i32_0 = arith.constant 0 : i32
    %c0_i32_1 = arith.constant 0 : i32
    %c0_i32_2 = arith.constant 0 : i32
    return %c0_i32, %c0_i32_0, %c0_i32_1 : i32, i32, i32
  }
  func.func @transform_14(%arg0: i32) -> (i32, i32, i32) {
    %c0_i32 = arith.constant 0 : i32
    %c0_i32_0 = arith.constant 0 : i32
    %c0_i32_1 = arith.constant 0 : i32
    %c0_i32_2 = arith.constant 0 : i32
    return %c0_i32, %c0_i32_0, %c0_i32_1 : i32, i32, i32
  }
  func.func @transform_15(%arg0: i32) -> (i32, i32) {
    %c0_i32 = arith.constant 0 : i32
    %c0_i32_0 = arith.constant 0 : i32
    %c0_i32_1 = arith.constant 0 : i32
    return %c0_i32, %c0_i32_0 : i32, i32
  }
  func.func @transform_16(%arg0: i32) -> (i32, i32) {
    %c0_i32 = arith.constant 0 : i32
    %c0_i32_0 = arith.constant 0 : i32
    %c0_i32_1 = arith.constant 0 : i32
    return %c0_i32, %c0_i32_0 : i32, i32
  }
  func.func @transform_17(%arg0: i32) -> (i32, i32) {
    %c0_i32 = arith.constant 0 : i32
    %c0_i32_0 = arith.constant 0 : i32
    return %arg0, %c0_i32 : i32, i32
  }
}

</mosaic_0001>

<bundles_post_ra>
// kernel: forward.1
= control target key start
LH: loop header
LB: loop body
LE: loop exit
PB: predicated region body
PF: predicated region fallthrough
CT: control target
= control target key end

     0   :  { %vm83_vm0 = vcmask 130048   ;;  %v5335_v27 = vmov 0   ;;  %v5336_v42 = vmov 0.0   ;;  %vm5337_vm1 = vmmov 0   ;;  %s5340_s30 = smov 32   ;;  %s6494_s1 = inlined_call_operand.vmem [shape: bf16[16,128], index: 1, kind: input, shape index: {}]   ;;  %s6495_s0 = inlined_call_operand.vmem [shape: bf16[32,16], index: 0, kind: input, shape index: {}]   ;;  %s6496_s3 = inlined_call_operand.vmem [shape: bf16[2,128,384], index: 3, kind: input, shape index: {}]   ;;  %s6497_s2 = inlined_call_operand.vmem [shape: f32[32,128], index: 2, kind: input, shape index: {}]   ;;  %s6498_s4 = inlined_call_operand.vmem [shape: f32[2,1,384], index: 4, kind: input, shape index: {}]   ;;  %s6499_s5 = inlined_call_operand.vmem [shape: bf16[2,128,128], index: 5, kind: input, shape index: {}]   ;;  %s6500_s6 = inlined_call_operand.vmem [shape: f32[2,1,128], index: 6, kind: input, shape index: {}]   ;;  %s6501_s9 = inlined_call_operand.vmem [shape: bf16[2,128,256], index: 9, kind: input, shape index: {}]   ;;  %s6502_s11 = inlined_call_operand.vmem [shape: bf16[2,256,128], index: 11, kind: input, shape index: {}]   ;;  %s6503_s7 = inlined_call_operand.vmem [shape: f32[2,1,128], index: 7, kind: input, shape index: {}]   ;;  %s6504_s8 = inlined_call_operand.vmem [shape: f32[2,1,128], index: 8, kind: input, shape index: {}]   ;;  %s6505_s10 = inlined_call_operand.vmem [shape: f32[2,1,256], index: 10, kind: input, shape index: {}]   ;;  %s6506_s12 = inlined_call_operand.vmem [shape: f32[2,1,128], index: 12, kind: input, shape index: {}]   ;;  %s6507_s13 = inlined_call_operand.vmem [shape: f32[2,1,128], index: 13, kind: input, shape index: {}]   ;;  %s6508_s14 = inlined_call_operand.vmem [shape: f32[2,1,128], index: 14, kind: input, shape index: {}]   ;;  %s6509_s15 = inlined_call_operand.vmem [shape: bf16[128,16], index: 15, kind: input, shape index: {}]   ;;  %s6510_s16 = inlined_call_operand.vmem [shape: f32[1,16], index: 16, kind: input, shape index: {}]   ;;  %s6511_s17 = inlined_call_operand.vmem [shape: f32[32,16], index: 17, kind: output, shape index: {}]  }
   0x1   :  { %6513 = sst [smem:[#allocation2_spill]] %s6494_s1  ;;  %v5007_v3 = vld [vmem:[%s6496_s3 + $0xac] ss:$12 sps:$4 sm:$0xff]   ;;  %v5009_v4 = vld [vmem:[%s6496_s3 + $0xa8] ss:$12 sps:$4 sm:$0xff]   ;;  %350 = vmatprep.mubr.bf16.mxu1 %v5335_v27  ;;  %v63_v31 = vld [vmem:[%s6497_s2] sm:$0xff]  ;;  %v175_v43 = vlaneseq }
   0x2   :  { %6514 = sst [smem:[#allocation3_spill]] %s6495_s0  ;;  %318 = vmatprep.subr.bf16.mxu1 %v5007_v3  ;;  %v5010_v5 = vld [vmem:[%s6496_s3 + $0xb0] ss:$12 sps:$4 sm:$0xff]   ;;  %v5011_v6 = vld [vmem:[%s6496_s3 + $0x94] ss:$12 sps:$4 sm:$0xff]   ;;  %v64_v33 = vld [vmem:[%s6497_s2 + $0x8] sm:$0xff] }
   0x3   :  { %s6515_s26 = sld [smem:[#allocation2_spill]]  ;;  %319 = vmatpush1.bf16.msra.mxu1 %v5009_v4  ;;  %v5013_v7 = vld [vmem:[%s6496_s3 + $0x90] ss:$12 sps:$4 sm:$0xff]   ;;  %v5014_v8 = vld [vmem:[%s6496_s3 + $0x98] ss:$12 sps:$4 sm:$0xff]   ;;  %v5546_v44 = vshrl.u32 %v175_v43, 7 }
   0x4   :  { %s6516_s29 = sld [smem:[#allocation3_spill]]  ;;  %320 = vmatprep.subr.bf16.mxu1 %v5011_v6  ;;  %v5015_v9 = vld [vmem:[%s6496_s3 + $0x7c] ss:$12 sps:$4 sm:$0xff]   ;;  %v5018_v10 = vld [vmem:[%s6496_s3 + $0x80] ss:$12 sps:$4 sm:$0xff]   ;;  %v65_v34 = vld [vmem:[%s6497_s2 + $0x10] sm:$0xff] }
   0x5   :  { %v5017_v11 = vld [vmem:[%s6496_s3 + $0x78] ss:$12 sps:$4 sm:$0xff]   ;;  %v5022_v13 = vld [vmem:[%s6496_s3 + $0x68] ss:$12 sps:$4 sm:$0xff]   ;;  %v5021_v14 = vld [vmem:[%s6496_s3 + $0x60] ss:$12 sps:$4 sm:$0xff]  }
   0x6   :  { %v5019_v12 = vld [vmem:[%s6496_s3 + $0x64] ss:$12 sps:$4 sm:$0xff]   ;;  %v5023_v15 = vld [vmem:[%s6496_s3 + $0x4c] ss:$12 sps:$4 sm:$0xff]   ;;  %v5025_v17 = vld [vmem:[%s6496_s3 + $0x48] ss:$12 sps:$4 sm:$0xff]  }
   0x7   :  { %321 = vmatpush1.bf16.msra.mxu1 %v5013_v7  ;;  %v5026_v16 = vld [vmem:[%s6496_s3 + $0x50] ss:$12 sps:$4 sm:$0xff]   ;;  %v5027_v18 = vld [vmem:[%s6496_s3 + $0x34] ss:$12 sps:$4 sm:$0xff]   ;;  %v5030_v20 = vld [vmem:[%s6496_s3 + $0x38] ss:$12 sps:$4 sm:$0xff]  }
   0x8   :  { %322 = vmatprep.subr.bf16.mxu1 %v5015_v9  ;;  %v5029_v19 = vld [vmem:[%s6496_s3 + $0x30] ss:$12 sps:$4 sm:$0xff]   ;;  %v5033_v22 = vld [vmem:[%s6496_s3 + $0x18] ss:$12 sps:$4 sm:$0xff]   ;;  %v5034_v23 = vld [vmem:[%s6496_s3 + $0x20] ss:$12 sps:$4 sm:$0xff]  }
   0x9   :  { %v5004_v0 = vld [vmem:[%s6515_s26] sm:$0xff]   ;;  %v5031_v21 = vld [vmem:[%s6496_s3 + $0x1c] ss:$12 sps:$4 sm:$0xff]   ;;  %v5549_v45 = vsub.s32 1, %v5546_v44  ;;  %v5556_v54 = vsub.s32 0, %v5546_v44  ;;  %v185_v58 = vsub.s32 2, %v5546_v44 }
   0xa   :  { %v5005_v1 = vld [vmem:[%s6516_s29] sm:$0xff]   ;;  %4640 = vmatprep.subr.bf16.mxu0 %v5004_v0  ;;  %v5006_v2 = vld [vmem:[%s6516_s29 + $0x8] sm:$0xff]   ;;  %v66_v30 = vld [vmem:[%s6497_s2 + $0x18] sm:$0xff]  ;;  %vm426_vm2 = vcmask 261120   ;;  %s5338_s29 = smov 96   ;;  %s5339_s1 = smov 64  }
   0xb   :  { %4641 = vmatpush3.bf16.msra.mxu0 %v5004_v0  ;;  %4642 = vmatprep.mubr.msk.bf16.mxu0 %vm83_vm0, %v5005_v1  ;;  %v5035_v24 = vld [vmem:[%s6496_s3 + $0x4] ss:$12 sps:$4 sm:$0xff]   ;;  %v5037_v25 = vld [vmem:[%s6496_s3] ss:$12 sps:$4 sm:$0xff]   ;;  %v5038_v26 = vld [vmem:[%s6496_s3 + $0x8] ss:$12 sps:$4 sm:$0xff]  }
   0xc   :  { %4646 = vmatprep.subr.bf16.mxu0 %v5010_v5  ;;  %323 = vmatpush1.bf16.msra.mxu1 %v5017_v11  ;;  %v173_v48 = vld [vmem:[%s6498_s4] sm:$0x7]  ;;  %vm1455_vm3 = vcmask 523264   ;;  %vm1460_vm4 = vcmask 785408  }
   0xd   :  { %324 = vmatprep.subr.bf16.mxu1 %v5019_v12  ;;  %v182_v50 = vrot.slane %v173_v48, %v5549_v45  ;;  %v178_v62 = vrot.slane %v173_v48, %v5556_v54  ;;  %v186_v1 = vrot.slane %v173_v48, %v185_v58 }
   0xe   :  { %4643 = vmatmul.mubr.msk.bf16.vlgmr.msra.gmra.mxu0 %vm83_vm0, %v5006_v2 }
   0xf   :  { %4647 = vmatpush3.bf16.msra.mxu0 %v5010_v5 }
  0x10   :  { %4648 = vmatprep.subr.bf16.mxu0 %v5014_v8  ;;  %325 = vmatpush1.bf16.msra.mxu1 %v5021_v14 }
  0x11   :  { %326 = vmatprep.subr.bf16.mxu1 %v5023_v15 }
  0x13   :  { %4649 = vmatpush3.bf16.msra.mxu0 %v5014_v8 }
  0x14   :  { %4650 = vmatprep.subr.bf16.mxu0 %v5018_v10  ;;  %327 = vmatpush1.bf16.msra.mxu1 %v5025_v17 }
  0x15   :  { %328 = vmatprep.subr.bf16.mxu1 %v5027_v18 }
  0x17   :  { %4651 = vmatpush3.bf16.msra.mxu0 %v5018_v10 }
  0x18   :  { %4652 = vmatprep.subr.bf16.mxu0 %v5022_v13  ;;  %329 = vmatpush1.bf16.msra.mxu1 %v5029_v19 }
  0x19   :  { %330 = vmatprep.subr.bf16.mxu1 %v5031_v21 }
  0x1b   :  { %4653 = vmatpush3.bf16.msra.mxu0 %v5022_v13 }
  0x1c   :  { %4654 = vmatprep.subr.bf16.mxu0 %v5026_v16  ;;  %331 = vmatpush1.bf16.msra.mxu1 %v5033_v22 }
  0x1d   :  { %332 = vmatprep.subr.bf16.mxu1 %v5035_v24 }
  0x1f   :  { %4655 = vmatpush3.bf16.msra.mxu0 %v5026_v16 }
  0x20   :  { %4656 = vmatprep.subr.bf16.mxu0 %v5030_v20  ;;  %333 = vmatpush1.bf16.msra.mxu1 %v5037_v25 }
  0x21   :  { %4672 = vmatprep.subr.bf16.mxu1 %v5336_v42 }
  0x23   :  { %4657 = vmatpush3.bf16.msra.mxu0 %v5030_v20 }
  0x24   :  { %4658 = vmatprep.subr.bf16.mxu0 %v5034_v23 }
  0x27   :  { %4659 = vmatpush3.bf16.msra.mxu0 %v5034_v23 }
  0x28   :  { %4660 = vmatprep.subr.bf16.mxu0 %v5038_v26 }
  0x2b   :  { %4661 = vmatpush3.bf16.msra.mxu0 %v5038_v26 }
  0x2c   :  { %4666 = vmatprep.subr.bf16.mxu0 %v5336_v42 }
  0xce   :  { %v4644_v28 = vpop.f32.mrf.mxu0 }
  0xcf   :  { %v5533_v39 = vadd.f32 %v4644_v28, %v65_v34 }
  0xd0   :  { %v124_v29 = vpop.f32.mrf.mxu0 }
  0xd1   :  { %v5529_v37 = vadd.f32 %v124_v29, %v63_v31 }
  0xd2   :  { %v4645_v32 = vpop.f32.mrf.mxu0 }
  0xd3   :  { %v5527_v35 = vadd.f32 %v4645_v32, %v66_v30 }
  0xd4   :  { %v127_v36 = vpop.f32.mrf.mxu0 }
  0xd5   :  { %v5531_v38 = vadd.f32 %v127_v36, %v64_v33  ;;  %v140_v41 = vpack.c.bf16 %v5527_v35, %v5533_v39 }
  0xd7   :  { %v139_v40 = vpack.c.bf16 %v5531_v38, %v5529_v37 }
  0xd9   :  { %351 = vmatmul.mubr.bf16.vlgmr.msra.gmra.mxu1 %v139_v40  ;;  %4662 = vmatprep.mubr.bf16.mxu0 %v139_v40 }
  0xda   :  { %4663 = vmatmul.mubr.bf16.vlgmr.msra.gmra.mxu0 %v140_v41  ;;  %360 = vmatprep.mubr.bf16.mxu1 %v5335_v27 }
  0xdb   :  { %4668 = vmatprep.mubr.msk.bf16.mxu0 %vm5337_vm1, %v5336_v42 }
  0xe1   :  { %361 = vmatmul.mubr.bf16.gmra.mxu1 %v140_v41 }
  0xe2   :  { %4674 = vmatprep.mubr.msk.bf16.mxu1 %vm5337_vm1, %v5336_v42 }
 0x199   :  { %v352_v46 = vpop.f32.mrf.mxu1 }
 0x19a   :  { %v4664_v47 = vpop.f32.mrf.mxu0  ;;  %v353_v6 = vadd.f32 %v352_v46, %v178_v62 }
 0x19b   :  { %v354_v49 = vpop.f32.mrf.mxu1  ;;  %v414_v17 = vadd.f32 %v4664_v47, %v186_v1 }
 0x19c   :  { %v405_v51 = vpop.f32.mrf.mxu0  ;;  %v355_v55 = vadd.f32 %v354_v49, %v182_v50 }
 0x19d   :  { %v356_v52 = vpop.f32.mrf.mxu1  ;;  %v406_v9 = vadd.f32 %v405_v51, %v186_v1 }
 0x19e   :  { %v4665_v56 = vpop.f32.mrf.mxu0  ;;  %v357_v3 = vadd.f32 %v356_v52, %v178_v62 }
 0x19f   :  { %v358_v53 = vpop.f32.mrf.mxu1  ;;  %v417_v15 = vadd.f32 %v4665_v56, %v186_v1 }
 0x1a0   :  { %v359_v57 = vadd.f32 %v358_v53, %v182_v50  ;;  %v408_v63 = vpop.f32.mrf.mxu0  ;;  %v5567_v10 = vpack.c.bf16 %v357_v3, %v353_v6 }
 0x1a1   :  { %v362_v59 = vpop.f32.mrf.mxu1  ;;  %v409_v4 = vadd.f32 %v408_v63, %v186_v1  ;;  %v5584_v19 = vpack.c.bf16 %v417_v15, %v414_v17 }
 0x1a2   :  { %v5559_v60 = vpack.c.bf16 %v359_v57, %v355_v55  ;;  %v363_v16 = vadd.f32 %v362_v59, %v178_v62 }
 0x1a3   :  { %v364_v61 = vpop.f32.mrf.mxu1  ;;  %v5571_v12 = vpack.c.bf16 %v409_v4, %v406_v9 }
 0x1a4   :  { %v431_v0 = vsel %vm426_vm2, %v5559_v60, 0  ;;  %v365_v7 = vadd.f32 %v364_v61, %v182_v50 }
 0x1a5   :  { %v366_v2 = vpop.f32.mrf.mxu1  ;;  %4667 = vmatpush3.bf16.xpose.msra.mxu0 %v431_v0 }
 0x1a6   :  { %4678 = vmatprep.subr.bf16.mxu0 %v5336_v42  ;;  %v367_v14 = vadd.f32 %v366_v2, %v178_v62 }
 0x1a7   :  { %v368_v5 = vpop.f32.mrf.mxu1 }
 0x1a8   :  { %v369_v8 = vadd.f32 %v368_v5, %v182_v50  ;;  %v5582_v18 = vpack.c.bf16 %v367_v14, %v363_v16 }
 0x1aa   :  { %v5569_v11 = vpack.c.bf16 %v369_v8, %v365_v7 }
 0x1ac   :  { %4669 = vmatmul.mubr.msk.bf16.vlgmr.msra.gmra.mxu0 %vm426_vm2, %v5567_v10  ;;  %v478_v13 = vsel %vm426_vm2, %v5569_v11, 0 }
 0x1ad   :  { %4673 = vmatpush3.bf16.xpose.msra.mxu1 %v478_v13  ;;  %4679 = vmatpush3.bf16.msra.mxu0 %v5571_v12 }
 0x1ae   :  { %4684 = vmatprep.subr.bf16.mxu1 %v5336_v42  ;;  %4680 = vmatprep.mubr.msk.bf16.mxu0 %vm5337_vm1, %v5336_v42 }
 0x1af   :  { %4690 = vmatprep.subr.bf16.mxu0 %v5336_v42 }
 0x1b4   :  { %4675 = vmatmul.mubr.msk.bf16.vlgmr.msra.gmra.mxu1 %vm426_vm2, %v5582_v18 }
 0x1b5   :  { %4685 = vmatpush3.bf16.msra.mxu1 %v5584_v19  ;;  %4686 = vmatprep.mubr.msk.bf16.mxu1 %vm5337_vm1, %v5336_v42 }
 0x1b6   :  { %4696 = vmatprep.subr.bf16.mxu1 %v5336_v42 }
 0x26c   :  { %v467_v20 = vpop.f32.mrf.mxu0 }
 0x26d   :  { %v521_v21 = vmul.f32 0.17677669, %v467_v20 }
 0x26e   :  { %v4670_v22 = vpop.f32.mrf.mxu0 }
 0x26f   :  { %v525_v23 = vsel %vm83_vm0, %v521_v21, -inf }
 0x270   :  { %526 = vmax.xlane.f32.xlu0 %v525_v23  ;;  %v470_v24 = vpop.f32.mrf.mxu0 }
 0x271   :  { %v522_v25 = vmul.f32 0.17677669, %v470_v24 }
 0x272   :  { %v4671_v26 = vpop.f32.mrf.mxu0 }
 0x273   :  { %v528_v28 = vsel %vm83_vm0, %v522_v25, -inf }
 0x274   :  { %v514_v29 = vpop.f32.mrf.mxu1  ;;  %529 = vmax.xlane.f32.xlu0 %v528_v28 }
 0x275   :  { %v523_v30 = vmul.f32 0.17677669, %v514_v29 }
 0x276   :  { %v4676_v31 = vpop.f32.mrf.mxu1 }
 0x277   :  { %v531_v32 = vsel %vm83_vm0, %v523_v30, -inf }
 0x278   :  { %532 = vmax.xlane.f32.xlu1 %v531_v32  ;;  %v517_v33 = vpop.f32.mrf.mxu1 }
 0x279   :  { %v524_v34 = vmul.f32 0.17677669, %v517_v33 }
 0x27a   :  { %v4677_v36 = vpop.f32.mrf.mxu1 }
 0x27b   :  { %v534_v40 = vsel %vm83_vm0, %v524_v34, -inf }
 0x27c   :  { %535 = vmax.xlane.f32.xlu1 %v534_v40 }
 0x2f9   :  { %v527_v41 = vpop.xlane.xlu0 %526 }
 0x2fa   :  { %v537_v43 = vsub.f32 %v521_v21, %v527_v41 }
 0x2fc   :  { %v541_v46 = vmul.f32 1.442695, %v537_v43 }
 0x2fd   :  { %v530_v47 = vpop.xlane.xlu0 %529 }
 0x2fe   :  { %5175 = vpow2.f32 %v541_v46  ;;  %v538_v48 = vsub.f32 %v522_v25, %v530_v47 }
 0x300   :  { %v543_v49 = vmul.f32 1.442695, %v538_v48 }
 0x301   :  { %v533_v50 = vpop.xlane.xlu1 %532 }
 0x302   :  { %5177 = vpow2.f32 %v543_v49  ;;  %v539_v51 = vsub.f32 %v523_v30, %v533_v50 }
 0x304   :  { %v545_v52 = vmul.f32 1.442695, %v539_v51 }
 0x305   :  { %v536_v62 = vpop.xlane.xlu1 %535 }
 0x306   :  { %5179 = vpow2.f32 %v545_v52  ;;  %v540_v63 = vsub.f32 %v524_v34, %v536_v62 }
 0x308   :  { %v547_v0 = vmul.f32 1.442695, %v540_v63 }
 0x30a   :  { %5181 = vpow2.f32 %v547_v0 }
 0x30b   :  { %v5176_v53 = vpop.eup %5175 }
 0x30c   :  { %v549_v55 = vsel %vm83_vm0, %v5176_v53, 0.0 }
 0x30d   :  { %550 = vadd.xlane.f32.xlu0 %v549_v55 }
 0x30f   :  { %v5178_v56 = vpop.eup %5177 }
 0x310   :  { %v552_v57 = vsel %vm83_vm0, %v5178_v56, 0.0 }
 0x311   :  { %553 = vadd.xlane.f32.xlu1 %v552_v57 }
 0x313   :  { %v5180_v59 = vpop.eup %5179 }
 0x314   :  { %v555_v61 = vsel %vm83_vm0, %v5180_v59, 0.0 }
 0x315   :  { %556 = vadd.xlane.f32.xlu0 %v555_v61 }
 0x317   :  { %v5182_v1 = vpop.eup %5181 }
 0x318   :  { %v558_v2 = vsel %vm83_vm0, %v5182_v1, 0.0 }
 0x322   :  { %716 = vrot.lane.b32.xlu1 %v5569_v11, %s5338_s29 }
 0x32b   :  { %663 = vrot.lane.b32.xlu0 %v5559_v60, %s5338_s29 }
 0x346   :  { %559 = vadd.xlane.f32.xlu1 %v558_v2 }
 0x357   :  { %660 = vrot.lane.b32.xlu1 %v5567_v10, %s5338_s29 }
 0x35b   :  { %713 = vrot.lane.b32.xlu1 %v5582_v18, %s5338_s29 }
 0x396   :  { %v551_v3 = vpop.xlane.xlu0 %550 }
 0x397   :  { %5183 = vrcp.f32 %v551_v3 }
 0x39a   :  { %v554_v4 = vpop.xlane.xlu1 %553 }
 0x39b   :  { %5185 = vrcp.f32 %v554_v4 }
 0x39e   :  { %v557_v5 = vpop.xlane.xlu0 %556  ;;  %v717_v16 = vpop.permute.xlu1 %716 }
 0x39f   :  { %5187 = vrcp.f32 %v557_v5  ;;  %v722_v26 = vsel %vm426_vm2, %v717_v16, 0 }
 0x3a2   :  { %v664_v13 = vpop.permute.xlu0 %663 }
 0x3a3   :  { %v669_v15 = vsel %vm426_vm2, %v664_v13, 0 }
 0x3a4   :  { %v5184_v6 = vpop.eup %5183 }
 0x3a5   :  { %v565_v8 = vmul.f32 %v5184_v6, %v5176_v53 }
 0x3a8   :  { %v5186_v7 = vpop.eup %5185 }
 0x3a9   :  { %v566_v9 = vmul.f32 %v5186_v7, %v5178_v56 }
 0x3ab   :  { %v569_v14 = vpack.c.bf16 %v566_v9, %v565_v8 }
 0x3ac   :  { %v5188_v21 = vpop.eup %5187 }
 0x3ad   :  { %4681 = vmatmul.mubr.msk.bf16.vlgmr.msra.gmra.mxu0 %vm83_vm0, %v569_v14  ;;  %v567_v23 = vmul.f32 %v5188_v21, %v5180_v59 }
 0x3ae   :  { %4691 = vmatpush3.bf16.xpose.msra.mxu0 %v669_v15  ;;  %4692 = vmatprep.mubr.msk.bf16.mxu0 %vm5337_vm1, %v5336_v42 }
 0x3af   :  { %4702 = vmatprep.subr.bf16.mxu0 %v5336_v42 }
 0x3cf   :  { %v560_v17 = vpop.xlane.xlu1 %559 }
 0x3d0   :  { %5189 = vrcp.f32 %v560_v17 }
 0x3d3   :  { %v661_v20 = vpop.permute.xlu1 %660 }
 0x3d4   :  { %4693 = vmatmul.mubr.msk.bf16.vlgmr.msra.gmra.mxu0 %vm426_vm2, %v661_v20 }
 0x3d5   :  { %4704 = vmatprep.mubr.msk.bf16.mxu0 %vm5337_vm1, %v5336_v42 }
 0x3d7   :  { %v714_v28 = vpop.permute.xlu1 %713 }
 0x3dd   :  { %v5190_v22 = vpop.eup %5189 }
 0x3de   :  { %v568_v24 = vmul.f32 %v5190_v22, %v5182_v1 }
 0x3e0   :  { %v570_v25 = vpack.c.bf16 %v568_v24, %v567_v23 }
 0x3e2   :  { %4687 = vmatmul.mubr.msk.bf16.vlgmr.msra.gmra.mxu1 %vm83_vm0, %v570_v25 }
 0x3e3   :  { %4697 = vmatpush3.bf16.xpose.msra.mxu1 %v722_v26  ;;  %4698 = vmatprep.mubr.msk.bf16.mxu1 %vm5337_vm1, %v5336_v42 }
 0x3e4   :  { %4708 = vmatprep.subr.bf16.mxu1 %v5336_v42 }
 0x3ea   :  { %4699 = vmatmul.mubr.msk.bf16.vlgmr.msra.gmra.mxu1 %vm426_vm2, %v714_v28 }
 0x3eb   :  { %4710 = vmatprep.mubr.msk.bf16.mxu1 %vm5337_vm1, %v5336_v42 }
 0x46d   :  { %v5624_v29 = vpop.f32.mrf.mxu0 }
 0x46f   :  { %v4682_v30 = vpop.f32.mrf.mxu0 }
 0x471   :  { %v5626_v31 = vpop.f32.mrf.mxu0 }
 0x473   :  { %v4683_v32 = vpop.f32.mrf.mxu0 }
 0x494   :  { %v705_v33 = vpop.f32.mrf.mxu0 }
 0x495   :  { %v765_v34 = vmul.f32 0.17677669, %v705_v33 }
 0x496   :  { %v4694_v36 = vpop.f32.mrf.mxu0 }
 0x497   :  { %v769_v40 = vsel %vm83_vm0, %v765_v34, -inf }
 0x498   :  { %770 = vmax.xlane.f32.xlu0 %v769_v40  ;;  %v708_v41 = vpop.f32.mrf.mxu0 }
 0x499   :  { %v766_v43 = vmul.f32 0.17677669, %v708_v41 }
 0x49a   :  { %v4695_v46 = vpop.f32.mrf.mxu0 }
 0x49b   :  { %v772_v47 = vsel %vm83_vm0, %v766_v43, -inf }
 0x49c   :  { %773 = vmax.xlane.f32.xlu1 %v772_v47 }
 0x4a2   :  { %v5630_v48 = vpop.f32.mrf.mxu1 }
 0x4a4   :  { %v4688_v49 = vpop.f32.mrf.mxu1 }
 0x4a6   :  { %v5632_v50 = vpop.f32.mrf.mxu1 }
 0x4a8   :  { %v4689_v51 = vpop.f32.mrf.mxu1 }
 0x4aa   :  { %v758_v52 = vpop.f32.mrf.mxu1 }
 0x4ab   :  { %v767_v53 = vmul.f32 0.17677669, %v758_v52 }
 0x4ac   :  { %v4700_v55 = vpop.f32.mrf.mxu1 }
 0x4ad   :  { %v775_v56 = vsel %vm83_vm0, %v767_v53, -inf }
 0x4ae   :  { %v761_v57 = vpop.f32.mrf.mxu1  ;;  %776 = vmax.xlane.f32.xlu0 %v775_v56 }
 0x4af   :  { %v768_v59 = vmul.f32 0.17677669, %v761_v57 }
 0x4b0   :  { %v4701_v61 = vpop.f32.mrf.mxu1 }
 0x4b1   :  { %v778_v62 = vsel %vm83_vm0, %v768_v59, -inf }
 0x4b2   :  { %779 = vmax.xlane.f32.xlu0 %v778_v62 }
 0x521   :  { %v771_v63 = vpop.xlane.xlu0 %770 }
 0x522   :  { %v781_v0 = vsub.f32 %v765_v34, %v771_v63 }
 0x524   :  { %v785_v1 = vmul.f32 1.442695, %v781_v0 }
 0x525   :  { %v774_v2 = vpop.xlane.xlu1 %773 }
 0x526   :  { %5191 = vpow2.f32 %v785_v1  ;;  %v782_v3 = vsub.f32 %v766_v43, %v774_v2 }
 0x528   :  { %v787_v4 = vmul.f32 1.442695, %v782_v3 }
 0x52a   :  { %5193 = vpow2.f32 %v787_v4 }
 0x533   :  { %v5192_v5 = vpop.eup %5191 }
 0x534   :  { %v793_v6 = vsel %vm83_vm0, %v5192_v5, 0.0 }
 0x535   :  { %794 = vadd.xlane.f32.xlu0 %v793_v6 }
 0x537   :  { %v5194_v7 = vpop.eup %5193  ;;  %v777_v8 = vpop.xlane.xlu0 %776 }
 0x538   :  { %v783_v9 = vsub.f32 %v767_v53, %v777_v8  ;;  %v796_v13 = vsel %vm83_vm0, %v5194_v7, 0.0 }
 0x539   :  { %797 = vadd.xlane.f32.xlu1 %v796_v13 }
 0x53a   :  { %v789_v14 = vmul.f32 1.442695, %v783_v9 }
 0x53b   :  { %v780_v17 = vpop.xlane.xlu0 %779 }
 0x53c   :  { %5195 = vpow2.f32 %v789_v14  ;;  %v784_v20 = vsub.f32 %v768_v59, %v780_v17 }
 0x53e   :  { %v791_v21 = vmul.f32 1.442695, %v784_v20 }
 0x540   :  { %5197 = vpow2.f32 %v791_v21 }
 0x549   :  { %v5196_v15 = vpop.eup %5195 }
 0x54a   :  { %864 = vrot.lane.b32.xlu1 %v5584_v19, %s5338_s29  ;;  %v799_v16 = vsel %vm83_vm0, %v5196_v15, 0.0 }
 0x54b   :  { %800 = vadd.xlane.f32.xlu0 %v799_v16 }
 0x54d   :  { %v5198_v22 = vpop.eup %5197 }
 0x54e   :  { %913 = vrot.lane.b32.xlu1 %v5559_v60, %s5339_s1  ;;  %v802_v23 = vsel %vm83_vm0, %v5198_v22, 0.0 }
 0x561   :  { %816 = vrot.lane.b32.xlu0 %v5571_v12, %s5338_s29 }
 0x565   :  { %911 = vrot.lane.b32.xlu0 %v5567_v10, %s5339_s1 }
 0x572   :  { %803 = vadd.xlane.f32.xlu1 %v802_v23 }
 0x583   :  { %964 = vrot.lane.b32.xlu1 %v5569_v11, %s5339_s1 }
 0x587   :  { %962 = vrot.lane.b32.xlu1 %v5582_v18, %s5339_s1 }
 0x5be   :  { %v795_v25 = vpop.xlane.xlu0 %794 }
 0x5c2   :  { %v798_v24 = vpop.xlane.xlu1 %797 }
 0x5c3   :  { %5199 = vrcp.f32 %v798_v24 }
 0x5c4   :  { %5201 = vrcp.f32 %v795_v25 }
 0x5c6   :  { %v865_v26 = vpop.permute.xlu1 %864 }
 0x5c7   :  { %4709 = vmatpush3.bf16.msra.mxu1 %v865_v26 }
 0x5c8   :  { %4720 = vmatprep.subr.bf16.mxu1 %v5336_v42 }
 0x5ca   :  { %v914_v40 = vpop.permute.xlu1 %913 }
 0x5cb   :  { %v919_v43 = vsel %vm426_vm2, %v914_v40, 0 }
 0x5d0   :  { %v5200_v28 = vpop.eup %5199 }
 0x5d1   :  { %v5202_v32 = vpop.eup %5201  ;;  %v810_v33 = vmul.f32 %v5200_v28, %v5194_v7 }
 0x5d2   :  { %v809_v36 = vmul.f32 %v5202_v32, %v5192_v5 }
 0x5d4   :  { %v801_v30 = vpop.xlane.xlu0 %800  ;;  %v813_v41 = vpack.c.bf16 %v810_v33, %v809_v36 }
 0x5d5   :  { %5203 = vrcp.f32 %v801_v30 }
 0x5d8   :  { %v817_v34 = vpop.permute.xlu0 %816 }
 0x5d9   :  { %4703 = vmatpush3.bf16.msra.mxu0 %v817_v34 }
 0x5da   :  { %4714 = vmatprep.subr.bf16.mxu0 %v5336_v42 }
 0x5dc   :  { %4705 = vmatmul.mubr.msk.bf16.vlgmr.msra.gmra.mxu0 %vm83_vm0, %v813_v41  ;;  %v912_v46 = vpop.permute.xlu0 %911 }
 0x5dd   :  { %4715 = vmatpush3.bf16.xpose.msra.mxu0 %v919_v43  ;;  %4716 = vmatprep.mubr.msk.bf16.mxu0 %vm5337_vm1, %v5336_v42 }
 0x5de   :  { %4726 = vmatprep.subr.bf16.mxu0 %v5336_v42 }
 0x5e2   :  { %v5204_v49 = vpop.eup %5203 }
 0x5e3   :  { %v811_v52 = vmul.f32 %v5204_v49, %v5196_v15 }
 0x5e4   :  { %4717 = vmatmul.mubr.msk.bf16.vlgmr.msra.gmra.mxu0 %vm426_vm2, %v912_v46 }
 0x5e5   :  { %4728 = vmatprep.mubr.msk.bf16.mxu0 %vm5337_vm1, %v5336_v42 }
 0x5fb   :  { %v804_v47 = vpop.xlane.xlu1 %803 }
 0x5fc   :  { %5205 = vrcp.f32 %v804_v47 }
 0x5ff   :  { %v965_v55 = vpop.permute.xlu1 %964 }
 0x600   :  { %v970_v57 = vsel %vm426_vm2, %v965_v55, 0 }
 0x603   :  { %v963_v59 = vpop.permute.xlu1 %962 }
 0x609   :  { %v5206_v51 = vpop.eup %5205 }
 0x60a   :  { %v812_v53 = vmul.f32 %v5206_v51, %v5198_v22 }
 0x60c   :  { %v814_v56 = vpack.c.bf16 %v812_v53, %v811_v52 }
 0x60e   :  { %4711 = vmatmul.mubr.msk.bf16.vlgmr.msra.gmra.mxu1 %vm83_vm0, %v814_v56 }
 0x60f   :  { %4721 = vmatpush3.bf16.xpose.msra.mxu1 %v970_v57  ;;  %4722 = vmatprep.mubr.msk.bf16.mxu1 %vm5337_vm1, %v5336_v42 }
 0x610   :  { %4732 = vmatprep.subr.bf16.mxu1 %v5336_v42 }
 0x616   :  { %4723 = vmatmul.mubr.msk.bf16.vlgmr.msra.gmra.mxu1 %vm426_vm2, %v963_v59 }
 0x617   :  { %4734 = vmatprep.mubr.msk.bf16.mxu1 %vm5337_vm1, %v5336_v42 }
 0x69c   :  { %v5670_v61 = vpop.f32.mrf.mxu0 }
 0x69e   :  { %v4706_v62 = vpop.f32.mrf.mxu0 }
 0x6a0   :  { %v5672_v63 = vpop.f32.mrf.mxu0 }
 0x6a1   :  { %v4944_v0 = vpack.i.bf16 %v5672_v63, %v5670_v61 }
 0x6a2   :  { %v4707_v1 = vpop.f32.mrf.mxu0 }
 0x6a4   :  { %v955_v2 = vpop.f32.mrf.mxu0 }
 0x6a5   :  { %v1013_v3 = vmul.f32 0.17677669, %v955_v2 }
 0x6a6   :  { %v4718_v4 = vpop.f32.mrf.mxu0 }
 0x6a7   :  { %v1017_v5 = vsel %vm83_vm0, %v1013_v3, -inf }
 0x6a8   :  { %1018 = vmax.xlane.f32.xlu0 %v1017_v5  ;;  %v958_v6 = vpop.f32.mrf.mxu0 }
 0x6a9   :  { %v1014_v7 = vmul.f32 0.17677669, %v958_v6 }
 0x6aa   :  { %v4719_v8 = vpop.f32.mrf.mxu0 }
 0x6ab   :  { %v1020_v9 = vsel %vm83_vm0, %v1014_v7, -inf }
 0x6ac   :  { %1021 = vmax.xlane.f32.xlu1 %v1020_v9 }
 0x6ce   :  { %v5678_v13 = vpop.f32.mrf.mxu1 }
 0x6d0   :  { %v4712_v14 = vpop.f32.mrf.mxu1 }
 0x6d2   :  { %v5680_v15 = vpop.f32.mrf.mxu1 }
 0x6d3   :  { %v4949_v16 = vpack.i.bf16 %v5680_v15, %v5678_v13 }
 0x6d4   :  { %v4713_v17 = vpop.f32.mrf.mxu1 }
 0x6d6   :  { %v1006_v20 = vpop.f32.mrf.mxu1 }
 0x6d7   :  { %v1015_v21 = vmul.f32 0.17677669, %v1006_v20 }
 0x6d8   :  { %v4724_v22 = vpop.f32.mrf.mxu1 }
 0x6d9   :  { %v1023_v23 = vsel %vm83_vm0, %v1015_v21, -inf }
 0x6da   :  { %v1009_v24 = vpop.f32.mrf.mxu1  ;;  %1024 = vmax.xlane.f32.xlu0 %v1023_v23 }
 0x6db   :  { %v1016_v25 = vmul.f32 0.17677669, %v1009_v24 }
 0x6dc   :  { %v4725_v26 = vpop.f32.mrf.mxu1 }
 0x6dd   :  { %v1026_v28 = vsel %vm83_vm0, %v1016_v25, -inf }
 0x6de   :  { %1027 = vmax.xlane.f32.xlu0 %v1026_v28 }
 0x731   :  { %v1019_v30 = vpop.xlane.xlu0 %1018 }
 0x732   :  { %v1029_v32 = vsub.f32 %v1013_v3, %v1019_v30 }
 0x734   :  { %v1033_v33 = vmul.f32 1.442695, %v1029_v32 }
 0x735   :  { %v1022_v34 = vpop.xlane.xlu1 %1021 }
 0x736   :  { %5207 = vpow2.f32 %v1033_v33  ;;  %v1030_v36 = vsub.f32 %v1014_v7, %v1022_v34 }
 0x738   :  { %v1035_v40 = vmul.f32 1.442695, %v1030_v36 }
 0x73a   :  { %5209 = vpow2.f32 %v1035_v40 }
 0x743   :  { %v5208_v41 = vpop.eup %5207 }
 0x744   :  { %v1041_v43 = vsel %vm83_vm0, %v5208_v41, 0.0 }
 0x745   :  { %1042 = vadd.xlane.f32.xlu0 %v1041_v43 }
 0x747   :  { %v5210_v46 = vpop.eup %5209 }
 0x748   :  { %v1044_v47 = vsel %vm83_vm0, %v5210_v46, 0.0 }
 0x749   :  { %1045 = vadd.xlane.f32.xlu1 %v1044_v47 }
 0x75a   :  { %1110 = vrot.lane.b32.xlu1 %v5584_v19, %s5339_s1 }
 0x75e   :  { %1159 = vrot.lane.b32.xlu1 %v5559_v60, %s5340_s30 }
 0x763   :  { %v1025_v49 = vpop.xlane.xlu0 %1024 }
 0x764   :  { %v1031_v51 = vsub.f32 %v1015_v21, %v1025_v49 }
 0x766   :  { %v1037_v52 = vmul.f32 1.442695, %v1031_v51 }
 0x767   :  { %v1028_v53 = vpop.xlane.xlu0 %1027 }
 0x768   :  { %5211 = vpow2.f32 %v1037_v52  ;;  %v1032_v55 = vsub.f32 %v1016_v25, %v1028_v53 }
 0x76a   :  { %v1039_v56 = vmul.f32 1.442695, %v1032_v55 }
 0x76c   :  { %5213 = vpow2.f32 %v1039_v56 }
 0x775   :  { %v5212_v57 = vpop.eup %5211 }
 0x776   :  { %v1047_v59 = vsel %vm83_vm0, %v5212_v57, 0.0 }
 0x777   :  { %1048 = vadd.xlane.f32.xlu0 %v1047_v59 }
 0x779   :  { %v5214_v62 = vpop.eup %5213 }
 0x77a   :  { %v1050_v1 = vsel %vm83_vm0, %v5214_v62, 0.0 }
 0x782   :  { %1051 = vadd.xlane.f32.xlu1 %v1050_v1 }
 0x78d   :  { %1063 = vrot.lane.b32.xlu0 %v5571_v12, %s5339_s1 }
 0x791   :  { %1157 = vrot.lane.b32.xlu0 %v5567_v10, %s5340_s30 }
 0x793   :  { %1210 = vrot.lane.b32.xlu1 %v5569_v11, %s5340_s30 }
 0x797   :  { %1208 = vrot.lane.b32.xlu1 %v5582_v18, %s5340_s30 }
 0x7ce   :  { %v1043_v3 = vpop.xlane.xlu0 %1042 }
 0x7d2   :  { %v1046_v60 = vpop.xlane.xlu1 %1045 }
 0x7d3   :  { %5215 = vrcp.f32 %v1046_v60 }
 0x7d4   :  { %5217 = vrcp.f32 %v1043_v3 }
 0x7d6   :  { %v1111_v2 = vpop.permute.xlu1 %1110 }
 0x7d7   :  { %4733 = vmatpush3.bf16.msra.mxu1 %v1111_v2 }
 0x7d8   :  { %4744 = vmatprep.subr.bf16.mxu1 %v5336_v42 }
 0x7da   :  { %v1160_v9 = vpop.permute.xlu1 %1159 }
 0x7db   :  { %v1165_v18 = vsel %vm426_vm2, %v1160_v9, 0 }
 0x7e0   :  { %v5216_v4 = vpop.eup %5215 }
 0x7e1   :  { %v5218_v6 = vpop.eup %5217  ;;  %v1058_v7 = vmul.f32 %v5216_v4, %v5210_v46 }
 0x7e2   :  { %v1057_v10 = vmul.f32 %v5218_v6, %v5208_v41 }
 0x7e4   :  { %v1061_v11 = vpack.c.bf16 %v1058_v7, %v1057_v10 }
 0x800   :  { %v1049_v5 = vpop.xlane.xlu0 %1048 }
 0x801   :  { %5219 = vrcp.f32 %v1049_v5 }
 0x804   :  { %v1064_v8 = vpop.permute.xlu0 %1063 }
 0x805   :  { %4727 = vmatpush3.bf16.msra.mxu0 %v1064_v8 }
 0x806   :  { %4738 = vmatprep.subr.bf16.mxu0 %v5336_v42 }
 0x808   :  { %4729 = vmatmul.mubr.msk.bf16.vlgmr.msra.gmra.mxu0 %vm83_vm0, %v1061_v11  ;;  %v1158_v17 = vpop.permute.xlu0 %1157 }
 0x809   :  { %4739 = vmatpush3.bf16.xpose.msra.mxu0 %v1165_v18  ;;  %4740 = vmatprep.mubr.msk.bf16.mxu0 %vm5337_vm1, %v5336_v42 }
 0x80a   :  { %4750 = vmatprep.subr.bf16.mxu0 %v5336_v42 }
 0x80b   :  { %v1052_v14 = vpop.xlane.xlu1 %1051 }
 0x80c   :  { %5221 = vrcp.f32 %v1052_v14 }
 0x80e   :  { %v5220_v20 = vpop.eup %5219 }
 0x80f   :  { %v1059_v22 = vmul.f32 %v5220_v20, %v5212_v57  ;;  %v1211_v24 = vpop.permute.xlu1 %1210 }
 0x810   :  { %4741 = vmatmul.mubr.msk.bf16.vlgmr.msra.gmra.mxu0 %vm426_vm2, %v1158_v17  ;;  %v1216_v26 = vsel %vm426_vm2, %v1211_v24, 0 }
 0x811   :  { %4752 = vmatprep.mubr.msk.bf16.mxu0 %vm5337_vm1, %v5336_v42 }
 0x813   :  { %v1209_v28 = vpop.permute.xlu1 %1208 }
 0x819   :  { %v5222_v21 = vpop.eup %5221 }
 0x81a   :  { %v1060_v23 = vmul.f32 %v5222_v21, %v5214_v62 }
 0x81c   :  { %v1062_v25 = vpack.c.bf16 %v1060_v23, %v1059_v22 }
 0x81e   :  { %4735 = vmatmul.mubr.msk.bf16.vlgmr.msra.gmra.mxu1 %vm83_vm0, %v1062_v25 }
 0x81f   :  { %4745 = vmatpush3.bf16.xpose.msra.mxu1 %v1216_v26  ;;  %4746 = vmatprep.mubr.msk.bf16.mxu1 %vm5337_vm1, %v5336_v42 }
 0x820   :  { %4756 = vmatprep.subr.bf16.mxu1 %v5336_v42 }
 0x826   :  { %4747 = vmatmul.mubr.msk.bf16.vlgmr.msra.gmra.mxu1 %vm426_vm2, %v1209_v28 }
 0x827   :  { %4758 = vmatprep.mubr.msk.bf16.mxu1 %vm5337_vm1, %v5336_v42 }
 0x8c8   :  { %v1103_v30 = vpop.f32.mrf.mxu0 }
 0x8ca   :  { %v4730_v32 = vpop.f32.mrf.mxu0 }
 0x8cc   :  { %v1106_v33 = vpop.f32.mrf.mxu0 }
 0x8cd   :  { %v4954_v34 = vpack.i.bf16 %v1106_v33, %v1103_v30 }
 0x8ce   :  { %v4731_v36 = vpop.f32.mrf.mxu0 }
 0x8d0   :  { %v1201_v40 = vpop.f32.mrf.mxu0 }
 0x8d1   :  { %v1259_v41 = vmul.f32 0.17677669, %v1201_v40 }
 0x8d2   :  { %v4742_v43 = vpop.f32.mrf.mxu0 }
 0x8d3   :  { %v1263_v46 = vsel %vm83_vm0, %v1259_v41, -inf }
 0x8d4   :  { %1264 = vmax.xlane.f32.xlu0 %v1263_v46  ;;  %v1204_v47 = vpop.f32.mrf.mxu0 }
 0x8d5   :  { %v1260_v49 = vmul.f32 0.17677669, %v1204_v47 }
 0x8d6   :  { %v4743_v51 = vpop.f32.mrf.mxu0 }
 0x8d7   :  { %v1266_v52 = vsel %vm83_vm0, %v1260_v49, -inf }
 0x8d8   :  { %1267 = vmax.xlane.f32.xlu1 %v1266_v52  ;;  %v5039_v52 = vld [vmem:[%s6499_s5 + $0x38] sm:$0xff]  }
 0x8de   :  { %v1150_v53 = vpop.f32.mrf.mxu1 }
 0x8e0   :  { %v4736_v55 = vpop.f32.mrf.mxu1 }
 0x8e1   :  { %v5041_v55 = vld [vmem:[%s6499_s5 + $0x28] sm:$0xff]  }
 0x8e2   :  { %v1153_v56 = vpop.f32.mrf.mxu1 }
 0x8e3   :  { %v4959_v57 = vpack.i.bf16 %v1153_v56, %v1150_v53  ;;  %v5040_v53 = vld [vmem:[%s6499_s5 + $0x30] sm:$0xff]   ;;  %v5042_v56 = vld [vmem:[%s6499_s5 + $0x20] sm:$0xff]  }
 0x8e4   :  { %v4737_v59 = vpop.f32.mrf.mxu1 }
 0x8e5   :  { %v5044_v59 = vld [vmem:[%s6499_s5 + $0x10] sm:$0xff]  }
 0x8e6   :  { %v1252_v62 = vpop.f32.mrf.mxu1 }
 0x8e7   :  { %v1261_v1 = vmul.f32 0.17677669, %v1252_v62 }
 0x8e8   :  { %v4748_v60 = vpop.f32.mrf.mxu1 }
 0x8e9   :  { %v1269_v2 = vsel %vm83_vm0, %v1261_v1, -inf }
 0x8ea   :  { %v1255_v3 = vpop.f32.mrf.mxu1  ;;  %1270 = vmax.xlane.f32.xlu0 %v1269_v2 }
 0x8eb   :  { %v1262_v4 = vmul.f32 0.17677669, %v1255_v3 }
 0x8ec   :  { %v4749_v5 = vpop.f32.mrf.mxu1 }
 0x8ed   :  { %v1272_v6 = vsel %vm83_vm0, %v1262_v4, -inf  ;;  %v5046_v5 = vld [vmem:[%s6499_s5] sm:$0xff]  }
 0x8ee   :  { %1273 = vmax.xlane.f32.xlu0 %v1272_v6 }
 0x95d   :  { %v1265_v7 = vpop.xlane.xlu0 %1264 }
 0x95e   :  { %v1275_v8 = vsub.f32 %v1259_v41, %v1265_v7 }
 0x960   :  { %v1279_v10 = vmul.f32 1.442695, %v1275_v8 }
 0x961   :  { %v1268_v9 = vpop.xlane.xlu1 %1267 }
 0x962   :  { %5223 = vpow2.f32 %v1279_v10  ;;  %v1276_v11 = vsub.f32 %v1260_v49, %v1268_v9 }
 0x964   :  { %v1281_v18 = vmul.f32 1.442695, %v1276_v11 }
 0x966   :  { %5225 = vpow2.f32 %v1281_v18 }
 0x96f   :  { %v5224_v14 = vpop.eup %5223 }
 0x970   :  { %v1287_v17 = vsel %vm83_vm0, %v5224_v14, 0.0 }
 0x971   :  { %1288 = vadd.xlane.f32.xlu0 %v1287_v17 }
 0x973   :  { %v5226_v20 = vpop.eup %5225  ;;  %v1271_v21 = vpop.xlane.xlu0 %1270 }
 0x974   :  { %v1277_v22 = vsub.f32 %v1261_v1, %v1271_v21  ;;  %v1290_v23 = vsel %vm83_vm0, %v5226_v20, 0.0  ;;  %v5045_v1 = vld [vmem:[%s6499_s5 + $0x8] sm:$0xff]  }
 0x975   :  { %1291 = vadd.xlane.f32.xlu1 %v1290_v23 }
 0x976   :  { %v1283_v24 = vmul.f32 1.442695, %v1277_v22 }
 0x977   :  { %v1274_v25 = vpop.xlane.xlu0 %1273 }
 0x978   :  { %5227 = vpow2.f32 %v1283_v24  ;;  %v1278_v26 = vsub.f32 %v1262_v4, %v1274_v25 }
 0x97a   :  { %v1285_v28 = vmul.f32 1.442695, %v1278_v26 }
 0x97c   :  { %5229 = vpow2.f32 %v1285_v28 }
 0x985   :  { %v5228_v30 = vpop.eup %5227 }
 0x986   :  { %v1293_v32 = vsel %vm83_vm0, %v5228_v30, 0.0 }
 0x987   :  { %1294 = vadd.xlane.f32.xlu0 %v1293_v32 }
 0x989   :  { %v5230_v33 = vpop.eup %5229 }
 0x98a   :  { %v1296_v36 = vsel %vm83_vm0, %v5230_v33, 0.0 }
 0x98b   :  { %1297 = vadd.xlane.f32.xlu1 %v1296_v36 }
 0x99c   :  { %1356 = vrot.lane.b32.xlu1 %v5584_v19, %s5340_s30 }
 0x99d   :  { %1309 = vrot.lane.b32.xlu0 %v5571_v12, %s5340_s30 }
 0x9a0   :  { %4945 = vrot.lane.b32.xlu1 %v4944_v0, %s5340_s30 }
 0x9a1   :  { %4955 = vrot.lane.b32.xlu0 %v4954_v34, %s5339_s1 }
 0x9a4   :  { %4950 = vrot.lane.b32.xlu1 %v4949_v16, %s5340_s30 }
 0x9a8   :  { %4960 = vrot.lane.b32.xlu1 %v4959_v57, %s5339_s1  ;;  %v5043_v57 = vld [vmem:[%s6499_s5 + $0x18] sm:$0xff]  }
 0x9fa   :  { %v1289_v41 = vpop.xlane.xlu0 %1288 }
 0x9fe   :  { %v1292_v40 = vpop.xlane.xlu1 %1291 }
 0x9ff   :  { %5231 = vrcp.f32 %v1292_v40 }
 0xa00   :  { %5233 = vrcp.f32 %v1289_v41 }
 0xa0c   :  { %v5232_v19 = vpop.eup %5231 }
 0xa0d   :  { %v5234_v43 = vpop.eup %5233  ;;  %v1304_v46 = vmul.f32 %v5232_v19, %v5226_v20 }
 0xa0e   :  { %v1303_v0 = vmul.f32 %v5234_v43, %v5224_v14 }
 0xa10   :  { %v1295_v12 = vpop.xlane.xlu0 %1294  ;;  %v1307_v34 = vpack.c.bf16 %v1304_v46, %v1303_v0 }
 0xa11   :  { %5235 = vrcp.f32 %v1295_v12 }
 0xa14   :  { %v1310_v61 = vpop.permute.xlu0 %1309  ;;  %v1298_v63 = vpop.xlane.xlu1 %1297 }
 0xa15   :  { %5237 = vrcp.f32 %v1298_v63  ;;  %4751 = vmatpush3.bf16.msra.mxu0 %v1310_v61 }
 0xa16   :  { %4762 = vmatprep.subr.bf16.mxu0 %v5039_v52 }
 0xa18   :  { %4753 = vmatmul.mubr.msk.bf16.vlgmr.msra.gmra.mxu0 %vm83_vm0, %v1307_v34  ;;  %v1357_v13 = vpop.permute.xlu1 %1356  ;;  %v4956_v17 = vpop.permute.xlu0 %4955 }
 0xa19   :  { %4757 = vmatpush3.bf16.msra.mxu1 %v1357_v13  ;;  %4763 = vmatpush3.bf16.msra.mxu0 %v5039_v52  ;;  %v4958_v22 = vunpack.i.h.bf16 %v4956_v17  ;;  %v4957_v23 = vunpack.i.l.bf16 %v4956_v17 }
 0xa1a   :  { %4764 = vmatprep.subr.bf16.mxu0 %v5040_v53 }
 0xa1c   :  { %v4946_v11 = vpop.permute.xlu1 %4945 }
 0xa1d   :  { %4765 = vmatpush3.bf16.msra.mxu0 %v5040_v53  ;;  %v4948_v18 = vunpack.i.h.bf16 %v4946_v11  ;;  %v4947_v14 = vunpack.i.l.bf16 %v4946_v11 }
 0xa1e   :  { %v5236_v15 = vpop.eup %5235  ;;  %4766 = vmatprep.subr.bf16.mxu0 %v5041_v55 }
 0xa1f   :  { %v1305_v47 = vmul.f32 %v5236_v15, %v5228_v30  ;;  %v1452_v20 = vsel %vm426_vm2, %v5626_v31, %v4948_v18  ;;  %v1451_v21 = vsel %vm426_vm2, %v5624_v29, %v4947_v14 }
 0xa20   :  { %v1456_v28 = vsel %vm1455_vm3, %v1451_v21, %v4957_v23  ;;  %v1457_v30 = vsel %vm1455_vm3, %v1452_v20, %v4958_v22  ;;  %v4951_v36 = vpop.permute.xlu1 %4950  ;;  %v5052_v21 = vld [vmem:[%s6501_s9 + $0x64] ss:$8 sps:$4 sm:$0xff]   ;;  %v5050_v22 = vld [vmem:[%s6501_s9 + $0x60] ss:$8 sps:$4 sm:$0xff]   ;;  %v5055_v23 = vld [vmem:[%s6501_s9 + $0x54] ss:$8 sps:$4 sm:$0xff]  }
 0xa21   :  { %4767 = vmatpush3.bf16.msra.mxu0 %v5041_v55  ;;  %v4953_v29 = vunpack.i.h.bf16 %v4951_v36  ;;  %v4952_v41 = vunpack.i.l.bf16 %v4951_v36  ;;  %v5067_v36 = vld [vmem:[%s6501_s9 + $0x14] ss:$8 sps:$4 sm:$0xff]  }
 0xa22   :  { %v5238_v16 = vpop.eup %5237  ;;  %4768 = vmatprep.subr.bf16.mxu0 %v5042_v56 }
 0xa23   :  { %v1306_v49 = vmul.f32 %v5238_v16, %v5230_v33  ;;  %v1454_v46 = vsel %vm426_vm2, %v5632_v50, %v4953_v29  ;;  %v1453_v61 = vsel %vm426_vm2, %v5630_v48, %v4952_v41  ;;  %v4222_v50 = vld [vmem:[%s6500_s6] ss:$0 sm:$0xff]  ;;  %v5071_v41 = vld [vmem:[%s6502_s11 + $0x78] sm:$0xff]  }
 0xa24   :  { %v4961_v40 = vpop.permute.xlu1 %4960  ;;  %v5068_v29 = vld [vmem:[%s6501_s9] ss:$8 sps:$4 sm:$0xff]  }
 0xa25   :  { %v1308_v51 = vpack.c.bf16 %v1306_v49, %v1305_v47  ;;  %4769 = vmatpush3.bf16.msra.mxu0 %v5042_v56  ;;  %v4963_v19 = vunpack.i.h.bf16 %v4961_v40  ;;  %v4962_v12 = vunpack.i.l.bf16 %v4961_v40  ;;  %v5070_v40 = vld [vmem:[%s6501_s9 + $0x4] ss:$8 sps:$4 sm:$0xff]  }
 0xa26   :  { %4770 = vmatprep.subr.bf16.mxu0 %v5043_v57 }
 0xa27   :  { %4759 = vmatmul.mubr.msk.bf16.vlgmr.msra.gmra.mxu1 %vm83_vm0, %v1308_v51  ;;  %v1458_v34 = vsel %vm1455_vm3, %v1453_v61, %v4962_v12  ;;  %v1459_v13 = vsel %vm1455_vm3, %v1454_v46, %v4963_v19  ;;  %v5072_v19 = vld [vmem:[%s6502_s11 + $0x38] sm:$0xff]   ;;  %v5073_v12 = vld [vmem:[%s6502_s11 + $0x70] sm:$0xff]   ;;  %v5075_v46 = vld [vmem:[%s6502_s11 + $0x68] sm:$0xff]  }
 0xa28   :  { %1800 = vmatprep.mubr.bf16.mxu1 %v5335_v27  ;;  %v5076_v61 = vld [vmem:[%s6502_s11 + $0x28] sm:$0xff]  }
 0xa29   :  { %4771 = vmatpush3.bf16.msra.mxu0 %v5043_v57 }
 0xa2a   :  { %4772 = vmatprep.subr.bf16.mxu0 %v5044_v59 }
 0xa2d   :  { %4773 = vmatpush3.bf16.msra.mxu0 %v5044_v59 }
 0xa2e   :  { %4774 = vmatprep.subr.bf16.mxu0 %v5045_v1 }
 0xa31   :  { %4775 = vmatpush3.bf16.msra.mxu0 %v5045_v1 }
 0xa32   :  { %4776 = vmatprep.subr.bf16.mxu0 %v5046_v5 }
 0xa35   :  { %4777 = vmatpush3.bf16.msra.mxu0 %v5046_v5 }
 0xa36   :  { %4522 = vmatprep.subr.bf16.mxu0 %v5071_v41 }
 0xad8   :  { %v1349_v62 = vpop.f32.mrf.mxu0 }
 0xada   :  { %v4754_v60 = vpop.f32.mrf.mxu0 }
 0xadc   :  { %v1352_v2 = vpop.f32.mrf.mxu0 }
 0xadd   :  { %v4964_v3 = vpack.i.bf16 %v1352_v2, %v1349_v62  ;;  %v5047_v2 = vld [vmem:[%s6501_s9 + $0x70] ss:$8 sps:$4 sm:$0xff]  }
 0xade   :  { %v4755_v4 = vpop.f32.mrf.mxu0 }
 0xadf   :  { %4965 = vrot.lane.b32.xlu0 %v4964_v3, %s5338_s29 }
 0xae7   :  { %v1396_v6 = vpop.f32.mrf.mxu1 }
 0xae9   :  { %v4760_v7 = vpop.f32.mrf.mxu1 }
 0xaeb   :  { %v1399_v8 = vpop.f32.mrf.mxu1 }
 0xaec   :  { %v4969_v10 = vpack.i.bf16 %v1399_v8, %v1396_v6 }
 0xaed   :  { %v4761_v9 = vpop.f32.mrf.mxu1 }
 0xaee   :  { %4970 = vrot.lane.b32.xlu1 %v4969_v10, %s5338_s29 }
 0xb51   :  { %v4966_v24 = vpop.permute.xlu0 %4965 }
 0xb52   :  { %v4968_v25 = vunpack.i.h.bf16 %v4966_v24  ;;  %v4967_v26 = vunpack.i.l.bf16 %v4966_v24  ;;  %v5053_v24 = vld [vmem:[%s6501_s9 + $0x50] ss:$8 sps:$4 sm:$0xff]  }
 0xb54   :  { %v1461_v32 = vsel %vm1460_vm4, %v1456_v28, %v4967_v26  ;;  %v1462_v33 = vsel %vm1460_vm4, %v1457_v30, %v4968_v25  ;;  %v5058_v25 = vld [vmem:[%s6501_s9 + $0x44] ss:$8 sps:$4 sm:$0xff]   ;;  %v5056_v26 = vld [vmem:[%s6501_s9 + $0x40] ss:$8 sps:$4 sm:$0xff]   ;;  %v5059_v28 = vld [vmem:[%s6501_s9 + $0x30] ss:$8 sps:$4 sm:$0xff]  }
 0xb55   :  { %v1465_v31 = vpack.c.bf16 %v1462_v33, %v1461_v32  ;;  %v5061_v30 = vld [vmem:[%s6501_s9 + $0x34] ss:$8 sps:$4 sm:$0xff]   ;;  %v5064_v32 = vld [vmem:[%s6501_s9 + $0x24] ss:$8 sps:$4 sm:$0xff]   ;;  %v5062_v33 = vld [vmem:[%s6501_s9 + $0x20] ss:$8 sps:$4 sm:$0xff]  }
 0xb57   :  { %4778 = vmatprep.mubr.bf16.mxu0 %v1465_v31  ;;  %v5065_v31 = vld [vmem:[%s6501_s9 + $0x10] ss:$8 sps:$4 sm:$0xff]  }
 0xb60   :  { %v4971_v43 = vpop.permute.xlu1 %4970 }
 0xb61   :  { %v4973_v63 = vunpack.i.h.bf16 %v4971_v43  ;;  %v4972_v0 = vunpack.i.l.bf16 %v4971_v43  ;;  %v5074_v43 = vld [vmem:[%s6502_s11 + $0x30] sm:$0xff]  }
 0xb63   :  { %v1463_v15 = vsel %vm1460_vm4, %v1458_v34, %v4972_v0  ;;  %v1464_v16 = vsel %vm1460_vm4, %v1459_v13, %v4973_v63  ;;  %v5077_v63 = vld [vmem:[%s6502_s11 + $0x60] sm:$0xff]   ;;  %v5079_v34 = vld [vmem:[%s6502_s11 + $0x58] sm:$0xff]  }
 0xb64   :  { %v1466_v47 = vpack.c.bf16 %v1464_v16, %v1463_v15  ;;  %v5078_v0 = vld [vmem:[%s6502_s11 + $0x20] sm:$0xff]   ;;  %v5080_v13 = vld [vmem:[%s6502_s11 + $0x18] sm:$0xff]  }
 0xb66   :  { %4779 = vmatmul.mubr.bf16.vlgmr.msra.gmra.mxu0 %v1466_v47 }
 0xb67   :  { %4523 = vmatpush3.bf16.msra.mxu0 %v5072_v19 }
 0xb68   :  { %4524 = vmatprep.subr.bf16.mxu0 %v5073_v12 }
 0xb6b   :  { %4525 = vmatpush3.bf16.msra.mxu0 %v5074_v43 }
 0xb6c   :  { %4526 = vmatprep.subr.bf16.mxu0 %v5075_v46 }
 0xb6f   :  { %4527 = vmatpush3.bf16.msra.mxu0 %v5076_v61 }
 0xb70   :  { %4528 = vmatprep.subr.bf16.mxu0 %v5077_v63 }
 0xb73   :  { %4529 = vmatpush3.bf16.msra.mxu0 %v5078_v0 }
 0xb74   :  { %4530 = vmatprep.subr.bf16.mxu0 %v5079_v34 }
 0xb77   :  { %4531 = vmatpush3.bf16.msra.mxu0 %v5080_v13 }
 0xc26   :  { %v4780_v49 = vpop.f32.mrf.mxu0 }
 0xc27   :  { %v1581_v53 = vadd.f32 %v4780_v49, %v4222_v50 }
 0xc28   :  { %v1572_v51 = vpop.f32.mrf.mxu0 }
 0xc29   :  { %v1573_v52 = vadd.f32 %v4222_v50, %v1572_v51  ;;  %v1589_v1 = vadd.f32 %v1581_v53, %v5533_v39 }
 0xc2a   :  { %v4781_v48 = vpop.f32.mrf.mxu0 }
 0xc2b   :  { %v1587_v55 = vadd.f32 %v1573_v52, %v5529_v37  ;;  %v1584_v59 = vadd.f32 %v4781_v48, %v4222_v50  ;;  %v5049_v37 = vld [vmem:[%s6501_s9 + $0x74] ss:$8 sps:$4 sm:$0xff]  }
 0xc2c   :  { %v1575_v56 = vpop.f32.mrf.mxu0  ;;  %1768 = vmatprep.subr.bf16.mxu1 %v5049_v37 }
 0xc2d   :  { %v1576_v57 = vadd.f32 %v4222_v50, %v1575_v56  ;;  %1593 = vadd.xlane.f32.xlu0 %v1587_v55  ;;  %v1590_v60 = vadd.f32 %v1584_v59, %v5527_v35  ;;  %1769 = vmatpush1.bf16.msra.mxu1 %v5047_v2 }
 0xc2e   :  { %1770 = vmatprep.subr.bf16.mxu1 %v5052_v21  ;;  %v5083_v21 = vld [vmem:[%s6502_s11 + $0x48] sm:$0xff]  }
 0xc2f   :  { %v1588_v62 = vadd.f32 %v1576_v57, %v5531_v38 }
 0xc31   :  { %1595 = vadd.xlane.f32.xlu1 %v1588_v62  ;;  %1597 = vadd.xlane.f32.xlu0 %v1589_v1 }
 0xc32   :  { %1771 = vmatpush1.bf16.msra.mxu1 %v5050_v22  ;;  %v5084_v22 = vld [vmem:[%s6502_s11 + $0x8] sm:$0xff]  }
 0xc33   :  { %1772 = vmatprep.subr.bf16.mxu1 %v5055_v23  ;;  %v5085_v23 = vld [vmem:[%s6502_s11 + $0x40] sm:$0xff]  }
 0xc35   :  { %1599 = vadd.xlane.f32.xlu0 %v1590_v60 }
 0xc36   :  { %1773 = vmatpush1.bf16.msra.mxu1 %v5053_v24  ;;  %v5086_v24 = vld [vmem:[%s6502_s11] sm:$0xff]  }
 0xc37   :  { %1774 = vmatprep.subr.bf16.mxu1 %v5058_v25  ;;  %v1676_v25 = vld [vmem:[%s6505_s10] sm:$0x3] }
 0xc3a   :  { %1775 = vmatpush1.bf16.msra.mxu1 %v5056_v26 }
 0xc3b   :  { %1776 = vmatprep.subr.bf16.mxu1 %v5061_v30  ;;  %v1681_v30 = vrot.slane %v1676_v25, %v5556_v54 }
 0xc3e   :  { %1777 = vmatpush1.bf16.msra.mxu1 %v5059_v28  ;;  %v1685_v28 = vrot.slane %v1676_v25, %v5549_v45 }
 0xc3f   :  { %1778 = vmatprep.subr.bf16.mxu1 %v5064_v32 }
 0xc42   :  { %1779 = vmatpush1.bf16.msra.mxu1 %v5062_v33 }
 0xc43   :  { %1780 = vmatprep.subr.bf16.mxu1 %v5067_v36 }
 0xc46   :  { %1781 = vmatpush1.bf16.msra.mxu1 %v5065_v31 }
 0xc47   :  { %1782 = vmatprep.subr.bf16.mxu1 %v5070_v40 }
 0xc4a   :  { %1783 = vmatpush1.bf16.msra.mxu1 %v5068_v29 }
 0xcb6   :  { %v1594_v3 = vpop.xlane.xlu0 %1593 }
 0xcb7   :  { %v1602_v4 = vmul.f32 0.0078125, %v1594_v3 }
 0xcb9   :  { %v5800_v38 = vsub.f32 %v1587_v55, %v1602_v4  ;;  %v4232_v4 = vld [vmem:[%s6504_s8] ss:$0 sm:$0xff] }
 0xcba   :  { %v1596_v39 = vpop.xlane.xlu1 %1595  ;;  %v1598_v5 = vpop.xlane.xlu0 %1597 }
 0xcbb   :  { %v1603_v6 = vmul.f32 0.0078125, %v1596_v39  ;;  %v1604_v7 = vmul.f32 0.0078125, %v1598_v5  ;;  %v1610_v35 = vmul.f32 %v5800_v38, %v5800_v38 }
 0xcbd   :  { %v5804_v8 = vsub.f32 %v1588_v62, %v1603_v6  ;;  %v5806_v10 = vsub.f32 %v1589_v1, %v1604_v7  ;;  %1614 = vadd.xlane.f32.xlu0 %v1610_v35  ;;  %v4231_v1 = vld [vmem:[%s6503_s7] ss:$0 sm:$0xff] }
 0xcbe   :  { %v1600_v9 = vpop.xlane.xlu0 %1599 }
 0xcbf   :  { %v1605_v11 = vmul.f32 0.0078125, %v1600_v9  ;;  %v1611_v18 = vmul.f32 %v5804_v8, %v5804_v8  ;;  %v1612_v14 = vmul.f32 %v5806_v10, %v5806_v10 }
 0xcc1   :  { %v5812_v17 = vsub.f32 %v1590_v60, %v1605_v11  ;;  %1616 = vadd.xlane.f32.xlu1 %v1611_v18  ;;  %1618 = vadd.xlane.f32.xlu0 %v1612_v14 }
 0xcc3   :  { %v1613_v20 = vmul.f32 %v5812_v17, %v5812_v17 }
 0xcc5   :  { %1620 = vadd.xlane.f32.xlu1 %v1613_v20 }
 0xd46   :  { %v1615_v15 = vpop.xlane.xlu0 %1614 }
 0xd47   :  { %v1622_v16 = vmul.f32 0.0078125, %v1615_v15 }
 0xd49   :  { %v1626_v47 = vadd.f32 1e-05, %v1622_v16 }
 0xd4a   :  { %v1617_v49 = vpop.xlane.xlu1 %1616  ;;  %v1619_v50 = vpop.xlane.xlu0 %1618 }
 0xd4b   :  { %5239 = vrsqrt.f32 %v1626_v47  ;;  %v1623_v51 = vmul.f32 0.0078125, %v1617_v49  ;;  %v1624_v52 = vmul.f32 0.0078125, %v1619_v50 }
 0xd4d   :  { %v1627_v48 = vadd.f32 1e-05, %v1623_v51  ;;  %v1628_v53 = vadd.f32 1e-05, %v1624_v52 }
 0xd4e   :  { %v1621_v55 = vpop.xlane.xlu1 %1620 }
 0xd4f   :  { %5241 = vrsqrt.f32 %v1627_v48  ;;  %v1625_v56 = vmul.f32 0.0078125, %v1621_v55 }
 0xd50   :  { %5243 = vrsqrt.f32 %v1628_v53 }
 0xd51   :  { %v1629_v57 = vadd.f32 1e-05, %v1625_v56 }
 0xd53   :  { %5245 = vrsqrt.f32 %v1629_v57 }
 0xd58   :  { %v5240_v59 = vpop.eup %5239 }
 0xd59   :  { %v1634_v62 = vmul.f32 %v5240_v59, %v5800_v38  ;;  %v4249_v59 = vld [vmem:[%s6506_s12] ss:$0 sm:$0xff] }
 0xd5b   :  { %v1644_v37 = vmul.f32 %v4231_v1, %v1634_v62 }
 0xd5c   :  { %v5242_v60 = vpop.eup %5241 }
 0xd5d   :  { %v1635_v2 = vmul.f32 %v5242_v60, %v5804_v8  ;;  %v5244_v3 = vpop.eup %5243  ;;  %v5896_v6 = vadd.f32 %v4232_v4, %v1644_v37 }
 0xd5e   :  { %v1636_v38 = vmul.f32 %v5244_v3, %v5806_v10  ;;  %v5081_v10 = vld [vmem:[%s6502_s11 + $0x50] sm:$0xff]  }
 0xd5f   :  { %v1645_v39 = vmul.f32 %v4231_v1, %v1635_v2  ;;  %4532 = vmatprep.subr.bf16.mxu0 %v5081_v10 }
 0xd60   :  { %v5246_v5 = vpop.eup %5245  ;;  %v1646_v11 = vmul.f32 %v4231_v1, %v1636_v38 }
 0xd61   :  { %v5898_v7 = vadd.f32 %v4232_v4, %v1645_v39  ;;  %v1637_v35 = vmul.f32 %v5246_v5, %v5812_v17  ;;  %v5082_v17 = vld [vmem:[%s6502_s11 + $0x10] sm:$0xff]  }
 0xd62   :  { %v5907_v14 = vadd.f32 %v4232_v4, %v1646_v11  ;;  %4533 = vmatpush3.bf16.msra.mxu0 %v5082_v17 }
 0xd63   :  { %v1658_v9 = vpack.c.bf16 %v5898_v7, %v5896_v6  ;;  %v1647_v8 = vmul.f32 %v4231_v1, %v1637_v35  ;;  %4534 = vmatprep.subr.bf16.mxu0 %v5083_v21 }
 0xd65   :  { %1801 = vmatmul.mubr.bf16.vlgmr.msra.gmra.mxu1 %v1658_v9  ;;  %v5905_v18 = vadd.f32 %v4232_v4, %v1647_v8 }
 0xd66   :  { %1810 = vmatprep.mubr.bf16.mxu1 %v5335_v27  ;;  %4535 = vmatpush3.bf16.msra.mxu0 %v5084_v22 }
 0xd67   :  { %v1659_v20 = vpack.c.bf16 %v5905_v18, %v5907_v14  ;;  %4536 = vmatprep.subr.bf16.mxu0 %v5085_v23 }
 0xd6a   :  { %4537 = vmatpush3.bf16.msra.mxu0 %v5086_v24 }
 0xd6d   :  { %1811 = vmatmul.mubr.bf16.gmra.mxu1 %v1659_v20 }
 0xd6e   :  { %2300 = vmatprep.mubr.bf16.mxu1 %v5335_v27 }
 0xe25   :  { %v1802_v26 = vpop.f32.mrf.mxu1 }
 0xe26   :  { %v1803_v40 = vadd.f32 %v1802_v26, %v1681_v30 }
 0xe27   :  { %v1804_v32 = vpop.f32.mrf.mxu1 }
 0xe28   :  { %v1805_v36 = vadd.f32 %v1804_v32, %v1685_v28  ;;  %v1821_v61 = vmax.f32 %v1803_v40, 0.0 }
 0xe29   :  { %v1806_v33 = vpop.f32.mrf.mxu1 }
 0xe2a   :  { %v1807_v31 = vadd.f32 %v1806_v33, %v1681_v30  ;;  %v1822_v43 = vmax.f32 %v1805_v36, 0.0 }
 0xe2b   :  { %v1808_v29 = vpop.f32.mrf.mxu1 }
 0xe2c   :  { %v1809_v41 = vadd.f32 %v1808_v29, %v1685_v28  ;;  %v1823_v19 = vmax.f32 %v1807_v31, 0.0 }
 0xe2d   :  { %v1812_v12 = vpop.f32.mrf.mxu1 }
 0xe2e   :  { %v1824_v46 = vmax.f32 %v1809_v41, 0.0  ;;  %v1829_v34 = vpack.c.bf16 %v1823_v19, %v1821_v61  ;;  %v1813_v47 = vadd.f32 %v1812_v12, %v1681_v30  ;;  %v5092_v12 = vld [vmem:[%s6496_s3 + $0x154] ss:$12 sps:$4 sm:$0xff]   ;;  %v5096_v61 = vld [vmem:[%s6496_s3 + $0x170] ss:$12 sps:$4 sm:$0xff]  }
 0xe2f   :  { %v1814_v63 = vpop.f32.mrf.mxu1  ;;  %4782 = vmatprep.subr.bf16.mxu0 %v5096_v61 }
 0xe30   :  { %v1830_v0 = vpack.c.bf16 %v1824_v46, %v1822_v43  ;;  %v1815_v15 = vadd.f32 %v1814_v63, %v1685_v28  ;;  %v1825_v53 = vmax.f32 %v1813_v47, 0.0  ;;  %v5090_v43 = vld [vmem:[%s6496_s3 + $0x150] ss:$12 sps:$4 sm:$0xff]   ;;  %v5093_v63 = vld [vmem:[%s6496_s3 + $0x138] ss:$12 sps:$4 sm:$0xff]  }
 0xe31   :  { %v1816_v13 = vpop.f32.mrf.mxu1  ;;  %v5095_v46 = vld [vmem:[%s6496_s3 + $0x13c] ss:$12 sps:$4 sm:$0xff]  }
 0xe32   :  { %v1817_v16 = vadd.f32 %v1816_v13, %v1681_v30  ;;  %2000 = vmatprep.mubr.bf16.mxu0 %v1830_v0  ;;  %v1826_v52 = vmax.f32 %v1815_v15, 0.0  ;;  %v5099_v0 = vld [vmem:[%s6496_s3 + $0x124] ss:$12 sps:$4 sm:$0xff]   ;;  %v5097_v13 = vld [vmem:[%s6496_s3 + $0x120] ss:$12 sps:$4 sm:$0xff]  }
 0xe33   :  { %v1818_v49 = vpop.f32.mrf.mxu1  ;;  %2001 = vmatmul.mubr.bf16.vlgmr.msra.gmra.mxu0 %v1829_v34  ;;  %v5100_v34 = vld [vmem:[%s6496_s3 + $0x158] ss:$12 sps:$4 sm:$0xff]   ;;  %v5101_v47 = vld [vmem:[%s6496_s3 + $0x108] ss:$12 sps:$4 sm:$0xff]  }
 0xe34   :  { %v1819_v50 = vadd.f32 %v1818_v49, %v1685_v28  ;;  %v1827_v51 = vmax.f32 %v1817_v16, 0.0  ;;  %4783 = vmatpush3.bf16.msra.mxu0 %v5096_v61  ;;  %v5103_v15 = vld [vmem:[%s6496_s3 + $0x10c] ss:$12 sps:$4 sm:$0xff]   ;;  %v5107_v49 = vld [vmem:[%s6496_s3 + $0xf4] ss:$12 sps:$4 sm:$0xff]  }
 0xe35   :  { %4784 = vmatprep.subr.bf16.mxu0 %v5100_v34  ;;  %v5104_v16 = vld [vmem:[%s6496_s3 + $0x140] ss:$12 sps:$4 sm:$0xff]  }
 0xe36   :  { %v1828_v48 = vmax.f32 %v1819_v50, 0.0  ;;  %v1831_v56 = vpack.c.bf16 %v1827_v51, %v1825_v53  ;;  %v5108_v50 = vld [vmem:[%s6496_s3 + $0x128] ss:$12 sps:$4 sm:$0xff]   ;;  %v5105_v51 = vld [vmem:[%s6496_s3 + $0xf0] ss:$12 sps:$4 sm:$0xff]  }
 0xe37   :  { %v5109_v53 = vld [vmem:[%s6496_s3 + $0xd8] ss:$12 sps:$4 sm:$0xff]  }
 0xe38   :  { %v1832_v55 = vpack.c.bf16 %v1828_v48, %v1826_v52  ;;  %4785 = vmatpush3.bf16.msra.mxu0 %v5100_v34  ;;  %v5111_v52 = vld [vmem:[%s6496_s3 + $0xdc] ss:$12 sps:$4 sm:$0xff]  }
 0xe39   :  { %4786 = vmatprep.subr.bf16.mxu0 %v5104_v16  ;;  %v5112_v48 = vld [vmem:[%s6496_s3 + $0x110] ss:$12 sps:$4 sm:$0xff]  }
 0xe3a   :  { %2008 = vmatprep.mubr.bf16.mxu0 %v1832_v55  ;;  %v5115_v55 = vld [vmem:[%s6496_s3 + $0xc4] ss:$12 sps:$4 sm:$0xff]  }
 0xe3b   :  { %2009 = vmatmul.mubr.bf16.gmra.mxu0 %v1831_v56  ;;  %v5116_v56 = vld [vmem:[%s6496_s3 + $0xf8] ss:$12 sps:$4 sm:$0xff]  }
 0xe3c   :  { %4787 = vmatpush3.bf16.msra.mxu0 %v5104_v16 }
 0xe3d   :  { %4788 = vmatprep.subr.bf16.mxu0 %v5108_v50 }
 0xe40   :  { %4789 = vmatpush3.bf16.msra.mxu0 %v5108_v50 }
 0xe41   :  { %4790 = vmatprep.subr.bf16.mxu0 %v5112_v48 }
 0xe44   :  { %4791 = vmatpush3.bf16.msra.mxu0 %v5112_v48 }
 0xe45   :  { %4792 = vmatprep.subr.bf16.mxu0 %v5116_v56 }
 0xe48   :  { %4793 = vmatpush3.bf16.msra.mxu0 %v5116_v56 }
 0xef3   :  { %v4538_v57 = vpop.f32.mrf.mxu0 }
 0xef5   :  { %v4539_v62 = vpop.f32.mrf.mxu0 }
 0xef6   :  { %v4540_v1 = vadd.f32 %v4539_v62, %v4538_v57  ;;  %v5113_v57 = vld [vmem:[%s6496_s3 + $0xc0] ss:$12 sps:$4 sm:$0xff]   ;;  %v5118_v62 = vld [vmem:[%s6496_s3 + $0xc8] ss:$12 sps:$4 sm:$0xff]  }
 0xef7   :  { %v4541_v60 = vpop.f32.mrf.mxu0 }
 0xef8   :  { %v2003_v2 = vadd.f32 %v4540_v1, %v4249_v59 }
 0xef9   :  { %v4542_v37 = vpop.f32.mrf.mxu0 }
 0xefa   :  { %v4543_v3 = vadd.f32 %v4542_v37, %v4541_v60  ;;  %v2017_v4 = vadd.f32 %v2003_v2, %v5896_v6  ;;  %v5087_v6 = vld [vmem:[%s6496_s3 + $0x168] ss:$12 sps:$4 sm:$0xff]  }
 0xefb   :  { %v4544_v39 = vpop.f32.mrf.mxu0 }
 0xefc   :  { %v2006_v5 = vadd.f32 %v4543_v3, %v4249_v59  ;;  %2023 = vadd.xlane.f32.xlu0 %v2017_v4 }
 0xefd   :  { %v4545_v38 = vpop.f32.mrf.mxu0 }
 0xefe   :  { %v4546_v35 = vadd.f32 %v4545_v38, %v4544_v39  ;;  %v2018_v9 = vadd.f32 %v2006_v5, %v5898_v7  ;;  %v5089_v7 = vld [vmem:[%s6496_s3 + $0x16c] ss:$12 sps:$4 sm:$0xff]  }
 0xeff   :  { %v4547_v8 = vpop.f32.mrf.mxu0  ;;  %2268 = vmatprep.subr.bf16.mxu1 %v5089_v7 }
 0xf00   :  { %v2011_v11 = vadd.f32 %v4546_v35, %v4249_v59  ;;  %2025 = vadd.xlane.f32.xlu1 %v2018_v9  ;;  %2269 = vmatpush1.bf16.msra.mxu1 %v5087_v6  ;;  %v4267_v6 = vld [vmem:[%s6508_s14] ss:$0 sm:$0xff] }
 0xf01   :  { %v4548_v20 = vpop.f32.mrf.mxu0  ;;  %2270 = vmatprep.subr.bf16.mxu1 %v5092_v12 }
 0xf02   :  { %v4549_v10 = vadd.f32 %v4548_v20, %v4547_v8  ;;  %v2019_v17 = vadd.f32 %v2011_v11, %v5907_v14 }
 0xf04   :  { %v2014_v21 = vadd.f32 %v4549_v10, %v4249_v59  ;;  %2027 = vadd.xlane.f32.xlu0 %v2019_v17  ;;  %2271 = vmatpush1.bf16.msra.mxu1 %v5090_v43  ;;  %v5117_v59 = vld [vmem:[%s6496_s3 + $0xe0] ss:$12 sps:$4 sm:$0xff]  }
 0xf05   :  { %2272 = vmatprep.subr.bf16.mxu1 %v5095_v46  ;;  %4794 = vmatprep.subr.bf16.mxu0 %v5117_v59  ;;  %v4266_v10 = vld [vmem:[%s6507_s13] ss:$0 sm:$0xff] }
 0xf06   :  { %v2020_v22 = vadd.f32 %v2014_v21, %v5905_v18  ;;  %4795 = vmatpush3.bf16.msra.mxu0 %v5117_v59 }
 0xf07   :  { %4796 = vmatprep.subr.bf16.mxu0 %v5118_v62 }
 0xf08   :  { %2029 = vadd.xlane.f32.xlu1 %v2020_v22  ;;  %2273 = vmatpush1.bf16.msra.mxu1 %v5093_v63 }
 0xf09   :  { %2274 = vmatprep.subr.bf16.mxu1 %v5099_v0 }
 0xf0a   :  { %4797 = vmatpush3.bf16.msra.mxu0 %v5118_v62 }
 0xf0b   :  { %4820 = vmatprep.subr.bf16.mxu0 %v5336_v42 }
 0xf0c   :  { %2275 = vmatpush1.bf16.msra.mxu1 %v5097_v13 }
 0xf0d   :  { %2276 = vmatprep.subr.bf16.mxu1 %v5103_v15 }
 0xf10   :  { %2277 = vmatpush1.bf16.msra.mxu1 %v5101_v47 }
 0xf11   :  { %2278 = vmatprep.subr.bf16.mxu1 %v5107_v49 }
 0xf14   :  { %2279 = vmatpush1.bf16.msra.mxu1 %v5105_v51 }
 0xf15   :  { %2280 = vmatprep.subr.bf16.mxu1 %v5111_v52 }
 0xf18   :  { %2281 = vmatpush1.bf16.msra.mxu1 %v5109_v53 }
 0xf19   :  { %2282 = vmatprep.subr.bf16.mxu1 %v5115_v55 }
 0xf1c   :  { %2283 = vmatpush1.bf16.msra.mxu1 %v5113_v57 }
 0xf1d   :  { %4802 = vmatprep.subr.bf16.mxu1 %v5336_v42 }
 0xf85   :  { %v2024_v23 = vpop.xlane.xlu0 %2023 }
 0xf86   :  { %v2031_v24 = vmul.f32 0.0078125, %v2024_v23 }
 0xf88   :  { %v5948_v25 = vsub.f32 %v2017_v4, %v2031_v24 }
 0xf89   :  { %v2026_v14 = vpop.xlane.xlu1 %2025 }
 0xf8a   :  { %v2032_v26 = vmul.f32 0.0078125, %v2026_v14  ;;  %v2039_v18 = vmul.f32 %v5948_v25, %v5948_v25 }
 0xf8c   :  { %v5952_v28 = vsub.f32 %v2018_v9, %v2032_v26  ;;  %2043 = vadd.xlane.f32.xlu0 %v2039_v18 }
 0xf8d   :  { %v2028_v30 = vpop.xlane.xlu0 %2027 }
 0xf8e   :  { %v2033_v32 = vmul.f32 0.0078125, %v2028_v30  ;;  %v2040_v33 = vmul.f32 %v5952_v28, %v5952_v28 }
 0xf90   :  { %v5956_v36 = vsub.f32 %v2019_v17, %v2033_v32  ;;  %2045 = vadd.xlane.f32.xlu1 %v2040_v33 }
 0xf91   :  { %v2030_v31 = vpop.xlane.xlu1 %2029 }
 0xf92   :  { %v2034_v40 = vmul.f32 0.0078125, %v2030_v31  ;;  %v2041_v29 = vmul.f32 %v5956_v36, %v5956_v36 }
 0xf94   :  { %v5960_v41 = vsub.f32 %v2020_v22, %v2034_v40  ;;  %2047 = vadd.xlane.f32.xlu0 %v2041_v29  ;;  %v4300_v29 = vld [vmem:[%s6498_s4 + $0x3] sm:$0x7] }
 0xf95   :  { %v2136_v13 = vrot.slane %v4300_v29, %v185_v58  ;;  %v2128_v47 = vrot.slane %v4300_v29, %v5556_v54 }
 0xf96   :  { %v2042_v19 = vmul.f32 %v5960_v41, %v5960_v41 }
 0xf98   :  { %2049 = vadd.xlane.f32.xlu1 %v2042_v19  ;;  %v2132_v19 = vrot.slane %v4300_v29, %v5549_v45 }
0x1015   :  { %v2044_v1 = vpop.xlane.xlu0 %2043 }
0x1016   :  { %v2051_v60 = vmul.f32 0.0078125, %v2044_v1 }
0x1018   :  { %v2055_v2 = vadd.f32 1e-05, %v2051_v60 }
0x1019   :  { %v2046_v37 = vpop.xlane.xlu1 %2045 }
0x101a   :  { %5247 = vrsqrt.f32 %v2055_v2  ;;  %v2052_v3 = vmul.f32 0.0078125, %v2046_v37 }
0x101c   :  { %v2056_v4 = vadd.f32 1e-05, %v2052_v3 }
0x101d   :  { %v2048_v39 = vpop.xlane.xlu0 %2047 }
0x101e   :  { %5249 = vrsqrt.f32 %v2056_v4  ;;  %v2053_v5 = vmul.f32 0.0078125, %v2048_v39 }
0x1020   :  { %v2057_v38 = vadd.f32 1e-05, %v2053_v5 }
0x1021   :  { %v2050_v35 = vpop.xlane.xlu1 %2049 }
0x1022   :  { %5251 = vrsqrt.f32 %v2057_v38  ;;  %v2054_v9 = vmul.f32 0.0078125, %v2050_v35 }
0x1024   :  { %v2058_v8 = vadd.f32 1e-05, %v2054_v9 }
0x1026   :  { %5253 = vrsqrt.f32 %v2058_v8 }
0x1027   :  { %v5248_v11 = vpop.eup %5247 }
0x1028   :  { %v2063_v20 = vmul.f32 %v5248_v11, %v5948_v25 }
0x102a   :  { %v2073_v22 = vmul.f32 %v4266_v10, %v2063_v20 }
0x102b   :  { %v5250_v17 = vpop.eup %5249 }
0x102c   :  { %v2064_v21 = vmul.f32 %v5250_v17, %v5952_v28  ;;  %v6040_v24 = vadd.f32 %v4267_v6, %v2073_v22 }
0x102e   :  { %v2074_v7 = vmul.f32 %v4266_v10, %v2064_v21 }
0x102f   :  { %v5252_v23 = vpop.eup %5251 }
0x1030   :  { %v6042_v14 = vadd.f32 %v4267_v6, %v2074_v7  ;;  %v2065_v25 = vmul.f32 %v5252_v23, %v5956_v36 }
0x1032   :  { %v2087_v26 = vpack.c.bf16 %v6042_v14, %v6040_v24  ;;  %v2075_v30 = vmul.f32 %v4266_v10, %v2065_v25 }
0x1033   :  { %v5254_v18 = vpop.eup %5253 }
0x1034   :  { %2301 = vmatmul.mubr.bf16.vlgmr.msra.gmra.mxu1 %v2087_v26  ;;  %4798 = vmatprep.mubr.bf16.mxu0 %v2087_v26  ;;  %v2066_v28 = vmul.f32 %v5254_v18, %v5960_v41  ;;  %v6049_v33 = vadd.f32 %v4267_v6, %v2075_v30 }
0x1035   :  { %2310 = vmatprep.mubr.bf16.mxu1 %v5335_v27 }
0x1036   :  { %v2076_v32 = vmul.f32 %v4266_v10, %v2066_v28 }
0x1038   :  { %v6051_v31 = vadd.f32 %v4267_v6, %v2076_v32 }
0x103a   :  { %v2088_v40 = vpack.c.bf16 %v6051_v31, %v6049_v33 }
0x103c   :  { %2311 = vmatmul.mubr.bf16.gmra.mxu1 %v2088_v40  ;;  %4799 = vmatmul.mubr.bf16.vlgmr.msra.gmra.mxu0 %v2088_v40 }
0x103d   :  { %4804 = vmatprep.mubr.msk.bf16.mxu1 %vm5337_vm1, %v5336_v42  ;;  %4822 = vmatprep.mubr.msk.bf16.mxu0 %vm5337_vm1, %v5336_v42 }
0x10f4   :  { %v2302_v36 = vpop.f32.mrf.mxu1 }
0x10f5   :  { %v2303_v56 = vadd.f32 %v2302_v36, %v2128_v47 }
0x10f6   :  { %v2304_v41 = vpop.f32.mrf.mxu1 }
0x10f7   :  { %v2305_v46 = vadd.f32 %v2304_v41, %v2132_v19 }
0x10f8   :  { %v2306_v12 = vpop.f32.mrf.mxu1 }
0x10f9   :  { %v2307_v52 = vadd.f32 %v2306_v12, %v2128_v47 }
0x10fa   :  { %v2308_v43 = vpop.f32.mrf.mxu1 }
0x10fb   :  { %v2309_v61 = vadd.f32 %v2308_v43, %v2132_v19  ;;  %v6073_v59 = vpack.c.bf16 %v2307_v52, %v2303_v56 }
0x10fc   :  { %v2312_v63 = vpop.f32.mrf.mxu1  ;;  %v4800_v0 = vpop.f32.mrf.mxu0 }
0x10fd   :  { %v6063_v34 = vpack.c.bf16 %v2309_v61, %v2305_v46  ;;  %v2364_v48 = vadd.f32 %v4800_v0, %v2136_v13  ;;  %v2313_v3 = vadd.f32 %v2312_v63, %v2128_v47 }
0x10fe   :  { %v2314_v15 = vpop.f32.mrf.mxu1  ;;  %v2355_v16 = vpop.f32.mrf.mxu0 }
0x10ff   :  { %v2380_v49 = vsel %vm426_vm2, %v6063_v34, 0  ;;  %v2315_v57 = vadd.f32 %v2314_v15, %v2132_v19  ;;  %v2356_v4 = vadd.f32 %v2355_v16, %v2136_v13 }
0x1100   :  { %v2316_v50 = vpop.f32.mrf.mxu1  ;;  %v4801_v51 = vpop.f32.mrf.mxu0  ;;  %4803 = vmatpush3.bf16.xpose.msra.mxu1 %v2380_v49 }
0x1101   :  { %v2367_v53 = vadd.f32 %v4801_v51, %v2136_v13  ;;  %4808 = vmatprep.subr.bf16.mxu1 %v5336_v42  ;;  %v2317_v2 = vadd.f32 %v2316_v50, %v2128_v47 }
0x1102   :  { %v2318_v55 = vpop.f32.mrf.mxu1  ;;  %v2358_v1 = vpop.f32.mrf.mxu0 }
0x1103   :  { %v6071_v44 = vpack.c.bf16 %v2367_v53, %v2364_v48  ;;  %v2319_v58 = vadd.f32 %v2318_v55, %v2132_v19  ;;  %v2359_v37 = vadd.f32 %v2358_v1, %v2136_v13  ;;  %v6086_v39 = vpack.c.bf16 %v2317_v2, %v2313_v3 }
0x1105   :  { %v6075_v62 = vpack.c.bf16 %v2319_v58, %v2315_v57  ;;  %4821 = vmatpush3.bf16.msra.mxu0 %v6071_v44  ;;  %v6088_v5 = vpack.c.bf16 %v2359_v37, %v2356_v4 }
0x1106   :  { %4832 = vmatprep.subr.bf16.mxu0 %v5336_v42 }
0x1107   :  { %4805 = vmatmul.mubr.msk.bf16.vlgmr.msra.gmra.mxu1 %vm426_vm2, %v6073_v59  ;;  %v2427_v60 = vsel %vm426_vm2, %v6075_v62, 0 }
0x1108   :  { %4809 = vmatpush3.bf16.xpose.msra.mxu1 %v2427_v60  ;;  %4810 = vmatprep.mubr.msk.bf16.mxu1 %vm5337_vm1, %v5336_v42 }
0x1109   :  { %4814 = vmatprep.subr.bf16.mxu1 %v5336_v42 }
0x110f   :  { %4811 = vmatmul.mubr.msk.bf16.vlgmr.msra.gmra.mxu1 %vm426_vm2, %v6086_v39 }
0x1110   :  { %4815 = vmatpush3.bf16.msra.mxu1 %v6088_v5  ;;  %4816 = vmatprep.mubr.msk.bf16.mxu1 %vm5337_vm1, %v5336_v42 }
0x1111   :  { %4826 = vmatprep.subr.bf16.mxu1 %v5336_v42 }
0x11c7   :  { %v2416_v38 = vpop.f32.mrf.mxu1 }
0x11c8   :  { %v2470_v35 = vmul.f32 0.17677669, %v2416_v38 }
0x11c9   :  { %v4806_v9 = vpop.f32.mrf.mxu1 }
0x11ca   :  { %v2474_v8 = vsel %vm83_vm0, %v2470_v35, -inf }
0x11cb   :  { %2475 = vmax.xlane.f32.xlu0 %v2474_v8  ;;  %v2419_v11 = vpop.f32.mrf.mxu1 }
0x11cc   :  { %v2471_v20 = vmul.f32 0.17677669, %v2419_v11 }
0x11cd   :  { %v4807_v10 = vpop.f32.mrf.mxu1 }
0x11ce   :  { %v2477_v17 = vsel %vm83_vm0, %v2471_v20, -inf }
0x11cf   :  { %2478 = vmax.xlane.f32.xlu1 %v2477_v17  ;;  %v2463_v21 = vpop.f32.mrf.mxu1 }
0x11d0   :  { %v2472_v22 = vmul.f32 0.17677669, %v2463_v21 }
0x11d1   :  { %v4812_v6 = vpop.f32.mrf.mxu1 }
0x11d2   :  { %v2480_v7 = vsel %vm83_vm0, %v2472_v22, -inf }
0x11d3   :  { %2481 = vmax.xlane.f32.xlu0 %v2480_v7  ;;  %v2466_v23 = vpop.f32.mrf.mxu1 }
0x11d4   :  { %v2473_v25 = vmul.f32 0.17677669, %v2466_v23 }
0x11d5   :  { %v4813_v26 = vpop.f32.mrf.mxu1 }
0x11d6   :  { %v2483_v18 = vsel %vm83_vm0, %v2473_v25, -inf }
0x11d7   :  { %2484 = vmax.xlane.f32.xlu1 %v2483_v18 }
0x1254   :  { %v2476_v28 = vpop.xlane.xlu0 %2475 }
0x1255   :  { %v2486_v30 = vsub.f32 %v2470_v35, %v2476_v28 }
0x1257   :  { %v2490_v32 = vmul.f32 1.442695, %v2486_v30 }
0x1258   :  { %v2479_v40 = vpop.xlane.xlu1 %2478 }
0x1259   :  { %5255 = vpow2.f32 %v2490_v32  ;;  %v2487_v36 = vsub.f32 %v2471_v20, %v2479_v40 }
0x125b   :  { %v2492_v29 = vmul.f32 1.442695, %v2487_v36 }
0x125c   :  { %v2482_v41 = vpop.xlane.xlu0 %2481 }
0x125d   :  { %5257 = vpow2.f32 %v2492_v29  ;;  %v2488_v19 = vsub.f32 %v2472_v22, %v2482_v41 }
0x125f   :  { %v2494_v12 = vmul.f32 1.442695, %v2488_v19 }
0x1260   :  { %v2485_v15 = vpop.xlane.xlu1 %2484 }
0x1261   :  { %5259 = vpow2.f32 %v2494_v12  ;;  %v2489_v16 = vsub.f32 %v2473_v25, %v2485_v15 }
0x1263   :  { %v2496_v47 = vmul.f32 1.442695, %v2489_v16 }
0x1265   :  { %5261 = vpow2.f32 %v2496_v47 }
0x1266   :  { %v5256_v43 = vpop.eup %5255 }
0x1267   :  { %v2498_v46 = vsel %vm83_vm0, %v5256_v43, 0.0 }
0x1268   :  { %2499 = vadd.xlane.f32.xlu0 %v2498_v46 }
0x126a   :  { %v5258_v61 = vpop.eup %5257 }
0x126b   :  { %v2501_v63 = vsel %vm83_vm0, %v5258_v61, 0.0 }
0x126c   :  { %2502 = vadd.xlane.f32.xlu1 %v2501_v63 }
0x126e   :  { %v5260_v0 = vpop.eup %5259 }
0x126f   :  { %v2504_v13 = vsel %vm83_vm0, %v5260_v0, 0.0 }
0x1270   :  { %2505 = vadd.xlane.f32.xlu0 %v2504_v13 }
0x1272   :  { %v5262_v49 = vpop.eup %5261 }
0x1273   :  { %v2507_v50 = vsel %vm83_vm0, %v5262_v49, 0.0 }
0x127d   :  { %2665 = vrot.lane.b32.xlu1 %v6075_v62, %s5338_s29 }
0x1286   :  { %2612 = vrot.lane.b32.xlu0 %v6063_v34, %s5338_s29 }
0x12a1   :  { %2508 = vadd.xlane.f32.xlu1 %v2507_v50 }
0x12b2   :  { %2609 = vrot.lane.b32.xlu1 %v6073_v59, %s5338_s29 }
0x12b6   :  { %2662 = vrot.lane.b32.xlu1 %v6086_v39, %s5338_s29 }
0x12f1   :  { %v2500_v51 = vpop.xlane.xlu0 %2499 }
0x12f2   :  { %5263 = vrcp.f32 %v2500_v51 }
0x12f5   :  { %v2503_v52 = vpop.xlane.xlu1 %2502 }
0x12f6   :  { %5265 = vrcp.f32 %v2503_v52 }
0x12f9   :  { %v2506_v48 = vpop.xlane.xlu0 %2505  ;;  %v2666_v2 = vpop.permute.xlu1 %2665 }
0x12fa   :  { %5267 = vrcp.f32 %v2506_v48  ;;  %v2671_v11 = vsel %vm426_vm2, %v2666_v2, 0 }
0x12fd   :  { %v2613_v58 = vpop.permute.xlu0 %2612 }
0x12fe   :  { %v2618_v60 = vsel %vm426_vm2, %v2613_v58, 0 }
0x12ff   :  { %v5264_v53 = vpop.eup %5263 }
0x1300   :  { %v2514_v56 = vmul.f32 %v5264_v53, %v5256_v43 }
0x1303   :  { %v5266_v55 = vpop.eup %5265 }
0x1304   :  { %v2515_v57 = vmul.f32 %v5266_v55, %v5258_v61 }
0x1306   :  { %v2518_v1 = vpack.c.bf16 %v2515_v57, %v2514_v56 }
0x1307   :  { %v5268_v4 = vpop.eup %5267 }
0x1308   :  { %4817 = vmatmul.mubr.msk.bf16.vlgmr.msra.gmra.mxu1 %vm83_vm0, %v2518_v1  ;;  %v2516_v35 = vmul.f32 %v5268_v4, %v5260_v0 }
0x1309   :  { %4827 = vmatpush3.bf16.xpose.msra.mxu1 %v2618_v60  ;;  %4828 = vmatprep.mubr.msk.bf16.mxu1 %vm5337_vm1, %v5336_v42 }
0x130a   :  { %4838 = vmatprep.subr.bf16.mxu1 %v5336_v42 }
0x132a   :  { %v2509_v37 = vpop.xlane.xlu1 %2508 }
0x132b   :  { %5269 = vrcp.f32 %v2509_v37 }
0x132e   :  { %v2610_v3 = vpop.permute.xlu1 %2609 }
0x132f   :  { %4829 = vmatmul.mubr.msk.bf16.vlgmr.msra.gmra.mxu1 %vm426_vm2, %v2610_v3 }
0x1330   :  { %4840 = vmatprep.mubr.msk.bf16.mxu1 %vm5337_vm1, %v5336_v42 }
0x1332   :  { %v2663_v20 = vpop.permute.xlu1 %2662 }
0x1338   :  { %v5270_v38 = vpop.eup %5269 }
0x1339   :  { %v2517_v9 = vmul.f32 %v5270_v38, %v5262_v49 }
0x133b   :  { %v2519_v8 = vpack.c.bf16 %v2517_v9, %v2516_v35 }
0x133d   :  { %4823 = vmatmul.mubr.msk.bf16.vlgmr.msra.gmra.mxu0 %vm83_vm0, %v2519_v8 }
0x133e   :  { %4833 = vmatpush3.bf16.xpose.msra.mxu0 %v2671_v11  ;;  %4834 = vmatprep.mubr.msk.bf16.mxu0 %vm5337_vm1, %v5336_v42 }
0x133f   :  { %4844 = vmatprep.subr.bf16.mxu0 %v5336_v42 }
0x1345   :  { %4835 = vmatmul.mubr.msk.bf16.vlgmr.msra.gmra.mxu0 %vm426_vm2, %v2663_v20 }
0x1346   :  { %4846 = vmatprep.mubr.msk.bf16.mxu0 %vm5337_vm1, %v5336_v42 }
0x13c8   :  { %v6128_v10 = vpop.f32.mrf.mxu1 }
0x13ca   :  { %v4818_v17 = vpop.f32.mrf.mxu1 }
0x13cc   :  { %v6130_v21 = vpop.f32.mrf.mxu1 }
0x13ce   :  { %v4819_v22 = vpop.f32.mrf.mxu1 }
0x13ef   :  { %v2654_v6 = vpop.f32.mrf.mxu1 }
0x13f0   :  { %v2714_v7 = vmul.f32 0.17677669, %v2654_v6 }
0x13f1   :  { %v4830_v23 = vpop.f32.mrf.mxu1 }
0x13f2   :  { %v2718_v25 = vsel %vm83_vm0, %v2714_v7, -inf }
0x13f3   :  { %2719 = vmax.xlane.f32.xlu0 %v2718_v25  ;;  %v2657_v26 = vpop.f32.mrf.mxu1 }
0x13f4   :  { %v2715_v18 = vmul.f32 0.17677669, %v2657_v26 }
0x13f5   :  { %v4831_v28 = vpop.f32.mrf.mxu1 }
0x13f6   :  { %v2721_v30 = vsel %vm83_vm0, %v2715_v18, -inf }
0x13f7   :  { %2722 = vmax.xlane.f32.xlu1 %v2721_v30 }
0x13fd   :  { %v6134_v32 = vpop.f32.mrf.mxu0 }
0x13ff   :  { %v4824_v40 = vpop.f32.mrf.mxu0 }
0x1401   :  { %v6136_v36 = vpop.f32.mrf.mxu0 }
0x1403   :  { %v4825_v29 = vpop.f32.mrf.mxu0 }
0x1405   :  { %v2707_v41 = vpop.f32.mrf.mxu0 }
0x1406   :  { %v2716_v19 = vmul.f32 0.17677669, %v2707_v41 }
0x1407   :  { %v4836_v12 = vpop.f32.mrf.mxu0 }
0x1408   :  { %v2724_v43 = vsel %vm83_vm0, %v2716_v19, -inf }
0x1409   :  { %v2710_v46 = vpop.f32.mrf.mxu0  ;;  %2725 = vmax.xlane.f32.xlu0 %v2724_v43 }
0x140a   :  { %v2717_v61 = vmul.f32 0.17677669, %v2710_v46 }
0x140b   :  { %v4837_v63 = vpop.f32.mrf.mxu0 }
0x140c   :  { %v2727_v0 = vsel %vm83_vm0, %v2717_v61, -inf }
0x140d   :  { %2728 = vmax.xlane.f32.xlu0 %v2727_v0 }
0x147c   :  { %v2720_v13 = vpop.xlane.xlu0 %2719 }
0x147d   :  { %v2730_v15 = vsub.f32 %v2714_v7, %v2720_v13 }
0x147f   :  { %v2734_v16 = vmul.f32 1.442695, %v2730_v15 }
0x1480   :  { %v2723_v47 = vpop.xlane.xlu1 %2722 }
0x1481   :  { %5271 = vpow2.f32 %v2734_v16  ;;  %v2731_v49 = vsub.f32 %v2715_v18, %v2723_v47 }
0x1483   :  { %v2736_v50 = vmul.f32 1.442695, %v2731_v49 }
0x1485   :  { %5273 = vpow2.f32 %v2736_v50 }
0x148e   :  { %v5272_v51 = vpop.eup %5271 }
0x148f   :  { %v2742_v52 = vsel %vm83_vm0, %v5272_v51, 0.0 }
0x1490   :  { %2743 = vadd.xlane.f32.xlu0 %v2742_v52 }
0x1492   :  { %v5274_v48 = vpop.eup %5273  ;;  %v2726_v53 = vpop.xlane.xlu0 %2725 }
0x1493   :  { %v2732_v55 = vsub.f32 %v2716_v19, %v2726_v53  ;;  %v2745_v56 = vsel %vm83_vm0, %v5274_v48, 0.0 }
0x1494   :  { %2746 = vadd.xlane.f32.xlu1 %v2745_v56 }
0x1495   :  { %v2738_v57 = vmul.f32 1.442695, %v2732_v55 }
0x1496   :  { %v2729_v60 = vpop.xlane.xlu0 %2728 }
0x1497   :  { %5275 = vpow2.f32 %v2738_v57  ;;  %v2733_v2 = vsub.f32 %v2717_v61, %v2729_v60 }
0x1499   :  { %v2740_v37 = vmul.f32 1.442695, %v2733_v2 }
0x149b   :  { %5277 = vpow2.f32 %v2740_v37 }
0x14a4   :  { %v5276_v58 = vpop.eup %5275 }
0x14a5   :  { %2813 = vrot.lane.b32.xlu1 %v6071_v44, %s5338_s29  ;;  %v2748_v1 = vsel %vm83_vm0, %v5276_v58, 0.0 }
0x14a6   :  { %2749 = vadd.xlane.f32.xlu0 %v2748_v1 }
0x14a8   :  { %v5278_v3 = vpop.eup %5277 }
0x14a9   :  { %2862 = vrot.lane.b32.xlu1 %v6063_v34, %s5339_s1  ;;  %v2751_v4 = vsel %vm83_vm0, %v5278_v3, 0.0 }
0x14bc   :  { %2765 = vrot.lane.b32.xlu0 %v6088_v5, %s5338_s29 }
0x14c0   :  { %2860 = vrot.lane.b32.xlu0 %v6073_v59, %s5339_s1 }
0x14cd   :  { %2752 = vadd.xlane.f32.xlu1 %v2751_v4 }
0x14de   :  { %2913 = vrot.lane.b32.xlu1 %v6075_v62, %s5339_s1 }
0x14e2   :  { %2911 = vrot.lane.b32.xlu1 %v6086_v39, %s5339_s1 }
0x1519   :  { %v2744_v35 = vpop.xlane.xlu0 %2743 }
0x151d   :  { %v2747_v38 = vpop.xlane.xlu1 %2746 }
0x151e   :  { %5279 = vrcp.f32 %v2747_v38 }
0x151f   :  { %5281 = vrcp.f32 %v2744_v35 }
0x1521   :  { %v2814_v9 = vpop.permute.xlu1 %2813 }
0x1522   :  { %4845 = vmatpush3.bf16.msra.mxu0 %v2814_v9 }
0x1523   :  { %4856 = vmatprep.subr.bf16.mxu0 %v5336_v42 }
0x1525   :  { %v2863_v7 = vpop.permute.xlu1 %2862 }
0x1526   :  { %v2868_v25 = vsel %vm426_vm2, %v2863_v7, 0 }
0x152b   :  { %v5280_v8 = vpop.eup %5279 }
0x152c   :  { %v5282_v20 = vpop.eup %5281  ;;  %v2759_v17 = vmul.f32 %v5280_v8, %v5274_v48 }
0x152d   :  { %v2758_v6 = vmul.f32 %v5282_v20, %v5272_v51 }
0x152f   :  { %v2750_v11 = vpop.xlane.xlu0 %2749  ;;  %v2762_v23 = vpack.c.bf16 %v2759_v17, %v2758_v6 }
0x1530   :  { %5283 = vrcp.f32 %v2750_v11 }
0x1533   :  { %v2766_v22 = vpop.permute.xlu0 %2765 }
0x1534   :  { %4839 = vmatpush3.bf16.msra.mxu1 %v2766_v22 }
0x1535   :  { %4850 = vmatprep.subr.bf16.mxu1 %v5336_v42 }
0x1537   :  { %4841 = vmatmul.mubr.msk.bf16.vlgmr.msra.gmra.mxu1 %vm83_vm0, %v2762_v23  ;;  %v2861_v26 = vpop.permute.xlu0 %2860 }
0x1538   :  { %4851 = vmatpush3.bf16.xpose.msra.mxu1 %v2868_v25  ;;  %4852 = vmatprep.mubr.msk.bf16.mxu1 %vm5337_vm1, %v5336_v42 }
0x1539   :  { %4862 = vmatprep.subr.bf16.mxu1 %v5336_v42 }
0x153d   :  { %v5284_v28 = vpop.eup %5283 }
0x153e   :  { %v2760_v40 = vmul.f32 %v5284_v28, %v5276_v58 }
0x153f   :  { %4853 = vmatmul.mubr.msk.bf16.vlgmr.msra.gmra.mxu1 %vm426_vm2, %v2861_v26 }
0x1540   :  { %4864 = vmatprep.mubr.msk.bf16.mxu1 %vm5337_vm1, %v5336_v42 }
0x1556   :  { %v2753_v18 = vpop.xlane.xlu1 %2752 }
0x1557   :  { %5285 = vrcp.f32 %v2753_v18 }
0x155a   :  { %v2914_v41 = vpop.permute.xlu1 %2913 }
0x155b   :  { %v2919_v12 = vsel %vm426_vm2, %v2914_v41, 0 }
0x155e   :  { %v2912_v43 = vpop.permute.xlu1 %2911 }
0x1564   :  { %v5286_v30 = vpop.eup %5285 }
0x1565   :  { %v2761_v29 = vmul.f32 %v5286_v30, %v5278_v3 }
0x1567   :  { %v2763_v19 = vpack.c.bf16 %v2761_v29, %v2760_v40 }
0x1569   :  { %4847 = vmatmul.mubr.msk.bf16.vlgmr.msra.gmra.mxu0 %vm83_vm0, %v2763_v19 }
0x156a   :  { %4857 = vmatpush3.bf16.xpose.msra.mxu0 %v2919_v12  ;;  %4858 = vmatprep.mubr.msk.bf16.mxu0 %vm5337_vm1, %v5336_v42 }
0x156b   :  { %4868 = vmatprep.subr.bf16.mxu0 %v5336_v42 }
0x1571   :  { %4859 = vmatmul.mubr.msk.bf16.vlgmr.msra.gmra.mxu0 %vm426_vm2, %v2912_v43 }
0x1572   :  { %4870 = vmatprep.mubr.msk.bf16.mxu0 %vm5337_vm1, %v5336_v42 }
0x15f7   :  { %v6174_v46 = vpop.f32.mrf.mxu1 }
0x15f9   :  { %v4842_v61 = vpop.f32.mrf.mxu1 }
0x15fb   :  { %v6176_v63 = vpop.f32.mrf.mxu1 }
0x15fc   :  { %v4974_v0 = vpack.i.bf16 %v6176_v63, %v6174_v46 }
0x15fd   :  { %v4843_v13 = vpop.f32.mrf.mxu1 }
0x15ff   :  { %v2904_v15 = vpop.f32.mrf.mxu1 }
0x1600   :  { %v2962_v16 = vmul.f32 0.17677669, %v2904_v15 }
0x1601   :  { %v4854_v47 = vpop.f32.mrf.mxu1 }
0x1602   :  { %v2966_v49 = vsel %vm83_vm0, %v2962_v16, -inf }
0x1603   :  { %2967 = vmax.xlane.f32.xlu0 %v2966_v49  ;;  %v2907_v50 = vpop.f32.mrf.mxu1 }
0x1604   :  { %v2963_v51 = vmul.f32 0.17677669, %v2907_v50 }
0x1605   :  { %v4855_v52 = vpop.f32.mrf.mxu1 }
0x1606   :  { %v2969_v48 = vsel %vm83_vm0, %v2963_v51, -inf }
0x1607   :  { %2970 = vmax.xlane.f32.xlu1 %v2969_v48 }
0x1629   :  { %v6182_v53 = vpop.f32.mrf.mxu0 }
0x162b   :  { %v4848_v55 = vpop.f32.mrf.mxu0 }
0x162d   :  { %v6184_v56 = vpop.f32.mrf.mxu0 }
0x162e   :  { %v4979_v57 = vpack.i.bf16 %v6184_v56, %v6182_v53 }
0x162f   :  { %v4849_v58 = vpop.f32.mrf.mxu0 }
0x1631   :  { %v2955_v1 = vpop.f32.mrf.mxu0 }
0x1632   :  { %v2964_v60 = vmul.f32 0.17677669, %v2955_v1 }
0x1633   :  { %v4860_v2 = vpop.f32.mrf.mxu0 }
0x1634   :  { %v2972_v37 = vsel %vm83_vm0, %v2964_v60, -inf }
0x1635   :  { %v2958_v3 = vpop.f32.mrf.mxu0  ;;  %2973 = vmax.xlane.f32.xlu0 %v2972_v37 }
0x1636   :  { %v2965_v4 = vmul.f32 0.17677669, %v2958_v3 }
0x1637   :  { %v4861_v38 = vpop.f32.mrf.mxu0 }
0x1638   :  { %v2975_v35 = vsel %vm83_vm0, %v2965_v4, -inf }
0x1639   :  { %2976 = vmax.xlane.f32.xlu0 %v2975_v35 }
0x168c   :  { %v2968_v9 = vpop.xlane.xlu0 %2967 }
0x168d   :  { %v2978_v8 = vsub.f32 %v2962_v16, %v2968_v9 }
0x168f   :  { %v2982_v11 = vmul.f32 1.442695, %v2978_v8 }
0x1690   :  { %v2971_v20 = vpop.xlane.xlu1 %2970 }
0x1691   :  { %5287 = vpow2.f32 %v2982_v11  ;;  %v2979_v17 = vsub.f32 %v2963_v51, %v2971_v20 }
0x1693   :  { %v2984_v22 = vmul.f32 1.442695, %v2979_v17 }
0x1695   :  { %5289 = vpow2.f32 %v2984_v22 }
0x169e   :  { %v5288_v6 = vpop.eup %5287 }
0x169f   :  { %v2990_v7 = vsel %vm83_vm0, %v5288_v6, 0.0 }
0x16a0   :  { %2991 = vadd.xlane.f32.xlu0 %v2990_v7 }
0x16a2   :  { %v5290_v23 = vpop.eup %5289 }
0x16a3   :  { %v2993_v25 = vsel %vm83_vm0, %v5290_v23, 0.0 }
0x16a4   :  { %2994 = vadd.xlane.f32.xlu1 %v2993_v25 }
0x16b5   :  { %3059 = vrot.lane.b32.xlu1 %v6071_v44, %s5339_s1 }
0x16b9   :  { %3108 = vrot.lane.b32.xlu1 %v6063_v34, %s5340_s30 }
0x16be   :  { %v2974_v26 = vpop.xlane.xlu0 %2973 }
0x16bf   :  { %v2980_v18 = vsub.f32 %v2964_v60, %v2974_v26 }
0x16c1   :  { %v2986_v28 = vmul.f32 1.442695, %v2980_v18 }
0x16c2   :  { %v2977_v30 = vpop.xlane.xlu0 %2976 }
0x16c3   :  { %5291 = vpow2.f32 %v2986_v28  ;;  %v2981_v40 = vsub.f32 %v2965_v4, %v2977_v30 }
0x16c5   :  { %v2988_v29 = vmul.f32 1.442695, %v2981_v40 }
0x16c7   :  { %5293 = vpow2.f32 %v2988_v29 }
0x16d0   :  { %v5292_v41 = vpop.eup %5291 }
0x16d1   :  { %v2996_v19 = vsel %vm83_vm0, %v5292_v41, 0.0 }
0x16d2   :  { %2997 = vadd.xlane.f32.xlu0 %v2996_v19 }
0x16d4   :  { %v5294_v12 = vpop.eup %5293 }
0x16d5   :  { %v2999_v43 = vsel %vm83_vm0, %v5294_v12, 0.0 }
0x16dd   :  { %3000 = vadd.xlane.f32.xlu1 %v2999_v43 }
0x16e8   :  { %3012 = vrot.lane.b32.xlu0 %v6088_v5, %s5339_s1 }
0x16ec   :  { %3106 = vrot.lane.b32.xlu0 %v6073_v59, %s5340_s30 }
0x16ee   :  { %3159 = vrot.lane.b32.xlu1 %v6075_v62, %s5340_s30 }
0x16f2   :  { %3157 = vrot.lane.b32.xlu1 %v6086_v39, %s5340_s30 }
0x1729   :  { %v2992_v13 = vpop.xlane.xlu0 %2991 }
0x172d   :  { %v2995_v34 = vpop.xlane.xlu1 %2994 }
0x172e   :  { %5295 = vrcp.f32 %v2995_v34 }
0x172f   :  { %5297 = vrcp.f32 %v2992_v13 }
0x1731   :  { %v3060_v61 = vpop.permute.xlu1 %3059 }
0x1732   :  { %4869 = vmatpush3.bf16.msra.mxu0 %v3060_v61 }
0x1733   :  { %4880 = vmatprep.subr.bf16.mxu0 %v5336_v42 }
0x1735   :  { %v3109_v51 = vpop.permute.xlu1 %3108 }
0x1736   :  { %v3114_v39 = vsel %vm426_vm2, %v3109_v51, 0 }
0x173b   :  { %v5296_v15 = vpop.eup %5295 }
0x173c   :  { %v5298_v47 = vpop.eup %5297  ;;  %v3007_v49 = vmul.f32 %v5296_v15, %v5290_v23 }
0x173d   :  { %v3006_v59 = vmul.f32 %v5298_v47, %v5288_v6 }
0x173f   :  { %v3010_v62 = vpack.c.bf16 %v3007_v49, %v3006_v59 }
0x175b   :  { %v2998_v16 = vpop.xlane.xlu0 %2997 }
0x175c   :  { %5299 = vrcp.f32 %v2998_v16 }
0x175f   :  { %v3013_v50 = vpop.permute.xlu0 %3012 }
0x1760   :  { %4863 = vmatpush3.bf16.msra.mxu1 %v3013_v50 }
0x1761   :  { %4874 = vmatprep.subr.bf16.mxu1 %v5336_v42 }
0x1763   :  { %4865 = vmatmul.mubr.msk.bf16.vlgmr.msra.gmra.mxu1 %vm83_vm0, %v3010_v62  ;;  %v3107_v48 = vpop.permute.xlu0 %3106 }
0x1764   :  { %4875 = vmatpush3.bf16.xpose.msra.mxu1 %v3114_v39  ;;  %4876 = vmatprep.mubr.msk.bf16.mxu1 %vm5337_vm1, %v5336_v42 }
0x1765   :  { %4886 = vmatprep.subr.bf16.mxu1 %v5336_v42 }
0x1766   :  { %v3001_v52 = vpop.xlane.xlu1 %3000 }
0x1767   :  { %5301 = vrcp.f32 %v3001_v52 }
0x1769   :  { %v5300_v55 = vpop.eup %5299 }
0x176a   :  { %v3008_v1 = vmul.f32 %v5300_v55, %v5292_v41  ;;  %v3160_v2 = vpop.permute.xlu1 %3159 }
0x176b   :  { %4877 = vmatmul.mubr.msk.bf16.vlgmr.msra.gmra.mxu1 %vm426_vm2, %v3107_v48  ;;  %v3165_v3 = vsel %vm426_vm2, %v3160_v2, 0 }
0x176c   :  { %4888 = vmatprep.mubr.msk.bf16.mxu1 %vm5337_vm1, %v5336_v42 }
0x176e   :  { %v3158_v4 = vpop.permute.xlu1 %3157 }
0x1774   :  { %v5302_v58 = vpop.eup %5301 }
0x1775   :  { %v3009_v60 = vmul.f32 %v5302_v58, %v5294_v12 }
0x1777   :  { %v3011_v37 = vpack.c.bf16 %v3009_v60, %v3008_v1 }
0x1779   :  { %4871 = vmatmul.mubr.msk.bf16.vlgmr.msra.gmra.mxu0 %vm83_vm0, %v3011_v37 }
0x177a   :  { %4881 = vmatpush3.bf16.xpose.msra.mxu0 %v3165_v3  ;;  %4882 = vmatprep.mubr.msk.bf16.mxu0 %vm5337_vm1, %v5336_v42 }
0x177b   :  { %4892 = vmatprep.subr.bf16.mxu0 %v5336_v42 }
0x1781   :  { %4883 = vmatmul.mubr.msk.bf16.vlgmr.msra.gmra.mxu0 %vm426_vm2, %v3158_v4 }
0x1782   :  { %4894 = vmatprep.mubr.msk.bf16.mxu0 %vm5337_vm1, %v5336_v42 }
0x1823   :  { %v3052_v38 = vpop.f32.mrf.mxu1 }
0x1825   :  { %v4866_v35 = vpop.f32.mrf.mxu1 }
0x1827   :  { %v3055_v9 = vpop.f32.mrf.mxu1 }
0x1828   :  { %v4984_v8 = vpack.i.bf16 %v3055_v9, %v3052_v38 }
0x1829   :  { %v4867_v11 = vpop.f32.mrf.mxu1 }
0x182b   :  { %v3150_v20 = vpop.f32.mrf.mxu1 }
0x182c   :  { %v3208_v17 = vmul.f32 0.17677669, %v3150_v20 }
0x182d   :  { %v4878_v22 = vpop.f32.mrf.mxu1 }
0x182e   :  { %v3212_v6 = vsel %vm83_vm0, %v3208_v17, -inf }
0x182f   :  { %3213 = vmax.xlane.f32.xlu0 %v3212_v6  ;;  %v3153_v7 = vpop.f32.mrf.mxu1 }
0x1830   :  { %v3209_v23 = vmul.f32 0.17677669, %v3153_v7  ;;  %v5119_v7 = vld [vmem:[%s6499_s5 + $0x78] sm:$0xff]  }
0x1831   :  { %v4879_v25 = vpop.f32.mrf.mxu1 }
0x1832   :  { %v3215_v26 = vsel %vm83_vm0, %v3209_v23, -inf  ;;  %v5121_v25 = vld [vmem:[%s6499_s5 + $0x68] sm:$0xff]  }
0x1833   :  { %3216 = vmax.xlane.f32.xlu1 %v3215_v26  ;;  %v5122_v26 = vld [vmem:[%s6499_s5 + $0x60] sm:$0xff]  }
0x1839   :  { %v3099_v18 = vpop.f32.mrf.mxu0 }
0x183b   :  { %v4872_v28 = vpop.f32.mrf.mxu0 }
0x183c   :  { %v5124_v28 = vld [vmem:[%s6499_s5 + $0x50] sm:$0xff]  }
0x183d   :  { %v3102_v42 = vpop.f32.mrf.mxu0 }
0x183e   :  { %v4989_v30 = vpack.i.bf16 %v3102_v42, %v3099_v18  ;;  %v5123_v18 = vld [vmem:[%s6499_s5 + $0x58] sm:$0xff]  }
0x183f   :  { %v4873_v40 = vpop.f32.mrf.mxu0 }
0x1841   :  { %v3201_v29 = vpop.f32.mrf.mxu0 }
0x1842   :  { %v3210_v41 = vmul.f32 0.17677669, %v3201_v29 }
0x1843   :  { %v4884_v19 = vpop.f32.mrf.mxu0 }
0x1844   :  { %v3218_v12 = vsel %vm83_vm0, %v3210_v41, -inf }
0x1845   :  { %v3204_v43 = vpop.f32.mrf.mxu0  ;;  %3219 = vmax.xlane.f32.xlu0 %v3218_v12  ;;  %v5126_v12 = vld [vmem:[%s6499_s5 + $0x40] sm:$0xff]  }
0x1846   :  { %v3211_v34 = vmul.f32 0.17677669, %v3204_v43 }
0x1847   :  { %v4885_v61 = vpop.f32.mrf.mxu0 }
0x1848   :  { %v3221_v13 = vsel %vm83_vm0, %v3211_v34, -inf }
0x1849   :  { %3222 = vmax.xlane.f32.xlu0 %v3221_v13 }
0x18b8   :  { %v3214_v15 = vpop.xlane.xlu0 %3213 }
0x18b9   :  { %v3224_v16 = vsub.f32 %v3208_v17, %v3214_v15 }
0x18bb   :  { %v3228_v47 = vmul.f32 1.442695, %v3224_v16 }
0x18bc   :  { %v3217_v49 = vpop.xlane.xlu1 %3216 }
0x18bd   :  { %5303 = vpow2.f32 %v3228_v47  ;;  %v3225_v50 = vsub.f32 %v3209_v23, %v3217_v49  ;;  %v5120_v23 = vld [vmem:[%s6499_s5 + $0x70] sm:$0xff]  }
0x18bf   :  { %v3230_v59 = vmul.f32 1.442695, %v3225_v50 }
0x18c1   :  { %5305 = vpow2.f32 %v3230_v59 }
0x18ca   :  { %v5304_v51 = vpop.eup %5303 }
0x18cb   :  { %v3236_v62 = vsel %vm83_vm0, %v5304_v51, 0.0 }
0x18cc   :  { %3237 = vadd.xlane.f32.xlu0 %v3236_v62 }
0x18ce   :  { %v5306_v39 = vpop.eup %5305  ;;  %v3220_v52 = vpop.xlane.xlu0 %3219 }
0x18cf   :  { %v3226_v48 = vsub.f32 %v3210_v41, %v3220_v52  ;;  %v3239_v55 = vsel %vm83_vm0, %v5306_v39, 0.0 }
0x18d0   :  { %3240 = vadd.xlane.f32.xlu1 %v3239_v55 }
0x18d1   :  { %v3232_v58 = vmul.f32 1.442695, %v3226_v48 }
0x18d2   :  { %v3223_v1 = vpop.xlane.xlu0 %3222 }
0x18d3   :  { %5307 = vpow2.f32 %v3232_v58  ;;  %v3227_v60 = vsub.f32 %v3211_v34, %v3223_v1 }
0x18d5   :  { %v3234_v2 = vmul.f32 1.442695, %v3227_v60 }
0x18d7   :  { %5309 = vpow2.f32 %v3234_v2 }
0x18e0   :  { %v5308_v37 = vpop.eup %5307 }
0x18e1   :  { %v3242_v3 = vsel %vm83_vm0, %v5308_v37, 0.0 }
0x18e2   :  { %3243 = vadd.xlane.f32.xlu0 %v3242_v3 }
0x18e4   :  { %v5310_v4 = vpop.eup %5309 }
0x18e5   :  { %v3245_v38 = vsel %vm83_vm0, %v5310_v4, 0.0 }
0x18e6   :  { %3246 = vadd.xlane.f32.xlu1 %v3245_v38 }
0x18f7   :  { %3305 = vrot.lane.b32.xlu1 %v6071_v44, %s5340_s30 }
0x18f8   :  { %3258 = vrot.lane.b32.xlu0 %v6088_v5, %s5340_s30 }
0x18fb   :  { %4975 = vrot.lane.b32.xlu1 %v4974_v0, %s5340_s30 }
0x18fc   :  { %4985 = vrot.lane.b32.xlu0 %v4984_v8, %s5339_s1 }
0x18ff   :  { %4980 = vrot.lane.b32.xlu1 %v4979_v57, %s5340_s30 }
0x1903   :  { %4990 = vrot.lane.b32.xlu1 %v4989_v30, %s5339_s1  ;;  %v5125_v30 = vld [vmem:[%s6499_s5 + $0x48] sm:$0xff]  }
0x1955   :  { %v3238_v9 = vpop.xlane.xlu0 %3237 }
0x1959   :  { %v3241_v35 = vpop.xlane.xlu1 %3240 }
0x195a   :  { %5311 = vrcp.f32 %v3241_v35 }
0x195b   :  { %5313 = vrcp.f32 %v3238_v9 }
0x1967   :  { %v5312_v44 = vpop.eup %5311 }
0x1968   :  { %v5314_v11 = vpop.eup %5313  ;;  %v3253_v20 = vmul.f32 %v5312_v44, %v5306_v39 }
0x1969   :  { %v3252_v0 = vmul.f32 %v5314_v11, %v5304_v51 }
0x196b   :  { %v3244_v5 = vpop.xlane.xlu0 %3243  ;;  %v3256_v8 = vpack.c.bf16 %v3253_v20, %v3252_v0 }
0x196c   :  { %5315 = vrcp.f32 %v3244_v5 }
0x196f   :  { %v3259_v46 = vpop.permute.xlu0 %3258  ;;  %v3247_v63 = vpop.xlane.xlu1 %3246 }
0x1970   :  { %5317 = vrcp.f32 %v3247_v63  ;;  %4887 = vmatpush3.bf16.msra.mxu1 %v3259_v46 }
0x1971   :  { %4898 = vmatprep.subr.bf16.mxu1 %v5119_v7 }
0x1973   :  { %4889 = vmatmul.mubr.msk.bf16.vlgmr.msra.gmra.mxu1 %vm83_vm0, %v3256_v8  ;;  %v3306_v53 = vpop.permute.xlu1 %3305  ;;  %v4986_v50 = vpop.permute.xlu0 %4985 }
0x1974   :  { %4893 = vmatpush3.bf16.msra.mxu0 %v3306_v53  ;;  %4899 = vmatpush3.bf16.msra.mxu1 %v5119_v7  ;;  %v4988_v62 = vunpack.i.h.bf16 %v4986_v50  ;;  %v4987_v39 = vunpack.i.l.bf16 %v4986_v50  ;;  %v5130_v50 = vld [vmem:[%s6501_s9 + $0xe0] ss:$8 sps:$4 sm:$0xff]  }
0x1975   :  { %4900 = vmatprep.subr.bf16.mxu1 %v5120_v23 }
0x1977   :  { %v4976_v16 = vpop.permute.xlu1 %4975 }
0x1978   :  { %4901 = vmatpush3.bf16.msra.mxu1 %v5120_v23  ;;  %v4978_v47 = vunpack.i.h.bf16 %v4976_v16  ;;  %v4977_v49 = vunpack.i.l.bf16 %v4976_v16 }
0x1979   :  { %v5316_v56 = vpop.eup %5315  ;;  %4902 = vmatprep.subr.bf16.mxu1 %v5121_v25 }
0x197a   :  { %v3254_v17 = vmul.f32 %v5316_v56, %v5308_v37  ;;  %v3401_v59 = vsel %vm426_vm2, %v6130_v21, %v4978_v47  ;;  %v3400_v51 = vsel %vm426_vm2, %v6128_v10, %v4977_v49  ;;  %v5132_v49 = vld [vmem:[%s6501_s9 + $0xe4] ss:$8 sps:$4 sm:$0xff]  }
0x197b   :  { %v3404_v58 = vsel %vm1455_vm3, %v3400_v51, %v4987_v39  ;;  %v3405_v1 = vsel %vm1455_vm3, %v3401_v59, %v4988_v62  ;;  %v4981_v37 = vpop.permute.xlu1 %4980  ;;  %v5135_v59 = vld [vmem:[%s6501_s9 + $0xd4] ss:$8 sps:$4 sm:$0xff]   ;;  %v5133_v51 = vld [vmem:[%s6501_s9 + $0xd0] ss:$8 sps:$4 sm:$0xff]   ;;  %v5138_v62 = vld [vmem:[%s6501_s9 + $0xc4] ss:$8 sps:$4 sm:$0xff]  }
0x197c   :  { %4903 = vmatpush3.bf16.msra.mxu1 %v5121_v25  ;;  %v4982_v38 = vunpack.i.l.bf16 %v4981_v37  ;;  %v5136_v39 = vld [vmem:[%s6501_s9 + $0xc0] ss:$8 sps:$4 sm:$0xff]  }
0x197d   :  { %v5318_v57 = vpop.eup %5317  ;;  %4904 = vmatprep.subr.bf16.mxu1 %v5122_v26 }
0x197e   :  { %v3255_v22 = vmul.f32 %v5318_v57, %v5310_v4  ;;  %v4983_v4 = vunpack.i.h.bf16 %v4981_v37  ;;  %v3402_v5 = vsel %vm426_vm2, %v6134_v32, %v4982_v38  ;;  %v5148_v37 = vld [vmem:[%s6501_s9 + $0x80] ss:$8 sps:$4 sm:$0xff]   ;;  %v5154_v38 = vld [vmem:[%s6502_s11 + $0xb0] sm:$0xff]  }
0x197f   :  { %v4991_v21 = vpop.permute.xlu1 %4990 }
0x1980   :  { %v3257_v6 = vpack.c.bf16 %v3255_v22, %v3254_v17  ;;  %4905 = vmatpush3.bf16.msra.mxu1 %v5122_v26  ;;  %v4993_v10 = vunpack.i.h.bf16 %v4991_v21  ;;  %v4992_v35 = vunpack.i.l.bf16 %v4991_v21  ;;  %v3403_v44 = vsel %vm426_vm2, %v6136_v36, %v4983_v4  ;;  %v4358_v36 = vld [vmem:[%s6500_s6 + $0x1] ss:$0 sm:$0xff]  ;;  %v5152_v21 = vld [vmem:[%s6502_s11 + $0xb8] sm:$0xff]   ;;  %v5153_v4 = vld [vmem:[%s6502_s11 + $0xf0] sm:$0xff]  }
0x1981   :  { %4906 = vmatprep.subr.bf16.mxu1 %v5123_v18 }
0x1982   :  { %4895 = vmatmul.mubr.msk.bf16.vlgmr.msra.gmra.mxu0 %vm83_vm0, %v3257_v6  ;;  %v3406_v46 = vsel %vm1455_vm3, %v3402_v5, %v4992_v35  ;;  %v3407_v63 = vsel %vm1455_vm3, %v3403_v44, %v4993_v10  ;;  %v5155_v10 = vld [vmem:[%s6502_s11 + $0xe8] sm:$0xff]   ;;  %v5158_v44 = vld [vmem:[%s6502_s11 + $0xa0] sm:$0xff]   ;;  %v5159_v5 = vld [vmem:[%s6502_s11 + $0xd8] sm:$0xff]  }
0x1983   :  { %3752 = vmatprep.mubr.bf16.mxu0 %v5335_v27  ;;  %v5156_v35 = vld [vmem:[%s6502_s11 + $0xa8] sm:$0xff]  }
0x1984   :  { %4907 = vmatpush3.bf16.msra.mxu1 %v5123_v18 }
0x1985   :  { %4908 = vmatprep.subr.bf16.mxu1 %v5124_v28 }
0x1988   :  { %4909 = vmatpush3.bf16.msra.mxu1 %v5124_v28 }
0x1989   :  { %4910 = vmatprep.subr.bf16.mxu1 %v5125_v30 }
0x198c   :  { %4911 = vmatpush3.bf16.msra.mxu1 %v5125_v30 }
0x198d   :  { %4912 = vmatprep.subr.bf16.mxu1 %v5126_v12 }
0x1990   :  { %4913 = vmatpush3.bf16.msra.mxu1 %v5126_v12 }
0x1a33   :  { %v3298_v42 = vpop.f32.mrf.mxu1 }
0x1a35   :  { %v4890_v40 = vpop.f32.mrf.mxu1 }
0x1a37   :  { %v3301_v29 = vpop.f32.mrf.mxu1 }
0x1a38   :  { %v4994_v41 = vpack.i.bf16 %v3301_v29, %v3298_v42  ;;  %v5127_v42 = vld [vmem:[%s6501_s9 + $0xf0] ss:$8 sps:$4 sm:$0xff]  }
0x1a39   :  { %v4891_v19 = vpop.f32.mrf.mxu1 }
0x1a3a   :  { %4995 = vrot.lane.b32.xlu0 %v4994_v41, %s5338_s29 }
0x1a42   :  { %v3345_v43 = vpop.f32.mrf.mxu0 }
0x1a44   :  { %v4896_v34 = vpop.f32.mrf.mxu0 }
0x1a46   :  { %v3348_v61 = vpop.f32.mrf.mxu0 }
0x1a47   :  { %v4999_v13 = vpack.i.bf16 %v3348_v61, %v3345_v43 }
0x1a48   :  { %v4897_v15 = vpop.f32.mrf.mxu0 }
0x1a49   :  { %5000 = vrot.lane.b32.xlu1 %v4999_v13, %s5338_s29 }
0x1aac   :  { %v4996_v52 = vpop.permute.xlu0 %4995 }
0x1aad   :  { %v4998_v48 = vunpack.i.h.bf16 %v4996_v52  ;;  %v4997_v55 = vunpack.i.l.bf16 %v4996_v52  ;;  %v5139_v52 = vld [vmem:[%s6501_s9 + $0xb0] ss:$8 sps:$4 sm:$0xff]  }
0x1aaf   :  { %v3408_v60 = vsel %vm1460_vm4, %v3404_v58, %v4997_v55  ;;  %v3409_v2 = vsel %vm1460_vm4, %v3405_v1, %v4998_v48  ;;  %v5141_v48 = vld [vmem:[%s6501_s9 + $0xb4] ss:$8 sps:$4 sm:$0xff]   ;;  %v5144_v55 = vld [vmem:[%s6501_s9 + $0xa4] ss:$8 sps:$4 sm:$0xff]   ;;  %v5142_v58 = vld [vmem:[%s6501_s9 + $0xa0] ss:$8 sps:$4 sm:$0xff]  }
0x1ab0   :  { %v3412_v3 = vpack.c.bf16 %v3409_v2, %v3408_v60  ;;  %v5147_v1 = vld [vmem:[%s6501_s9 + $0x94] ss:$8 sps:$4 sm:$0xff]   ;;  %v5145_v60 = vld [vmem:[%s6501_s9 + $0x90] ss:$8 sps:$4 sm:$0xff]   ;;  %v5150_v2 = vld [vmem:[%s6501_s9 + $0x84] ss:$8 sps:$4 sm:$0xff]  }
0x1ab2   :  { %4914 = vmatprep.mubr.bf16.mxu1 %v3412_v3  ;;  %v5151_v3 = vld [vmem:[%s6502_s11 + $0xf8] sm:$0xff]  }
0x1ab3   :  { %4602 = vmatprep.subr.bf16.mxu1 %v5151_v3 }
0x1abb   :  { %v5001_v9 = vpop.permute.xlu1 %5000 }
0x1abc   :  { %v5003_v11 = vunpack.i.h.bf16 %v5001_v9  ;;  %v5002_v20 = vunpack.i.l.bf16 %v5001_v9  ;;  %v5157_v9 = vld [vmem:[%s6502_s11 + $0xe0] sm:$0xff]  }
0x1abe   :  { %v3410_v0 = vsel %vm1460_vm4, %v3406_v46, %v5002_v20  ;;  %v3411_v8 = vsel %vm1460_vm4, %v3407_v63, %v5003_v11  ;;  %v5160_v11 = vld [vmem:[%s6502_s11 + $0x98] sm:$0xff]  }
0x1abf   :  { %v3413_v53 = vpack.c.bf16 %v3411_v8, %v3410_v0 }
0x1ac1   :  { %4915 = vmatmul.mubr.bf16.vlgmr.msra.gmra.mxu1 %v3413_v53 }
0x1ac2   :  { %4603 = vmatpush3.bf16.msra.mxu1 %v5152_v21 }
0x1ac3   :  { %4604 = vmatprep.subr.bf16.mxu1 %v5153_v4 }
0x1ac6   :  { %4605 = vmatpush3.bf16.msra.mxu1 %v5154_v38 }
0x1ac7   :  { %4606 = vmatprep.subr.bf16.mxu1 %v5155_v10 }
0x1aca   :  { %4607 = vmatpush3.bf16.msra.mxu1 %v5156_v35 }
0x1acb   :  { %4608 = vmatprep.subr.bf16.mxu1 %v5157_v9 }
0x1ace   :  { %4609 = vmatpush3.bf16.msra.mxu1 %v5158_v44 }
0x1acf   :  { %4610 = vmatprep.subr.bf16.mxu1 %v5159_v5 }
0x1ad2   :  { %4611 = vmatpush3.bf16.msra.mxu1 %v5160_v11 }
0x1b81   :  { %v4916_v56 = vpop.f32.mrf.mxu1 }
0x1b82   :  { %v3530_v22 = vadd.f32 %v4916_v56, %v4358_v36 }
0x1b83   :  { %v3521_v57 = vpop.f32.mrf.mxu1 }
0x1b84   :  { %v3522_v17 = vadd.f32 %v4358_v36, %v3521_v57  ;;  %v3538_v25 = vadd.f32 %v3530_v22, %v6049_v33 }
0x1b85   :  { %v4917_v32 = vpop.f32.mrf.mxu1 }
0x1b86   :  { %v3536_v6 = vadd.f32 %v3522_v17, %v6040_v24  ;;  %v3533_v26 = vadd.f32 %v4917_v32, %v4358_v36  ;;  %v5129_v24 = vld [vmem:[%s6501_s9 + $0xf4] ss:$8 sps:$4 sm:$0xff]  }
0x1b87   :  { %v3524_v7 = vpop.f32.mrf.mxu1  ;;  %3720 = vmatprep.subr.bf16.mxu0 %v5129_v24 }
0x1b88   :  { %v3525_v23 = vadd.f32 %v4358_v36, %v3524_v7  ;;  %3544 = vadd.xlane.f32.xlu0 %v3536_v6  ;;  %v3539_v28 = vadd.f32 %v3533_v26, %v6051_v31  ;;  %3721 = vmatpush1.bf16.msra.mxu0 %v5127_v42  ;;  %v4370_v42 = vld [vmem:[%s6504_s8 + $0x1] ss:$0 sm:$0xff] }
0x1b89   :  { %3722 = vmatprep.subr.bf16.mxu0 %v5132_v49  ;;  %v4387_v49 = vld [vmem:[%s6505_s10 + $0x2] sm:$0x3] }
0x1b8a   :  { %v3537_v18 = vadd.f32 %v3525_v23, %v6042_v14  ;;  %v4369_v23 = vld [vmem:[%s6503_s7 + $0x1] ss:$0 sm:$0xff] }
0x1b8c   :  { %3546 = vadd.xlane.f32.xlu1 %v3537_v18  ;;  %3548 = vadd.xlane.f32.xlu0 %v3538_v25 }
0x1b8d   :  { %3723 = vmatpush1.bf16.msra.mxu0 %v5130_v50 }
0x1b8e   :  { %3724 = vmatprep.subr.bf16.mxu0 %v5135_v59  ;;  %v3637_v59 = vrot.slane %v4387_v49, %v5549_v45 }
0x1b90   :  { %3550 = vadd.xlane.f32.xlu0 %v3539_v28 }
0x1b91   :  { %3725 = vmatpush1.bf16.msra.mxu0 %v5133_v51  ;;  %v3633_v51 = vrot.slane %v4387_v49, %v5556_v54 }
0x1b92   :  { %3726 = vmatprep.subr.bf16.mxu0 %v5138_v62 }
0x1b95   :  { %3727 = vmatpush1.bf16.msra.mxu0 %v5136_v39 }
0x1b96   :  { %3728 = vmatprep.subr.bf16.mxu0 %v5141_v48 }
0x1b99   :  { %3729 = vmatpush1.bf16.msra.mxu0 %v5139_v52 }
0x1b9a   :  { %3730 = vmatprep.subr.bf16.mxu0 %v5144_v55 }
0x1b9d   :  { %3731 = vmatpush1.bf16.msra.mxu0 %v5142_v58 }
0x1b9e   :  { %3732 = vmatprep.subr.bf16.mxu0 %v5147_v1 }
0x1ba1   :  { %3733 = vmatpush1.bf16.msra.mxu0 %v5145_v60 }
0x1ba2   :  { %3734 = vmatprep.subr.bf16.mxu0 %v5150_v2 }
0x1ba5   :  { %3735 = vmatpush1.bf16.msra.mxu0 %v5148_v37 }
0x1c11   :  { %v3545_v30 = vpop.xlane.xlu0 %3544 }
0x1c12   :  { %v3552_v33 = vmul.f32 0.0078125, %v3545_v30 }
0x1c14   :  { %v6304_v40 = vsub.f32 %v3536_v6, %v3552_v33 }
0x1c15   :  { %v3547_v14 = vpop.xlane.xlu1 %3546  ;;  %v3549_v29 = vpop.xlane.xlu0 %3548 }
0x1c16   :  { %v3553_v41 = vmul.f32 0.0078125, %v3547_v14  ;;  %v3554_v19 = vmul.f32 0.0078125, %v3549_v29  ;;  %v3560_v31 = vmul.f32 %v6304_v40, %v6304_v40 }
0x1c18   :  { %v6308_v12 = vsub.f32 %v3537_v18, %v3553_v41  ;;  %v6310_v43 = vsub.f32 %v3538_v25, %v3554_v19  ;;  %3564 = vadd.xlane.f32.xlu0 %v3560_v31 }
0x1c19   :  { %v3551_v34 = vpop.xlane.xlu0 %3550 }
0x1c1a   :  { %v3555_v61 = vmul.f32 0.0078125, %v3551_v34  ;;  %v3561_v13 = vmul.f32 %v6308_v12, %v6308_v12  ;;  %v3562_v15 = vmul.f32 %v6310_v43, %v6310_v43 }
0x1c1c   :  { %v6316_v16 = vsub.f32 %v3539_v28, %v3555_v61  ;;  %3566 = vadd.xlane.f32.xlu1 %v3561_v13  ;;  %3568 = vadd.xlane.f32.xlu0 %v3562_v15  ;;  %v5162_v13 = vld [vmem:[%s6502_s11 + $0x90] sm:$0xff]   ;;  %v5164_v15 = vld [vmem:[%s6502_s11 + $0x88] sm:$0xff]  }
0x1c1e   :  { %v3563_v47 = vmul.f32 %v6316_v16, %v6316_v16 }
0x1c20   :  { %3570 = vadd.xlane.f32.xlu1 %v3563_v47  ;;  %v5166_v47 = vld [vmem:[%s6502_s11 + $0x80] sm:$0xff]  }
0x1ca1   :  { %v3565_v20 = vpop.xlane.xlu0 %3564 }
0x1ca2   :  { %v3572_v46 = vmul.f32 0.0078125, %v3565_v20 }
0x1ca4   :  { %v3576_v63 = vadd.f32 1e-05, %v3572_v46 }
0x1ca5   :  { %v3567_v0 = vpop.xlane.xlu1 %3566  ;;  %v3569_v8 = vpop.xlane.xlu0 %3568 }
0x1ca6   :  { %5319 = vrsqrt.f32 %v3576_v63  ;;  %v3573_v53 = vmul.f32 0.0078125, %v3567_v0  ;;  %v3574_v56 = vmul.f32 0.0078125, %v3569_v8 }
0x1ca8   :  { %v3577_v36 = vadd.f32 1e-05, %v3573_v53  ;;  %v3578_v57 = vadd.f32 1e-05, %v3574_v56  ;;  %v4437_v56 = vld [vmem:[%s6506_s12 + $0x1] ss:$0 sm:$0xff] }
0x1ca9   :  { %v3571_v17 = vpop.xlane.xlu1 %3570 }
0x1caa   :  { %5321 = vrsqrt.f32 %v3577_v36  ;;  %v3575_v32 = vmul.f32 0.0078125, %v3571_v17 }
0x1cab   :  { %5323 = vrsqrt.f32 %v3578_v57 }
0x1cac   :  { %v3579_v22 = vadd.f32 1e-05, %v3575_v32 }
0x1cae   :  { %5325 = vrsqrt.f32 %v3579_v22 }
0x1cb3   :  { %v5320_v6 = vpop.eup %5319 }
0x1cb4   :  { %v3584_v7 = vmul.f32 %v5320_v6, %v6304_v40 }
0x1cb6   :  { %v3594_v18 = vmul.f32 %v4369_v23, %v3584_v7 }
0x1cb7   :  { %v5322_v25 = vpop.eup %5321 }
0x1cb8   :  { %v3585_v26 = vmul.f32 %v5322_v25, %v6308_v12  ;;  %v5324_v28 = vpop.eup %5323  ;;  %v6400_v33 = vadd.f32 %v4370_v42, %v3594_v18 }
0x1cb9   :  { %v3586_v40 = vmul.f32 %v5324_v28, %v6310_v43  ;;  %v5161_v43 = vld [vmem:[%s6502_s11 + $0xd0] sm:$0xff]  }
0x1cba   :  { %v3595_v24 = vmul.f32 %v4369_v23, %v3585_v26  ;;  %4612 = vmatprep.subr.bf16.mxu1 %v5161_v43 }
0x1cbb   :  { %v5326_v30 = vpop.eup %5325  ;;  %v3596_v31 = vmul.f32 %v4369_v23, %v3586_v40  ;;  %4613 = vmatpush3.bf16.msra.mxu1 %v5162_v13 }
0x1cbc   :  { %v6402_v14 = vadd.f32 %v4370_v42, %v3595_v24  ;;  %v3587_v29 = vmul.f32 %v5326_v30, %v6316_v16  ;;  %v5165_v16 = vld [vmem:[%s6502_s11 + $0xc0] sm:$0xff]  }
0x1cbd   :  { %v6411_v34 = vadd.f32 %v4370_v42, %v3596_v31 }
0x1cbe   :  { %v3608_v41 = vpack.c.bf16 %v6402_v14, %v6400_v33  ;;  %v3597_v19 = vmul.f32 %v4369_v23, %v3587_v29 }
0x1cc0   :  { %3753 = vmatmul.mubr.bf16.vlgmr.msra.gmra.mxu0 %v3608_v41  ;;  %v6409_v12 = vadd.f32 %v4370_v42, %v3597_v19 }
0x1cc1   :  { %3762 = vmatprep.mubr.bf16.mxu0 %v5335_v27  ;;  %v5163_v27 = vld [vmem:[%s6502_s11 + $0xc8] sm:$0xff]  }
0x1cc2   :  { %v3609_v61 = vpack.c.bf16 %v6409_v12, %v6411_v34  ;;  %4614 = vmatprep.subr.bf16.mxu1 %v5163_v27 }
0x1cc3   :  { %4615 = vmatpush3.bf16.msra.mxu1 %v5164_v15 }
0x1cc4   :  { %4616 = vmatprep.subr.bf16.mxu1 %v5165_v16 }
0x1cc7   :  { %4617 = vmatpush3.bf16.msra.mxu1 %v5166_v47 }
0x1cc8   :  { %3763 = vmatmul.mubr.bf16.gmra.mxu0 %v3609_v61 }
0x1d80   :  { %v3754_v50 = vpop.f32.mrf.mxu0 }
0x1d81   :  { %v3755_v55 = vadd.f32 %v3754_v50, %v3633_v51 }
0x1d82   :  { %v3756_v62 = vpop.f32.mrf.mxu0 }
0x1d83   :  { %v3757_v52 = vadd.f32 %v3756_v62, %v3637_v59  ;;  %v3773_v21 = vmax.f32 %v3755_v55, 0.0  ;;  %v5167_v62 = vld [vmem:[%s6509_s15 + $0x38] sm:$0xff]  }
0x1d84   :  { %v3758_v39 = vpop.f32.mrf.mxu0  ;;  %4918 = vmatprep.subr.bf16.mxu0 %v5167_v62  ;;  %v5171_v55 = vld [vmem:[%s6509_s15 + $0x18] sm:$0xff]  }
0x1d85   :  { %v3759_v48 = vadd.f32 %v3758_v39, %v3633_v51  ;;  %v3774_v37 = vmax.f32 %v3757_v52, 0.0  ;;  %4919 = vmatpush3.bf16.msra.mxu0 %v5167_v62  ;;  %v5168_v39 = vld [vmem:[%s6509_s15 + $0x30] sm:$0xff]   ;;  %v5169_v52 = vld [vmem:[%s6509_s15 + $0x28] sm:$0xff]  }
0x1d86   :  { %v3760_v58 = vpop.f32.mrf.mxu0  ;;  %4920 = vmatprep.subr.bf16.mxu0 %v5168_v39 }
0x1d87   :  { %v3761_v1 = vadd.f32 %v3760_v58, %v3637_v59  ;;  %v3775_v60 = vmax.f32 %v3759_v48, 0.0  ;;  %v5170_v48 = vld [vmem:[%s6509_s15 + $0x20] sm:$0xff]   ;;  %v5172_v58 = vld [vmem:[%s6509_s15 + $0x10] sm:$0xff]  }
0x1d88   :  { %v3764_v2 = vpop.f32.mrf.mxu0 }
0x1d89   :  { %v3776_v3 = vmax.f32 %v3761_v1, 0.0  ;;  %v3781_v10 = vpack.c.bf16 %v3775_v60, %v3773_v21  ;;  %v3765_v54 = vadd.f32 %v3764_v2, %v3633_v51  ;;  %4921 = vmatpush3.bf16.msra.mxu0 %v5168_v39  ;;  %v5173_v1 = vld [vmem:[%s6509_s15 + $0x8] sm:$0xff]   ;;  %v5174_v60 = vld [vmem:[%s6509_s15] sm:$0xff]  }
0x1d8a   :  { %v3766_v4 = vpop.f32.mrf.mxu0  ;;  %4922 = vmatprep.subr.bf16.mxu0 %v5169_v52 }
0x1d8b   :  { %v3782_v38 = vpack.c.bf16 %v3776_v3, %v3774_v37  ;;  %v3767_v9 = vadd.f32 %v3766_v4, %v3637_v59  ;;  %v3777_v63 = vmax.f32 %v3765_v54, 0.0 }
0x1d8c   :  { %v3768_v35 = vpop.f32.mrf.mxu0 }
0x1d8d   :  { %v3769_v45 = vadd.f32 %v3768_v35, %v3633_v51  ;;  %3954 = vmatprep.mubr.bf16.mxu1 %v3782_v38  ;;  %v3778_v20 = vmax.f32 %v3767_v9, 0.0  ;;  %4923 = vmatpush3.bf16.msra.mxu0 %v5169_v52 }
0x1d8e   :  { %v3770_v44 = vpop.f32.mrf.mxu0  ;;  %3955 = vmatmul.mubr.bf16.vlgmr.msra.gmra.mxu1 %v3781_v10  ;;  %4924 = vmatprep.subr.bf16.mxu0 %v5170_v48 }
0x1d8f   :  { %v3771_v5 = vadd.f32 %v3770_v44, %v3637_v59  ;;  %v3779_v11 = vmax.f32 %v3769_v45, 0.0 }
0x1d91   :  { %v3780_v46 = vmax.f32 %v3771_v5, 0.0  ;;  %v3783_v8 = vpack.c.bf16 %v3779_v11, %v3777_v63  ;;  %4925 = vmatpush3.bf16.msra.mxu0 %v5170_v48 }
0x1d92   :  { %4926 = vmatprep.subr.bf16.mxu0 %v5171_v55 }
0x1d93   :  { %v3784_v0 = vpack.c.bf16 %v3780_v46, %v3778_v20  ;;  %v4456_v20 = vld [vmem:[%s6507_s13 + $0x1] ss:$0 sm:$0xff] }
0x1d95   :  { %3962 = vmatprep.mubr.bf16.mxu1 %v3784_v0  ;;  %4927 = vmatpush3.bf16.msra.mxu0 %v5171_v55 }
0x1d96   :  { %3963 = vmatmul.mubr.bf16.gmra.mxu1 %v3783_v8  ;;  %4928 = vmatprep.subr.bf16.mxu0 %v5172_v58  ;;  %v4457_v8 = vld [vmem:[%s6508_s14 + $0x1] ss:$0 sm:$0xff] }
0x1d99   :  { %4929 = vmatpush3.bf16.msra.mxu0 %v5172_v58 }
0x1d9a   :  { %4930 = vmatprep.subr.bf16.mxu0 %v5173_v1 }
0x1d9d   :  { %4931 = vmatpush3.bf16.msra.mxu0 %v5173_v1 }
0x1d9e   :  { %4932 = vmatprep.subr.bf16.mxu0 %v5174_v60 }
0x1da1   :  { %4933 = vmatpush3.bf16.msra.mxu0 %v5174_v60 }
0x1e4e   :  { %v4618_v53 = vpop.f32.mrf.mxu1 }
0x1e50   :  { %v4619_v36 = vpop.f32.mrf.mxu1 }
0x1e51   :  { %v4620_v57 = vadd.f32 %v4619_v36, %v4618_v53 }
0x1e52   :  { %v4621_v17 = vpop.f32.mrf.mxu1 }
0x1e53   :  { %v3957_v32 = vadd.f32 %v4620_v57, %v4437_v56 }
0x1e54   :  { %v4622_v22 = vpop.f32.mrf.mxu1 }
0x1e55   :  { %v4623_v6 = vadd.f32 %v4622_v22, %v4621_v17  ;;  %v3971_v7 = vadd.f32 %v3957_v32, %v6400_v33 }
0x1e56   :  { %v4624_v23 = vpop.f32.mrf.mxu1 }
0x1e57   :  { %v3960_v25 = vadd.f32 %v4623_v6, %v4437_v56  ;;  %3979 = vadd.xlane.f32.xlu0 %v3971_v7 }
0x1e58   :  { %v4625_v26 = vpop.f32.mrf.mxu1 }
0x1e59   :  { %v4626_v18 = vadd.f32 %v4625_v26, %v4624_v23  ;;  %v3972_v28 = vadd.f32 %v3960_v25, %v6402_v14 }
0x1e5a   :  { %v4627_v42 = vpop.f32.mrf.mxu1 }
0x1e5b   :  { %v3965_v24 = vadd.f32 %v4626_v18, %v4437_v56  ;;  %3981 = vadd.xlane.f32.xlu1 %v3972_v28 }
0x1e5c   :  { %v4628_v30 = vpop.f32.mrf.mxu1 }
0x1e5d   :  { %v4629_v40 = vadd.f32 %v4628_v30, %v4627_v42  ;;  %v3973_v29 = vadd.f32 %v3965_v24, %v6411_v34 }
0x1e5f   :  { %v3968_v41 = vadd.f32 %v4629_v40, %v4437_v56  ;;  %3983 = vadd.xlane.f32.xlu0 %v3973_v29 }
0x1e61   :  { %v3974_v19 = vadd.f32 %v3968_v41, %v6409_v12 }
0x1e63   :  { %3985 = vadd.xlane.f32.xlu1 %v3974_v19 }
0x1ee0   :  { %v3980_v33 = vpop.xlane.xlu0 %3979 }
0x1ee1   :  { %v3987_v31 = vmul.f32 0.0078125, %v3980_v33 }
0x1ee3   :  { %v3991_v61 = vsub.f32 %v3971_v7, %v3987_v31 }
0x1ee4   :  { %v3982_v43 = vpop.xlane.xlu1 %3981 }
0x1ee5   :  { %v3988_v13 = vmul.f32 0.0078125, %v3982_v43  ;;  %v3995_v27 = vmul.f32 %v3991_v61, %v3991_v61 }
0x1ee7   :  { %v3992_v15 = vsub.f32 %v3972_v28, %v3988_v13  ;;  %3999 = vadd.xlane.f32.xlu0 %v3995_v27  ;;  %v4458_v28 = vld [vmem:[%s6510_s16] ss:$0 sm:$0xff] }
0x1ee8   :  { %v3984_v14 = vpop.xlane.xlu0 %3983 }
0x1ee9   :  { %v3989_v16 = vmul.f32 0.0078125, %v3984_v14  ;;  %v3996_v47 = vmul.f32 %v3992_v15, %v3992_v15 }
0x1eeb   :  { %v3993_v49 = vsub.f32 %v3973_v29, %v3989_v16  ;;  %4001 = vadd.xlane.f32.xlu1 %v3996_v47 }
0x1eec   :  { %v3986_v50 = vpop.xlane.xlu1 %3985 }
0x1eed   :  { %v3990_v34 = vmul.f32 0.0078125, %v3986_v50  ;;  %v3997_v59 = vmul.f32 %v3993_v49, %v3993_v49 }
0x1eef   :  { %v3994_v51 = vsub.f32 %v3974_v19, %v3990_v34  ;;  %4003 = vadd.xlane.f32.xlu0 %v3997_v59 }
0x1ef1   :  { %v3998_v12 = vmul.f32 %v3994_v51, %v3994_v51 }
0x1ef3   :  { %4005 = vadd.xlane.f32.xlu1 %v3998_v12 }
0x1f70   :  { %v4000_v2 = vpop.xlane.xlu0 %3999 }
0x1f71   :  { %v4007_v37 = vmul.f32 0.0078125, %v4000_v2 }
0x1f73   :  { %v4011_v3 = vadd.f32 1e-05, %v4007_v37 }
0x1f74   :  { %v4002_v21 = vpop.xlane.xlu1 %4001 }
0x1f75   :  { %5327 = vrsqrt.f32 %v4011_v3  ;;  %v4008_v4 = vmul.f32 0.0078125, %v4002_v21 }
0x1f77   :  { %v4012_v38 = vadd.f32 1e-05, %v4008_v4 }
0x1f78   :  { %v4004_v10 = vpop.xlane.xlu0 %4003 }
0x1f79   :  { %5329 = vrsqrt.f32 %v4012_v38  ;;  %v4009_v35 = vmul.f32 0.0078125, %v4004_v10 }
0x1f7b   :  { %v4013_v9 = vadd.f32 1e-05, %v4009_v35 }
0x1f7c   :  { %v4006_v45 = vpop.xlane.xlu1 %4005 }
0x1f7d   :  { %5331 = vrsqrt.f32 %v4013_v9  ;;  %v4010_v54 = vmul.f32 0.0078125, %v4006_v45 }
0x1f7f   :  { %v4014_v44 = vadd.f32 1e-05, %v4010_v54 }
0x1f81   :  { %5333 = vrsqrt.f32 %v4014_v44 }
0x1f82   :  { %v5328_v5 = vpop.eup %5327 }
0x1f83   :  { %v4019_v11 = vmul.f32 %v5328_v5, %v3991_v61 }
0x1f85   :  { %v4029_v0 = vmul.f32 %v4456_v20, %v4019_v11 }
0x1f86   :  { %v5330_v46 = vpop.eup %5329 }
0x1f87   :  { %v4020_v63 = vmul.f32 %v5330_v46, %v3992_v15  ;;  %v4039_v57 = vadd.f32 %v4457_v8, %v4029_v0 }
0x1f89   :  { %v4030_v53 = vmul.f32 %v4456_v20, %v4020_v63 }
0x1f8a   :  { %v5332_v56 = vpop.eup %5331 }
0x1f8b   :  { %v4021_v36 = vmul.f32 %v5332_v56, %v3993_v49  ;;  %v4040_v17 = vadd.f32 %v4457_v8, %v4030_v53 }
0x1f8d   :  { %v4043_v32 = vpack.c.bf16 %v4040_v17, %v4039_v57  ;;  %v4031_v7 = vmul.f32 %v4456_v20, %v4021_v36 }
0x1f8e   :  { %v5334_v22 = vpop.eup %5333 }
0x1f8f   :  { %v4022_v6 = vmul.f32 %v5334_v22, %v3994_v51  ;;  %4934 = vmatprep.mubr.bf16.mxu0 %v4043_v32  ;;  %v4041_v25 = vadd.f32 %v4457_v8, %v4031_v7 }
0x1f91   :  { %v4032_v23 = vmul.f32 %v4456_v20, %v4022_v6 }
0x1f93   :  { %v4042_v26 = vadd.f32 %v4457_v8, %v4032_v23 }
0x1f95   :  { %v4044_v18 = vpack.c.bf16 %v4042_v26, %v4041_v25 }
0x1f97   :  { %4935 = vmatmul.mubr.bf16.vlgmr.msra.gmra.mxu0 %v4044_v18 }
0x2057   :  { %v4936_v42 = vpop.f32.mrf.mxu0 }
0x2058   :  { %v4159_v24 = vadd.f32 %v4936_v42, %v4458_v28 }
0x2059   :  { %v4150_v30 = vpop.f32.mrf.mxu0 }
0x205a   :  { %v4167_v40 = vmax.f32 %v4159_v24, 0.0  ;;  %v4151_v29 = vadd.f32 %v4458_v28, %v4150_v30 }
0x205b   :  { %v4937_v41 = vpop.f32.mrf.mxu0 }
0x205c   :  { %4171 = vst.msk [vmem:[%s6511_s17 + $0x10] sm:$0xff] %vm83_vm0, %v4167_v40  ;;  %v4165_v19 = vmax.f32 %v4151_v29, 0.0  ;;  %v4162_v33 = vadd.f32 %v4937_v41, %v4458_v28 }
0x205d   :  { %v4153_v31 = vpop.f32.mrf.mxu0 }
0x205e   :  { %4169 = vst.msk [vmem:[%s6511_s17] sm:$0xff] %vm83_vm0, %v4165_v19  ;;  %v4168_v61 = vmax.f32 %v4162_v33, 0.0  ;;  %v4154_v43 = vadd.f32 %v4458_v28, %v4153_v31 }
0x2060   :  { %4172 = vst.msk [vmem:[%s6511_s17 + $0x18] sm:$0xff] %vm83_vm0, %v4168_v61  ;;  %v4166_v13 = vmax.f32 %v4154_v43, 0.0 }
0x2062   :  { %4170 = vst.msk [vmem:[%s6511_s17 + $0x8] sm:$0xff] %vm83_vm0, %v4166_v13 }

</bundles_post_ra>
